<compile_context>
chip_gen: v6e
topology: v6e:2x2x1
jax: 0.10.0
libtpu: 0.0.40
codegen_flags: <defaults>
</compile_context>

<pallas_src>
import jax
import jax.numpy as jnp
from jax.experimental import pallas as pl
from jax.experimental.pallas import tpu as pltpu

# Full-precision f32 matmuls everywhere (kernel and reference) so the fused layout
# can be validated at a tight tolerance (review: 3e-2 was far too loose).
jax.config.update("jax_default_matmul_precision", "highest")


def _dot(a, b):
    return jnp.dot(a, b, preferred_element_type=jnp.float32)


# ---------------------------------------------------------------------------
# Kernel 1: X-path GCN for all 4 gates, all timesteps of one batch element.
# grid=(B,), fully parallel.  Gate lane order: i | f | c | o.
# ---------------------------------------------------------------------------
def _xpath_gcn_kernel(a_ref, x_ref, w0_ref, w1_ref, b01_ref, out_ref):
    # a_ref: (N, N); x_ref: (T, N, Cin); w0_ref: (Cin, 4Hd); w1_ref: (4Hd, 4Hd)
    # b01_ref: (2, 4Hd) [row0=layer-0 bias, row1=layer-1 bias]; out_ref: (T, N, 4Hd)
    A = a_ref[...]
    w0 = w0_ref[...]
    w1 = w1_ref[...]
    b0 = b01_ref[0:1, :]
    b1 = b01_ref[1:2, :]
    T_ = x_ref.shape[0]

    @pl.loop(0, T_)
    def _(t):
        Xt = x_ref[t]                                      # (N, Cin)
        z0 = jnp.maximum(_dot(_dot(A, Xt), w0) + b0, 0.0)  # ReLU between GCN layers
        out_ref[t] = _dot(_dot(A, z0), w1) + b1            # no activation on layer 1


def xpath_gcn(ahat, seq, w0, w1, b01):
    """seq: (B, T, N, Cin).  Returns the hoisted X-gate slab (B, T, N, 4*Hd)."""
    B, T_, N, Cin = seq.shape
    GH = w0.shape[1]
    return pl.pallas_call(
        _xpath_gcn_kernel,
        grid=(B,),
        in_specs=[
            pl.BlockSpec((N, N), lambda b: (0, 0)),
            pl.BlockSpec((None, T_, N, Cin), lambda b: (b, 0, 0, 0)),
            pl.BlockSpec((Cin, GH), lambda b: (0, 0)),
            pl.BlockSpec((GH, GH), lambda b: (0, 0)),
            pl.BlockSpec((2, GH), lambda b: (0, 0)),
        ],
        out_specs=pl.BlockSpec((None, T_, N, GH), lambda b: (b, 0, 0, 0)),
        out_shape=jax.ShapeDtypeStruct((B, T_, N, GH), jnp.float32),
        compiler_params=pltpu.CompilerParams(dimension_semantics=("parallel",)),
    )(ahat, seq, w0, w1, b01)


# ---------------------------------------------------------------------------
# Kernel 2: H-path recurrence.  One grid step = one batch element's FULL
# T-step recurrence (state carried in VMEM scratch, pl.loop over time).
# ---------------------------------------------------------------------------
def _make_recurrent_kernel(emit_c):
    def kernel(a_ref, xg_ref, h0_ref, c0_ref, wh0_ref, wh1_ref, bh01_ref, gp_ref,
               *out_and_scratch):
        if emit_c:
            hseq_ref, cseq_ref, h_scr, c_scr = out_and_scratch
        else:
            hseq_ref, h_scr, c_scr = out_and_scratch
            cseq_ref = None

        hd = h0_ref.shape[-1]
        A = a_ref[...]
        wh0 = wh0_ref[...]
        wh1 = wh1_ref[...]
        bh0 = bh01_ref[0:1, :]
        bh1 = bh01_ref[1:2, :]
        bg = gp_ref[0:1, :]                       # gate biases [b_i|b_f|b_c|b_o]
        wc_if = gp_ref[1:2, 0:2 * hd]             # peephole [wc_i | wc_f]
        wc_o = gp_ref[1:2, 2 * hd:3 * hd]         # peephole wc_o

        # New batch element every grid step -> re-init carried state unconditionally.
        h_scr[...] = h0_ref[...]
        c_scr[...] = c0_ref[...]

        T_ = xg_ref.shape[0]

        @pl.loop(0, T_)
        def _(t):
            H = h_scr[...]
            C = c_scr[...]

            # H-path GCN (layer 0 + ReLU, layer 1), all 4 gates in one 4Hd slab.
            AH = _dot(A, H)                                        # (N, Hd)
            z0 = jnp.maximum(_dot(AH, wh0) + bh0, 0.0)             # (N, 4Hd)
            z1 = _dot(_dot(A, z0), wh1) + bh1                      # (N, 4Hd)

            # Add hoisted X-path gates + gate biases: g = [i|f|c|o].
            g = xg_ref[t] + z1 + bg                                # (N, 4Hd)

            # Fused i/f sigmoid on one 2Hd-wide slab (peephole on old C).
            CC = jnp.concatenate([C, C], axis=-1)
            IF = jax.nn.sigmoid(g[:, 0:2 * hd] + wc_if * CC)
            I = IF[:, 0:hd]
            F = IF[:, hd:2 * hd]
            Tg = jnp.tanh(g[:, 2 * hd:3 * hd])
            C_new = F * C + I * Tg
            # Output gate uses the *new* cell state (matches the PyTorch forward).
            O = jax.nn.sigmoid(g[:, 3 * hd:4 * hd] + wc_o * C_new)
            H_new = O * jnp.tanh(C_new)

            h_scr[...] = H_new
            c_scr[...] = C_new
            hseq_ref[t] = H_new
            if cseq_ref is not None:
                cseq_ref[t] = C_new

    return kernel


def gconv_lstm_layer(ahat, xg_seq, h0, c0, hpacked, *, emit_c):
    """xg_seq: (B, T, N, 4Hd) hoisted X-path gates; h0/c0: (B, N, Hd).
    Returns (H_seq, C_seq or None), H_seq/C_seq: (B, T, N, Hd)."""
    B, T_, N, GH = xg_seq.shape
    Hd = h0.shape[-1]
    wh0, wh1, bh01, gp = hpacked

    const = lambda shape: pl.BlockSpec(shape, lambda b: (0,) * len(shape))
    per_b = lambda shape: pl.BlockSpec((None,) + shape,
                                       lambda b: (b,) + (0,) * len(shape))

    sds = jax.ShapeDtypeStruct((B, T_, N, Hd), jnp.float32)
    if emit_c:
        out_specs = (per_b((T_, N, Hd)), per_b((T_, N, Hd)))
        out_shape = (sds, sds)
    else:
        out_specs = per_b((T_, N, Hd))
        out_shape = sds

    outs = pl.pallas_call(
        _make_recurrent_kernel(emit_c),
        grid=(B,),
        in_specs=[
            const((N, N)),          # A_hat (resident across all grid steps)
            per_b((T_, N, GH)),     # hoisted X-path gate sequence
            per_b((N, Hd)),         # h0 for this batch element
            per_b((N, Hd)),         # c0
            const((Hd, GH)),        # Wh0 gate-stacked
            const((GH, GH)),        # Wh1 block-diagonal (4 x (Hd,Hd))
            const((2, GH)),         # H-path layer-0/1 biases
            const((2, GH)),         # row0 = gate biases, row1 = [wc_i|wc_f|wc_o|0]
        ],
        out_specs=out_specs,
        out_shape=out_shape,
        scratch_shapes=[
            pltpu.VMEM((N, Hd), jnp.float32),   # carried H
            pltpu.VMEM((N, Hd), jnp.float32),   # carried C
        ],
        compiler_params=pltpu.CompilerParams(
            # Batch elements are independent -> parallel (megacore on v7x).
            dimension_semantics=("parallel",),
        ),
    )(ahat, xg_seq, h0, c0, wh0, wh1, bh01, gp)

    if emit_c:
        return outs[0], outs[1]
    return outs, None


# ---------------------------------------------------------------------------
# Stacked layers over time (mirrors GCNLSTM's gcn_cell_list recurrence; the
# stacked-RNN reorder "layer-by-layer over the full sequence" is exact).
# ---------------------------------------------------------------------------
def gcn_lstm_core(ahat, x, h0, c0, layer_params):
    """
    ahat: (N, N); x: (B, T, N, Cin) (== inputDeep); h0, c0: (L, B, N, Hd).
    layer_params: list of (xpacked, hpacked) per layer.
    Returns (H_seq, C_seq) of the LAST layer, each (B, T, N, Hd)
    (GCNLSTM stacks hidden_l[1] == the last layer's cell state over time).
    """
    L = len(layer_params)
    seq = x
    h_seq = c_seq = None
    for l, (xpacked, hpacked) in enumerate(layer_params):
        wx0, wx1, bx01 = xpacked
        xg = xpath_gcn(ahat, seq, wx0, wx1, bx01)          # hoisted X-path, all t
        h_seq, c_seq = gconv_lstm_layer(ahat, xg, h0[l], c0[l], hpacked,
                                        emit_c=(l == L - 1))
        seq = h_seq                     # next layer consumes this layer's H sequence
    return h_seq, c_seq


# ---------------------------------------------------------------------------
# Parameter construction + lane-dense packing (gate order i | f | c | o).
# ---------------------------------------------------------------------------
def _block_diag(blocks):
    nb = len(blocks)
    rows = []
    for i, b in enumerate(blocks):
        row = [b if j == i else jnp.zeros((b.shape[0], blocks[j].shape[1]), b.dtype)
               for j in range(nb)]
        rows.append(jnp.concatenate(row, axis=1))
    return jnp.concatenate(rows, axis=0)


def _glorot(key, shape):
    fan_in, fan_out = shape[-2], shape[-1]
    limit = (6.0 / (fan_in + fan_out)) ** 0.5
    return jax.random.uniform(key, shape, jnp.float32, -limit, limit)


def make_params(key, cin, hd):
    ks = jax.random.split(key, 5)
    wx0 = _glorot(ks[0], (4, cin, hd))          # 4 gates, GCN-on-X layer 0
    wx1 = _glorot(ks[1], (4, hd, hd))           # layer 1
    wh0 = _glorot(ks[2], (4, hd, hd))           # 4 gates, GCN-on-H layer 0
    wh1 = _glorot(ks[3], (4, hd, hd))           # layer 1
    bx0 = jnp.zeros((4, 1, hd), jnp.float32)    # GCNConv biases init to zero
    bx1 = jnp.zeros((4, 1, hd), jnp.float32)
    bh0 = jnp.zeros((4, 1, hd), jnp.float32)
    bh1 = jnp.zeros((4, 1, hd), jnp.float32)
    wc = _glorot(ks[4], (3, 1, hd))             # peephole w_c_{i,f,o}
    bg = jnp.zeros((4, 1, hd), jnp.float32)     # gate biases b_i, b_f, b_c, b_o
    return (wx0, bx0, wx1, bx1, wh0, bh0, wh1, bh1, wc, bg)


def pack_params(params):
    """Pack per-gate params into the fused lane-dense layout used by the kernels."""
    wx0, bx0, wx1, bx1, wh0, bh0, wh1, bh1, wc, bg = params
    n_gates, cin, hd = wx0.shape
    gh = n_gates * hd
    f32 = jnp.float32

    # X path (hoisted out of the recurrence): gate-stacked layer-0 weight,
    # block-diagonal layer-1 weight, stacked biases.
    wx0_s = jnp.transpose(wx0, (1, 0, 2)).reshape(cin, gh)          # (Cin, 4Hd)
    wx1_bd = _block_diag([wx1[g] for g in range(4)])                # (4Hd, 4Hd)
    bx01 = jnp.concatenate([bx0.reshape(1, gh), bx1.reshape(1, gh)], axis=0)

    # H path (stays in the recurrent kernel).
    wh0_s = jnp.transpose(wh0, (1, 0, 2)).reshape(hd, gh)           # (Hd, 4Hd)
    wh1_bd = _block_diag([wh1[g] for g in range(4)])                # (4Hd, 4Hd)
    bh01 = jnp.concatenate([bh0.reshape(1, gh), bh1.reshape(1, gh)], axis=0)

    gp = jnp.concatenate(
        [bg.reshape(1, gh),
         jnp.concatenate([wc.reshape(1, 3 * hd), jnp.zeros((1, hd), f32)], axis=1)],
        axis=0)                                                     # (2, 4Hd)

    return (wx0_s, wx1_bd, bx01), (wh0_s, wh1_bd, bh01, gp)


def make_normalized_adjacency(edge_index, edge_weight, n_nodes):
    # A[dst, src] = weight of edge src -> dst; add self-loops (weight 1); sym norm.
    src, dst = edge_index
    A = jnp.zeros((n_nodes, n_nodes), jnp.float32).at[dst, src].add(edge_weight)
    A = A + jnp.eye(n_nodes, dtype=jnp.float32)
    deg = A.sum(axis=1)
    d_inv_sqrt = 1.0 / jnp.sqrt(deg)
    return d_inv_sqrt[:, None] * A * d_inv_sqrt[None, :]


# ---------------------------------------------------------------------------
# Plain-JAX per-gate reference (original loop order: time outer, layers inner).
# Verifies the hoisted X-path + fused gate ordering at tight f32 tolerance.
# ---------------------------------------------------------------------------
def reference_core(ahat, x, h0, c0, raw_layer_params):
    B, T_, N, Cin = x.shape

    def gcn2(feat, w0, b0, w1, b1):
        y = jnp.einsum('nm,bmc->bnc', ahat, feat) @ w0 + b0
        y = jnp.maximum(y, 0.0)
        y = jnp.einsum('nm,bmc->bnc', ahat, y) @ w1 + b1
        return y

    def cell(params, X, H, C):
        wx0, bx0, wx1, bx1, wh0, bh0, wh1, bh1, wc, bg = params
        def gate(g):
            return (gcn2(X, wx0[g], bx0[g], wx1[g], bx1[g])
                    + gcn2(H, wh0[g], bh0[g], wh1[g], bh1[g]))
        I = jax.nn.sigmoid(gate(0) + wc[0] * C + bg[0])
        F = jax.nn.sigmoid(gate(1) + wc[1] * C + bg[1])
        Tg = jnp.tanh(gate(2) + bg[2])
        C_new = F * C + I * Tg
        O = jax.nn.sigmoid(gate(3) + wc[2] * C_new + bg[3])
        return O * jnp.tanh(C_new), C_new

    L = len(raw_layer_params)
    hidden = [(h0[l], c0[l]) for l in range(L)]
    h_out, c_out = [], []
    for t in range(T_):
        inp = x[:, t]
        Hn = Cn = None
        for l in range(L):
            Hn, Cn = cell(raw_layer_params[l], inp, hidden[l][0], hidden[l][1])
            hidden[l] = (Hn, Cn)
            inp = Hn
        h_out.append(Hn)
        c_out.append(Cn)
    return jnp.stack(h_out, axis=1), jnp.stack(c_out, axis=1)   # (B, T, N, Hd)


# ---------------------------------------------------------------------------
if __name__ == "__main__":
    B, T, N, Cin, Hd, L = 2, 8, 16, 4, 32, 2
    key = jax.random.PRNGKey(0)
    k_x, k_w, k_p = jax.random.split(key, 3)

    # Deterministic bidirectional ring graph over N nodes with random weights (e_i, e_a).
    i = jnp.arange(N)
    j = (i + 1) % N
    edge_index = (jnp.concatenate([i, j]), jnp.concatenate([j, i]))
    edge_weight = jax.random.uniform(k_w, (2 * N,), jnp.float32, 0.5, 1.5)
    ahat = make_normalized_adjacency(edge_index, edge_weight, N)

    x = jax.random.normal(k_x, (B, T, N, Cin), jnp.float32)   # == inputDeep
    h0 = jnp.zeros((L, B, N, Hd), jnp.float32)                # hx=None -> zero states
    c0 = jnp.zeros((L, B, N, Hd), jnp.float32)

    p_keys = jax.random.split(k_p, L)
    raw_params = [make_params(p_keys[l], Cin if l == 0 else Hd, Hd) for l in range(L)]
    packed_params = [pack_params(p) for p in raw_params]

    run = jax.jit(gcn_lstm_core)
    H_seq, C_seq = run(ahat, x, h0, c0, packed_params)
    jax.block_until_ready((H_seq, C_seq))

    assert H_seq.shape == (B, T, N, Hd) and C_seq.shape == (B, T, N, Hd)
    assert bool(jnp.all(jnp.isfinite(H_seq))) and bool(jnp.all(jnp.isfinite(C_seq)))

    # Tight f32 tolerance check of the hoisted/fused layout vs the per-gate reference.
    H_ref, C_ref = jax.jit(reference_core)(ahat, x, h0, c0, raw_params)
    assert bool(jnp.allclose(H_seq, H_ref, atol=1e-4, rtol=1e-4)), "H mismatch"
    assert bool(jnp.allclose(C_seq, C_ref, atol=1e-4, rtol=1e-4)), "C mismatch"

    print("KERNEL_OK")
</pallas_src>

<mosaic_0001>
module attributes {stable_mosaic.version = 11 : i64} {
  func.func @_xpath_gcn_kernel(%arg0: i32, %arg1: memref<16x16xf32, #tpu.memory_space<vmem>>, %arg2: memref<1x8x16x4xf32, #tpu.memory_space<vmem>>, %arg3: memref<4x128xf32, #tpu.memory_space<vmem>>, %arg4: memref<128x128xf32, #tpu.memory_space<vmem>>, %arg5: memref<2x128xf32, #tpu.memory_space<vmem>>, %arg6: memref<1x8x16x128xf32, #tpu.memory_space<vmem>>) attributes {dimension_semantics = [#tpu.dimension_semantics<parallel>], iteration_bounds = array<i64: 2>, scalar_prefetch = 0 : i64, scratch_operands = 0 : i64, tpu.core_type = #tpu.core_type<tc>, window_params = [{pipeline_mode = #tpu.pipeline_mode<synchronous>, transform_indices = @transform_0, window_bounds = array<i64: 16, 16>}, {transform_indices = @transform_1, window_bounds = array<i64: 1, 8, 16, 4>}, {pipeline_mode = #tpu.pipeline_mode<synchronous>, transform_indices = @transform_2, window_bounds = array<i64: 4, 128>}, {pipeline_mode = #tpu.pipeline_mode<synchronous>, transform_indices = @transform_3, window_bounds = array<i64: 128, 128>}, {pipeline_mode = #tpu.pipeline_mode<synchronous>, transform_indices = @transform_4, window_bounds = array<i64: 2, 128>}, {transform_indices = @transform_5, window_bounds = array<i64: 1, 8, 16, 128>}]} {
    %c0 = arith.constant 0 : index
    %c0_0 = arith.constant 0 : index
    %0 = vector.load %arg1[%c0, %c0_0] : memref<16x16xf32, #tpu.memory_space<vmem>>, vector<16x16xf32>
    %c0_1 = arith.constant 0 : index
    %c0_2 = arith.constant 0 : index
    %1 = vector.load %arg3[%c0_1, %c0_2] : memref<4x128xf32, #tpu.memory_space<vmem>>, vector<4x128xf32>
    %c0_3 = arith.constant 0 : index
    %c0_4 = arith.constant 0 : index
    %2 = vector.load %arg4[%c0_3, %c0_4] : memref<128x128xf32, #tpu.memory_space<vmem>>, vector<128x128xf32>
    %c0_5 = arith.constant 0 : index
    %c0_6 = arith.constant 0 : index
    %3 = vector.load %arg5[%c0_5, %c0_6] : memref<2x128xf32, #tpu.memory_space<vmem>>, vector<1x128xf32>
    %c1 = arith.constant 1 : index
    %c0_7 = arith.constant 0 : index
    %4 = vector.load %arg5[%c1, %c0_7] : memref<2x128xf32, #tpu.memory_space<vmem>>, vector<1x128xf32>
    %c0_i32 = arith.constant 0 : i32
    %c8_i32 = arith.constant 8 : i32
    %5 = arith.addi %c0_i32, %c8_i32 : i32
    %c1_i32 = arith.constant 1 : i32
    scf.for %arg7 = %c0_i32 to %5 step %c1_i32  : i32 {
      %c1_i32_9 = arith.constant 1 : i32
      %6 = arith.muli %arg7, %c1_i32_9 : i32
      %c0_i32_10 = arith.constant 0 : i32
      %7 = arith.addi %c0_i32_10, %6 : i32
      %c0_11 = arith.constant 0 : index
      %8 = arith.index_cast %7 : i32 to index
      %c0_12 = arith.constant 0 : index
      %c0_13 = arith.constant 0 : index
      %9 = vector.load %arg2[%c0_11, %8, %c0_12, %c0_13] : memref<1x8x16x4xf32, #tpu.memory_space<vmem>>, vector<1x1x16x4xf32>
      %10 = vector.shape_cast %9 : vector<1x1x16x4xf32> to vector<16x4xf32>
      %cst = arith.constant dense<0.000000e+00> : vector<16x4xf32>
      %11 = tpu.matmul %0, %10, %cst {dimension_numbers = #tpu.dot_dimension_numbers<[1], [0], [0], [1], [0, 0, 1, 1], [], []>, precision = #tpu.contract_precision<fp32>} : vector<16x16xf32>, vector<16x4xf32>, vector<16x4xf32> -> vector<16x4xf32>
      %cst_14 = arith.constant dense<0.000000e+00> : vector<16x128xf32>
      %12 = tpu.matmul %11, %1, %cst_14 {dimension_numbers = #tpu.dot_dimension_numbers<[1], [0], [0], [1], [0, 0, 1, 1], [], []>, precision = #tpu.contract_precision<fp32>} : vector<16x4xf32>, vector<4x128xf32>, vector<16x128xf32> -> vector<16x128xf32>
      %13 = vector.broadcast %3 : vector<1x128xf32> to vector<16x128xf32>
      %14 = arith.addf %12, %13 : vector<16x128xf32>
      %cst_15 = arith.constant 0.000000e+00 : f32
      %15 = vector.broadcast %cst_15 : f32 to vector<16x128xf32>
      %16 = arith.maximumf %14, %15 : vector<16x128xf32>
      %cst_16 = arith.constant dense<0.000000e+00> : vector<16x128xf32>
      %17 = tpu.matmul %0, %16, %cst_16 {dimension_numbers = #tpu.dot_dimension_numbers<[1], [0], [0], [1], [0, 0, 1, 1], [], []>, precision = #tpu.contract_precision<fp32>} : vector<16x16xf32>, vector<16x128xf32>, vector<16x128xf32> -> vector<16x128xf32>
      %cst_17 = arith.constant dense<0.000000e+00> : vector<16x128xf32>
      %18 = tpu.matmul %17, %2, %cst_17 {dimension_numbers = #tpu.dot_dimension_numbers<[1], [0], [0], [1], [0, 0, 1, 1], [], []>, precision = #tpu.contract_precision<fp32>} : vector<16x128xf32>, vector<128x128xf32>, vector<16x128xf32> -> vector<16x128xf32>
      %19 = vector.broadcast %4 : vector<1x128xf32> to vector<16x128xf32>
      %20 = arith.addf %18, %19 : vector<16x128xf32>
      %c0_18 = arith.constant 0 : index
      %21 = arith.index_cast %7 : i32 to index
      %c0_19 = arith.constant 0 : index
      %c0_20 = arith.constant 0 : index
      %22 = vector.load %arg6[%c0_18, %21, %c0_19, %c0_20] : memref<1x8x16x128xf32, #tpu.memory_space<vmem>>, vector<1x1x16x128xf32>
      %23 = vector.shape_cast %22 : vector<1x1x16x128xf32> to vector<16x128xf32>
      %24 = vector.shape_cast %20 : vector<16x128xf32> to vector<1x1x16x128xf32>
      tpu.vector_store %arg6[%c0_18, %21, %c0_19, %c0_20], %24 {strides = array<i32>} : memref<1x8x16x128xf32, #tpu.memory_space<vmem>>, vector<1x1x16x128xf32>,
    }
    %c8_i32_8 = arith.constant 8 : i32
    return
  }
  func.func @transform_0(%arg0: i32) -> (i32, i32) {
    %c0_i32 = arith.constant 0 : i32
    %c0_i32_0 = arith.constant 0 : i32
    %c0_i32_1 = arith.constant 0 : i32
    return %c0_i32, %c0_i32_0 : i32, i32
  }
  func.func @transform_1(%arg0: i32) -> (i32, i32, i32, i32) {
    %c0_i32 = arith.constant 0 : i32
    %c0_i32_0 = arith.constant 0 : i32
    %c0_i32_1 = arith.constant 0 : i32
    %c0_i32_2 = arith.constant 0 : i32
    return %arg0, %c0_i32, %c0_i32_0, %c0_i32_1 : i32, i32, i32, i32
  }
  func.func @transform_2(%arg0: i32) -> (i32, i32) {
    %c0_i32 = arith.constant 0 : i32
    %c0_i32_0 = arith.constant 0 : i32
    %c0_i32_1 = arith.constant 0 : i32
    return %c0_i32, %c0_i32_0 : i32, i32
  }
  func.func @transform_3(%arg0: i32) -> (i32, i32) {
    %c0_i32 = arith.constant 0 : i32
    %c0_i32_0 = arith.constant 0 : i32
    %c0_i32_1 = arith.constant 0 : i32
    return %c0_i32, %c0_i32_0 : i32, i32
  }
  func.func @transform_4(%arg0: i32) -> (i32, i32) {
    %c0_i32 = arith.constant 0 : i32
    %c0_i32_0 = arith.constant 0 : i32
    %c0_i32_1 = arith.constant 0 : i32
    return %c0_i32, %c0_i32_0 : i32, i32
  }
  func.func @transform_5(%arg0: i32) -> (i32, i32, i32, i32) {
    %c0_i32 = arith.constant 0 : i32
    %c0_i32_0 = arith.constant 0 : i32
    %c0_i32_1 = arith.constant 0 : i32
    %c0_i32_2 = arith.constant 0 : i32
    return %arg0, %c0_i32, %c0_i32_0, %c0_i32_1 : i32, i32, i32, i32
  }
}

module attributes {stable_mosaic.version = 11 : i64} {
  func.func @kernel(%arg0: i32, %arg1: memref<16x16xf32, #tpu.memory_space<vmem>>, %arg2: memref<1x8x16x128xf32, #tpu.memory_space<vmem>>, %arg3: memref<1x16x32xf32, #tpu.memory_space<vmem>>, %arg4: memref<1x16x32xf32, #tpu.memory_space<vmem>>, %arg5: memref<32x128xf32, #tpu.memory_space<vmem>>, %arg6: memref<128x128xf32, #tpu.memory_space<vmem>>, %arg7: memref<2x128xf32, #tpu.memory_space<vmem>>, %arg8: memref<2x128xf32, #tpu.memory_space<vmem>>, %arg9: memref<1x8x16x32xf32, #tpu.memory_space<vmem>>, %arg10: memref<16x32xf32, #tpu.memory_space<vmem>>, %arg11: memref<16x32xf32, #tpu.memory_space<vmem>>) attributes {dimension_semantics = [#tpu.dimension_semantics<parallel>], iteration_bounds = array<i64: 2>, scalar_prefetch = 0 : i64, scratch_operands = 2 : i64, tpu.core_type = #tpu.core_type<tc>, window_params = [{pipeline_mode = #tpu.pipeline_mode<synchronous>, transform_indices = @transform_0, window_bounds = array<i64: 16, 16>}, {transform_indices = @transform_1, window_bounds = array<i64: 1, 8, 16, 128>}, {transform_indices = @transform_2, window_bounds = array<i64: 1, 16, 32>}, {transform_indices = @transform_3, window_bounds = array<i64: 1, 16, 32>}, {pipeline_mode = #tpu.pipeline_mode<synchronous>, transform_indices = @transform_4, window_bounds = array<i64: 32, 128>}, {pipeline_mode = #tpu.pipeline_mode<synchronous>, transform_indices = @transform_5, window_bounds = array<i64: 128, 128>}, {pipeline_mode = #tpu.pipeline_mode<synchronous>, transform_indices = @transform_6, window_bounds = array<i64: 2, 128>}, {pipeline_mode = #tpu.pipeline_mode<synchronous>, transform_indices = @transform_7, window_bounds = array<i64: 2, 128>}, {transform_indices = @transform_8, window_bounds = array<i64: 1, 8, 16, 32>}]} {
    %c0 = arith.constant 0 : index
    %c0_0 = arith.constant 0 : index
    %0 = vector.load %arg1[%c0, %c0_0] : memref<16x16xf32, #tpu.memory_space<vmem>>, vector<16x16xf32>
    %c0_1 = arith.constant 0 : index
    %c0_2 = arith.constant 0 : index
    %1 = vector.load %arg5[%c0_1, %c0_2] : memref<32x128xf32, #tpu.memory_space<vmem>>, vector<32x128xf32>
    %c0_3 = arith.constant 0 : index
    %c0_4 = arith.constant 0 : index
    %2 = vector.load %arg6[%c0_3, %c0_4] : memref<128x128xf32, #tpu.memory_space<vmem>>, vector<128x128xf32>
    %c0_5 = arith.constant 0 : index
    %c0_6 = arith.constant 0 : index
    %3 = vector.load %arg7[%c0_5, %c0_6] : memref<2x128xf32, #tpu.memory_space<vmem>>, vector<1x128xf32>
    %c1 = arith.constant 1 : index
    %c0_7 = arith.constant 0 : index
    %4 = vector.load %arg7[%c1, %c0_7] : memref<2x128xf32, #tpu.memory_space<vmem>>, vector<1x128xf32>
    %c0_8 = arith.constant 0 : index
    %c0_9 = arith.constant 0 : index
    %5 = vector.load %arg8[%c0_8, %c0_9] : memref<2x128xf32, #tpu.memory_space<vmem>>, vector<1x128xf32>
    %c1_10 = arith.constant 1 : index
    %c0_11 = arith.constant 0 : index
    %6 = vector.load %arg8[%c1_10, %c0_11] : memref<2x128xf32, #tpu.memory_space<vmem>>, vector<1x64xf32>
    %c1_12 = arith.constant 1 : index
    %c64 = arith.constant 64 : index
    %7 = vector.load %arg8[%c1_12, %c64] : memref<2x128xf32, #tpu.memory_space<vmem>>, vector<1x32xf32>
    %c0_13 = arith.constant 0 : index
    %c0_14 = arith.constant 0 : index
    %c0_15 = arith.constant 0 : index
    %8 = vector.load %arg3[%c0_13, %c0_14, %c0_15] : memref<1x16x32xf32, #tpu.memory_space<vmem>>, vector<1x16x32xf32>
    %9 = vector.shape_cast %8 : vector<1x16x32xf32> to vector<16x32xf32>
    %c0_16 = arith.constant 0 : index
    %c0_17 = arith.constant 0 : index
    %10 = vector.load %arg10[%c0_16, %c0_17] : memref<16x32xf32, #tpu.memory_space<vmem>>, vector<16x32xf32>
    tpu.vector_store %arg10[%c0_16, %c0_17], %9 {strides = array<i32>} : memref<16x32xf32, #tpu.memory_space<vmem>>, vector<16x32xf32>,
    %c0_18 = arith.constant 0 : index
    %c0_19 = arith.constant 0 : index
    %c0_20 = arith.constant 0 : index
    %11 = vector.load %arg4[%c0_18, %c0_19, %c0_20] : memref<1x16x32xf32, #tpu.memory_space<vmem>>, vector<1x16x32xf32>
    %12 = vector.shape_cast %11 : vector<1x16x32xf32> to vector<16x32xf32>
    %c0_21 = arith.constant 0 : index
    %c0_22 = arith.constant 0 : index
    %13 = vector.load %arg11[%c0_21, %c0_22] : memref<16x32xf32, #tpu.memory_space<vmem>>, vector<16x32xf32>
    tpu.vector_store %arg11[%c0_21, %c0_22], %12 {strides = array<i32>} : memref<16x32xf32, #tpu.memory_space<vmem>>, vector<16x32xf32>,
    %c0_i32 = arith.constant 0 : i32
    %c8_i32 = arith.constant 8 : i32
    %14 = arith.addi %c0_i32, %c8_i32 : i32
    %c1_i32 = arith.constant 1 : i32
    scf.for %arg12 = %c0_i32 to %14 step %c1_i32  : i32 {
      %c1_i32_24 = arith.constant 1 : i32
      %15 = arith.muli %arg12, %c1_i32_24 : i32
      %c0_i32_25 = arith.constant 0 : i32
      %16 = arith.addi %c0_i32_25, %15 : i32
      %c0_26 = arith.constant 0 : index
      %c0_27 = arith.constant 0 : index
      %17 = vector.load %arg10[%c0_26, %c0_27] : memref<16x32xf32, #tpu.memory_space<vmem>>, vector<16x32xf32>
      %c0_28 = arith.constant 0 : index
      %c0_29 = arith.constant 0 : index
      %18 = vector.load %arg11[%c0_28, %c0_29] : memref<16x32xf32, #tpu.memory_space<vmem>>, vector<16x32xf32>
      %cst = arith.constant dense<0.000000e+00> : vector<16x32xf32>
      %19 = tpu.matmul %0, %17, %cst {dimension_numbers = #tpu.dot_dimension_numbers<[1], [0], [0], [1], [0, 0, 1, 1], [], []>, precision = #tpu.contract_precision<fp32>} : vector<16x16xf32>, vector<16x32xf32>, vector<16x32xf32> -> vector<16x32xf32>
      %cst_30 = arith.constant dense<0.000000e+00> : vector<16x128xf32>
      %20 = tpu.matmul %19, %1, %cst_30 {dimension_numbers = #tpu.dot_dimension_numbers<[1], [0], [0], [1], [0, 0, 1, 1], [], []>, precision = #tpu.contract_precision<fp32>} : vector<16x32xf32>, vector<32x128xf32>, vector<16x128xf32> -> vector<16x128xf32>
      %21 = vector.broadcast %3 : vector<1x128xf32> to vector<16x128xf32>
      %22 = arith.addf %20, %21 : vector<16x128xf32>
      %cst_31 = arith.constant 0.000000e+00 : f32
      %23 = vector.broadcast %cst_31 : f32 to vector<16x128xf32>
      %24 = arith.maximumf %22, %23 : vector<16x128xf32>
      %cst_32 = arith.constant dense<0.000000e+00> : vector<16x128xf32>
      %25 = tpu.matmul %0, %24, %cst_32 {dimension_numbers = #tpu.dot_dimension_numbers<[1], [0], [0], [1], [0, 0, 1, 1], [], []>, precision = #tpu.contract_precision<fp32>} : vector<16x16xf32>, vector<16x128xf32>, vector<16x128xf32> -> vector<16x128xf32>
      %cst_33 = arith.constant dense<0.000000e+00> : vector<16x128xf32>
      %26 = tpu.matmul %25, %2, %cst_33 {dimension_numbers = #tpu.dot_dimension_numbers<[1], [0], [0], [1], [0, 0, 1, 1], [], []>, precision = #tpu.contract_precision<fp32>} : vector<16x128xf32>, vector<128x128xf32>, vector<16x128xf32> -> vector<16x128xf32>
      %27 = vector.broadcast %4 : vector<1x128xf32> to vector<16x128xf32>
      %28 = arith.addf %26, %27 : vector<16x128xf32>
      %c0_34 = arith.constant 0 : index
      %29 = arith.index_cast %16 : i32 to index
      %c0_35 = arith.constant 0 : index
      %c0_36 = arith.constant 0 : index
      %30 = vector.load %arg2[%c0_34, %29, %c0_35, %c0_36] : memref<1x8x16x128xf32, #tpu.memory_space<vmem>>, vector<1x1x16x128xf32>
      %31 = vector.shape_cast %30 : vector<1x1x16x128xf32> to vector<16x128xf32>
      %32 = arith.addf %31, %28 : vector<16x128xf32>
      %33 = vector.broadcast %5 : vector<1x128xf32> to vector<16x128xf32>
      %34 = arith.addf %32, %33 : vector<16x128xf32>
      %35 = tpu.concatenate %18, %18 in 1 : vector<16x32xf32>, vector<16x32xf32> -> vector<16x64xf32>
      %36 = vector.extract_strided_slice %34 {offsets = [0, 0], sizes = [16, 64], strides = [1, 1]} : vector<16x128xf32> to vector<16x64xf32>
      %37 = vector.broadcast %6 : vector<1x64xf32> to vector<16x64xf32>
      %38 = arith.mulf %37, %35 : vector<16x64xf32>
      %39 = arith.addf %36, %38 : vector<16x64xf32>
      %40 = arith.negf %39 : vector<16x64xf32>
      %41 = math.exp %40 : vector<16x64xf32>
      %cst_37 = arith.constant 1.000000e+00 : f32
      %42 = vector.broadcast %cst_37 : f32 to vector<16x64xf32>
      %43 = arith.addf %42, %41 : vector<16x64xf32>
      %44 = arith.divf %42, %43 : vector<16x64xf32>
      %45 = vector.extract_strided_slice %44 {offsets = [0, 0], sizes = [16, 32], strides = [1, 1]} : vector<16x64xf32> to vector<16x32xf32>
      %46 = vector.extract_strided_slice %44 {offsets = [0, 32], sizes = [16, 32], strides = [1, 1]} : vector<16x64xf32> to vector<16x32xf32>
      %47 = vector.extract_strided_slice %34 {offsets = [0, 64], sizes = [16, 32], strides = [1, 1]} : vector<16x128xf32> to vector<16x32xf32>
      %48 = math.tanh %47 : vector<16x32xf32>
      %49 = arith.mulf %46, %18 : vector<16x32xf32>
      %50 = arith.mulf %45, %48 : vector<16x32xf32>
      %51 = arith.addf %49, %50 : vector<16x32xf32>
      %52 = vector.extract_strided_slice %34 {offsets = [0, 96], sizes = [16, 32], strides = [1, 1]} : vector<16x128xf32> to vector<16x32xf32>
      %53 = vector.broadcast %7 : vector<1x32xf32> to vector<16x32xf32>
      %54 = arith.mulf %53, %51 : vector<16x32xf32>
      %55 = arith.addf %52, %54 : vector<16x32xf32>
      %56 = arith.negf %55 : vector<16x32xf32>
      %57 = math.exp %56 : vector<16x32xf32>
      %cst_38 = arith.constant 1.000000e+00 : f32
      %58 = vector.broadcast %cst_38 : f32 to vector<16x32xf32>
      %59 = arith.addf %58, %57 : vector<16x32xf32>
      %60 = arith.divf %58, %59 : vector<16x32xf32>
      %61 = math.tanh %51 : vector<16x32xf32>
      %62 = arith.mulf %60, %61 : vector<16x32xf32>
      %c0_39 = arith.constant 0 : index
      %c0_40 = arith.constant 0 : index
      %63 = vector.load %arg10[%c0_39, %c0_40] : memref<16x32xf32, #tpu.memory_space<vmem>>, vector<16x32xf32>
      tpu.vector_store %arg10[%c0_39, %c0_40], %62 {strides = array<i32>} : memref<16x32xf32, #tpu.memory_space<vmem>>, vector<16x32xf32>,
      %c0_41 = arith.constant 0 : index
      %c0_42 = arith.constant 0 : index
      %64 = vector.load %arg11[%c0_41, %c0_42] : memref<16x32xf32, #tpu.memory_space<vmem>>, vector<16x32xf32>
      tpu.vector_store %arg11[%c0_41, %c0_42], %51 {strides = array<i32>} : memref<16x32xf32, #tpu.memory_space<vmem>>, vector<16x32xf32>,
      %c0_43 = arith.constant 0 : index
      %65 = arith.index_cast %16 : i32 to index
      %c0_44 = arith.constant 0 : index
      %c0_45 = arith.constant 0 : index
      %66 = vector.load %arg9[%c0_43, %65, %c0_44, %c0_45] : memref<1x8x16x32xf32, #tpu.memory_space<vmem>>, vector<1x1x16x32xf32>
      %67 = vector.shape_cast %66 : vector<1x1x16x32xf32> to vector<16x32xf32>
      %68 = vector.shape_cast %62 : vector<16x32xf32> to vector<1x1x16x32xf32>
      tpu.vector_store %arg9[%c0_43, %65, %c0_44, %c0_45], %68 {strides = array<i32>} : memref<1x8x16x32xf32, #tpu.memory_space<vmem>>, vector<1x1x16x32xf32>,
    }
    %c8_i32_23 = arith.constant 8 : i32
    return
  }
  func.func @transform_0(%arg0: i32) -> (i32, i32) {
    %c0_i32 = arith.constant 0 : i32
    %c0_i32_0 = arith.constant 0 : i32
    %c0_i32_1 = arith.constant 0 : i32
    return %c0_i32, %c0_i32_0 : i32, i32
  }
  func.func @transform_1(%arg0: i32) -> (i32, i32, i32, i32) {
    %c0_i32 = arith.constant 0 : i32
    %c0_i32_0 = arith.constant 0 : i32
    %c0_i32_1 = arith.constant 0 : i32
    %c0_i32_2 = arith.constant 0 : i32
    return %arg0, %c0_i32, %c0_i32_0, %c0_i32_1 : i32, i32, i32, i32
  }
  func.func @transform_2(%arg0: i32) -> (i32, i32, i32) {
    %c0_i32 = arith.constant 0 : i32
    %c0_i32_0 = arith.constant 0 : i32
    %c0_i32_1 = arith.constant 0 : i32
    return %arg0, %c0_i32, %c0_i32_0 : i32, i32, i32
  }
  func.func @transform_3(%arg0: i32) -> (i32, i32, i32) {
    %c0_i32 = arith.constant 0 : i32
    %c0_i32_0 = arith.constant 0 : i32
    %c0_i32_1 = arith.constant 0 : i32
    return %arg0, %c0_i32, %c0_i32_0 : i32, i32, i32
  }
  func.func @transform_4(%arg0: i32) -> (i32, i32) {
    %c0_i32 = arith.constant 0 : i32
    %c0_i32_0 = arith.constant 0 : i32
    %c0_i32_1 = arith.constant 0 : i32
    return %c0_i32, %c0_i32_0 : i32, i32
  }
  func.func @transform_5(%arg0: i32) -> (i32, i32) {
    %c0_i32 = arith.constant 0 : i32
    %c0_i32_0 = arith.constant 0 : i32
    %c0_i32_1 = arith.constant 0 : i32
    return %c0_i32, %c0_i32_0 : i32, i32
  }
  func.func @transform_6(%arg0: i32) -> (i32, i32) {
    %c0_i32 = arith.constant 0 : i32
    %c0_i32_0 = arith.constant 0 : i32
    %c0_i32_1 = arith.constant 0 : i32
    return %c0_i32, %c0_i32_0 : i32, i32
  }
  func.func @transform_7(%arg0: i32) -> (i32, i32) {
    %c0_i32 = arith.constant 0 : i32
    %c0_i32_0 = arith.constant 0 : i32
    %c0_i32_1 = arith.constant 0 : i32
    return %c0_i32, %c0_i32_0 : i32, i32
  }
  func.func @transform_8(%arg0: i32) -> (i32, i32, i32, i32) {
    %c0_i32 = arith.constant 0 : i32
    %c0_i32_0 = arith.constant 0 : i32
    %c0_i32_1 = arith.constant 0 : i32
    %c0_i32_2 = arith.constant 0 : i32
    return %arg0, %c0_i32, %c0_i32_0, %c0_i32_1 : i32, i32, i32, i32
  }
}

module attributes {stable_mosaic.version = 11 : i64} {
  func.func @_xpath_gcn_kernel(%arg0: i32, %arg1: memref<16x16xf32, #tpu.memory_space<vmem>>, %arg2: memref<1x8x16x32xf32, #tpu.memory_space<vmem>>, %arg3: memref<32x128xf32, #tpu.memory_space<vmem>>, %arg4: memref<128x128xf32, #tpu.memory_space<vmem>>, %arg5: memref<2x128xf32, #tpu.memory_space<vmem>>, %arg6: memref<1x8x16x128xf32, #tpu.memory_space<vmem>>) attributes {dimension_semantics = [#tpu.dimension_semantics<parallel>], iteration_bounds = array<i64: 2>, scalar_prefetch = 0 : i64, scratch_operands = 0 : i64, tpu.core_type = #tpu.core_type<tc>, window_params = [{pipeline_mode = #tpu.pipeline_mode<synchronous>, transform_indices = @transform_0, window_bounds = array<i64: 16, 16>}, {transform_indices = @transform_1, window_bounds = array<i64: 1, 8, 16, 32>}, {pipeline_mode = #tpu.pipeline_mode<synchronous>, transform_indices = @transform_2, window_bounds = array<i64: 32, 128>}, {pipeline_mode = #tpu.pipeline_mode<synchronous>, transform_indices = @transform_3, window_bounds = array<i64: 128, 128>}, {pipeline_mode = #tpu.pipeline_mode<synchronous>, transform_indices = @transform_4, window_bounds = array<i64: 2, 128>}, {transform_indices = @transform_5, window_bounds = array<i64: 1, 8, 16, 128>}]} {
    %c0 = arith.constant 0 : index
    %c0_0 = arith.constant 0 : index
    %0 = vector.load %arg1[%c0, %c0_0] : memref<16x16xf32, #tpu.memory_space<vmem>>, vector<16x16xf32>
    %c0_1 = arith.constant 0 : index
    %c0_2 = arith.constant 0 : index
    %1 = vector.load %arg3[%c0_1, %c0_2] : memref<32x128xf32, #tpu.memory_space<vmem>>, vector<32x128xf32>
    %c0_3 = arith.constant 0 : index
    %c0_4 = arith.constant 0 : index
    %2 = vector.load %arg4[%c0_3, %c0_4] : memref<128x128xf32, #tpu.memory_space<vmem>>, vector<128x128xf32>
    %c0_5 = arith.constant 0 : index
    %c0_6 = arith.constant 0 : index
    %3 = vector.load %arg5[%c0_5, %c0_6] : memref<2x128xf32, #tpu.memory_space<vmem>>, vector<1x128xf32>
    %c1 = arith.constant 1 : index
    %c0_7 = arith.constant 0 : index
    %4 = vector.load %arg5[%c1, %c0_7] : memref<2x128xf32, #tpu.memory_space<vmem>>, vector<1x128xf32>
    %c0_i32 = arith.constant 0 : i32
    %c8_i32 = arith.constant 8 : i32
    %5 = arith.addi %c0_i32, %c8_i32 : i32
    %c1_i32 = arith.constant 1 : i32
    scf.for %arg7 = %c0_i32 to %5 step %c1_i32  : i32 {
      %c1_i32_9 = arith.constant 1 : i32
      %6 = arith.muli %arg7, %c1_i32_9 : i32
      %c0_i32_10 = arith.constant 0 : i32
      %7 = arith.addi %c0_i32_10, %6 : i32
      %c0_11 = arith.constant 0 : index
      %8 = arith.index_cast %7 : i32 to index
      %c0_12 = arith.constant 0 : index
      %c0_13 = arith.constant 0 : index
      %9 = vector.load %arg2[%c0_11, %8, %c0_12, %c0_13] : memref<1x8x16x32xf32, #tpu.memory_space<vmem>>, vector<1x1x16x32xf32>
      %10 = vector.shape_cast %9 : vector<1x1x16x32xf32> to vector<16x32xf32>
      %cst = arith.constant dense<0.000000e+00> : vector<16x32xf32>
      %11 = tpu.matmul %0, %10, %cst {dimension_numbers = #tpu.dot_dimension_numbers<[1], [0], [0], [1], [0, 0, 1, 1], [], []>, precision = #tpu.contract_precision<fp32>} : vector<16x16xf32>, vector<16x32xf32>, vector<16x32xf32> -> vector<16x32xf32>
      %cst_14 = arith.constant dense<0.000000e+00> : vector<16x128xf32>
      %12 = tpu.matmul %11, %1, %cst_14 {dimension_numbers = #tpu.dot_dimension_numbers<[1], [0], [0], [1], [0, 0, 1, 1], [], []>, precision = #tpu.contract_precision<fp32>} : vector<16x32xf32>, vector<32x128xf32>, vector<16x128xf32> -> vector<16x128xf32>
      %13 = vector.broadcast %3 : vector<1x128xf32> to vector<16x128xf32>
      %14 = arith.addf %12, %13 : vector<16x128xf32>
      %cst_15 = arith.constant 0.000000e+00 : f32
      %15 = vector.broadcast %cst_15 : f32 to vector<16x128xf32>
      %16 = arith.maximumf %14, %15 : vector<16x128xf32>
      %cst_16 = arith.constant dense<0.000000e+00> : vector<16x128xf32>
      %17 = tpu.matmul %0, %16, %cst_16 {dimension_numbers = #tpu.dot_dimension_numbers<[1], [0], [0], [1], [0, 0, 1, 1], [], []>, precision = #tpu.contract_precision<fp32>} : vector<16x16xf32>, vector<16x128xf32>, vector<16x128xf32> -> vector<16x128xf32>
      %cst_17 = arith.constant dense<0.000000e+00> : vector<16x128xf32>
      %18 = tpu.matmul %17, %2, %cst_17 {dimension_numbers = #tpu.dot_dimension_numbers<[1], [0], [0], [1], [0, 0, 1, 1], [], []>, precision = #tpu.contract_precision<fp32>} : vector<16x128xf32>, vector<128x128xf32>, vector<16x128xf32> -> vector<16x128xf32>
      %19 = vector.broadcast %4 : vector<1x128xf32> to vector<16x128xf32>
      %20 = arith.addf %18, %19 : vector<16x128xf32>
      %c0_18 = arith.constant 0 : index
      %21 = arith.index_cast %7 : i32 to index
      %c0_19 = arith.constant 0 : index
      %c0_20 = arith.constant 0 : index
      %22 = vector.load %arg6[%c0_18, %21, %c0_19, %c0_20] : memref<1x8x16x128xf32, #tpu.memory_space<vmem>>, vector<1x1x16x128xf32>
      %23 = vector.shape_cast %22 : vector<1x1x16x128xf32> to vector<16x128xf32>
      %24 = vector.shape_cast %20 : vector<16x128xf32> to vector<1x1x16x128xf32>
      tpu.vector_store %arg6[%c0_18, %21, %c0_19, %c0_20], %24 {strides = array<i32>} : memref<1x8x16x128xf32, #tpu.memory_space<vmem>>, vector<1x1x16x128xf32>,
    }
    %c8_i32_8 = arith.constant 8 : i32
    return
  }
  func.func @transform_0(%arg0: i32) -> (i32, i32) {
    %c0_i32 = arith.constant 0 : i32
    %c0_i32_0 = arith.constant 0 : i32
    %c0_i32_1 = arith.constant 0 : i32
    return %c0_i32, %c0_i32_0 : i32, i32
  }
  func.func @transform_1(%arg0: i32) -> (i32, i32, i32, i32) {
    %c0_i32 = arith.constant 0 : i32
    %c0_i32_0 = arith.constant 0 : i32
    %c0_i32_1 = arith.constant 0 : i32
    %c0_i32_2 = arith.constant 0 : i32
    return %arg0, %c0_i32, %c0_i32_0, %c0_i32_1 : i32, i32, i32, i32
  }
  func.func @transform_2(%arg0: i32) -> (i32, i32) {
    %c0_i32 = arith.constant 0 : i32
    %c0_i32_0 = arith.constant 0 : i32
    %c0_i32_1 = arith.constant 0 : i32
    return %c0_i32, %c0_i32_0 : i32, i32
  }
  func.func @transform_3(%arg0: i32) -> (i32, i32) {
    %c0_i32 = arith.constant 0 : i32
    %c0_i32_0 = arith.constant 0 : i32
    %c0_i32_1 = arith.constant 0 : i32
    return %c0_i32, %c0_i32_0 : i32, i32
  }
  func.func @transform_4(%arg0: i32) -> (i32, i32) {
    %c0_i32 = arith.constant 0 : i32
    %c0_i32_0 = arith.constant 0 : i32
    %c0_i32_1 = arith.constant 0 : i32
    return %c0_i32, %c0_i32_0 : i32, i32
  }
  func.func @transform_5(%arg0: i32) -> (i32, i32, i32, i32) {
    %c0_i32 = arith.constant 0 : i32
    %c0_i32_0 = arith.constant 0 : i32
    %c0_i32_1 = arith.constant 0 : i32
    %c0_i32_2 = arith.constant 0 : i32
    return %arg0, %c0_i32, %c0_i32_0, %c0_i32_1 : i32, i32, i32, i32
  }
}

module attributes {stable_mosaic.version = 11 : i64} {
  func.func @kernel(%arg0: i32, %arg1: memref<16x16xf32, #tpu.memory_space<vmem>>, %arg2: memref<1x8x16x128xf32, #tpu.memory_space<vmem>>, %arg3: memref<1x16x32xf32, #tpu.memory_space<vmem>>, %arg4: memref<1x16x32xf32, #tpu.memory_space<vmem>>, %arg5: memref<32x128xf32, #tpu.memory_space<vmem>>, %arg6: memref<128x128xf32, #tpu.memory_space<vmem>>, %arg7: memref<2x128xf32, #tpu.memory_space<vmem>>, %arg8: memref<2x128xf32, #tpu.memory_space<vmem>>, %arg9: memref<1x8x16x32xf32, #tpu.memory_space<vmem>>, %arg10: memref<1x8x16x32xf32, #tpu.memory_space<vmem>>, %arg11: memref<16x32xf32, #tpu.memory_space<vmem>>, %arg12: memref<16x32xf32, #tpu.memory_space<vmem>>) attributes {dimension_semantics = [#tpu.dimension_semantics<parallel>], iteration_bounds = array<i64: 2>, scalar_prefetch = 0 : i64, scratch_operands = 2 : i64, tpu.core_type = #tpu.core_type<tc>, window_params = [{pipeline_mode = #tpu.pipeline_mode<synchronous>, transform_indices = @transform_0, window_bounds = array<i64: 16, 16>}, {transform_indices = @transform_1, window_bounds = array<i64: 1, 8, 16, 128>}, {transform_indices = @transform_2, window_bounds = array<i64: 1, 16, 32>}, {transform_indices = @transform_3, window_bounds = array<i64: 1, 16, 32>}, {pipeline_mode = #tpu.pipeline_mode<synchronous>, transform_indices = @transform_4, window_bounds = array<i64: 32, 128>}, {pipeline_mode = #tpu.pipeline_mode<synchronous>, transform_indices = @transform_5, window_bounds = array<i64: 128, 128>}, {pipeline_mode = #tpu.pipeline_mode<synchronous>, transform_indices = @transform_6, window_bounds = array<i64: 2, 128>}, {pipeline_mode = #tpu.pipeline_mode<synchronous>, transform_indices = @transform_7, window_bounds = array<i64: 2, 128>}, {transform_indices = @transform_8, window_bounds = array<i64: 1, 8, 16, 32>}, {transform_indices = @transform_9, window_bounds = array<i64: 1, 8, 16, 32>}]} {
    %c0 = arith.constant 0 : index
    %c0_0 = arith.constant 0 : index
    %0 = vector.load %arg1[%c0, %c0_0] : memref<16x16xf32, #tpu.memory_space<vmem>>, vector<16x16xf32>
    %c0_1 = arith.constant 0 : index
    %c0_2 = arith.constant 0 : index
    %1 = vector.load %arg5[%c0_1, %c0_2] : memref<32x128xf32, #tpu.memory_space<vmem>>, vector<32x128xf32>
    %c0_3 = arith.constant 0 : index
    %c0_4 = arith.constant 0 : index
    %2 = vector.load %arg6[%c0_3, %c0_4] : memref<128x128xf32, #tpu.memory_space<vmem>>, vector<128x128xf32>
    %c0_5 = arith.constant 0 : index
    %c0_6 = arith.constant 0 : index
    %3 = vector.load %arg7[%c0_5, %c0_6] : memref<2x128xf32, #tpu.memory_space<vmem>>, vector<1x128xf32>
    %c1 = arith.constant 1 : index
    %c0_7 = arith.constant 0 : index
    %4 = vector.load %arg7[%c1, %c0_7] : memref<2x128xf32, #tpu.memory_space<vmem>>, vector<1x128xf32>
    %c0_8 = arith.constant 0 : index
    %c0_9 = arith.constant 0 : index
    %5 = vector.load %arg8[%c0_8, %c0_9] : memref<2x128xf32, #tpu.memory_space<vmem>>, vector<1x128xf32>
    %c1_10 = arith.constant 1 : index
    %c0_11 = arith.constant 0 : index
    %6 = vector.load %arg8[%c1_10, %c0_11] : memref<2x128xf32, #tpu.memory_space<vmem>>, vector<1x64xf32>
    %c1_12 = arith.constant 1 : index
    %c64 = arith.constant 64 : index
    %7 = vector.load %arg8[%c1_12, %c64] : memref<2x128xf32, #tpu.memory_space<vmem>>, vector<1x32xf32>
    %c0_13 = arith.constant 0 : index
    %c0_14 = arith.constant 0 : index
    %c0_15 = arith.constant 0 : index
    %8 = vector.load %arg3[%c0_13, %c0_14, %c0_15] : memref<1x16x32xf32, #tpu.memory_space<vmem>>, vector<1x16x32xf32>
    %9 = vector.shape_cast %8 : vector<1x16x32xf32> to vector<16x32xf32>
    %c0_16 = arith.constant 0 : index
    %c0_17 = arith.constant 0 : index
    %10 = vector.load %arg11[%c0_16, %c0_17] : memref<16x32xf32, #tpu.memory_space<vmem>>, vector<16x32xf32>
    tpu.vector_store %arg11[%c0_16, %c0_17], %9 {strides = array<i32>} : memref<16x32xf32, #tpu.memory_space<vmem>>, vector<16x32xf32>,
    %c0_18 = arith.constant 0 : index
    %c0_19 = arith.constant 0 : index
    %c0_20 = arith.constant 0 : index
    %11 = vector.load %arg4[%c0_18, %c0_19, %c0_20] : memref<1x16x32xf32, #tpu.memory_space<vmem>>, vector<1x16x32xf32>
    %12 = vector.shape_cast %11 : vector<1x16x32xf32> to vector<16x32xf32>
    %c0_21 = arith.constant 0 : index
    %c0_22 = arith.constant 0 : index
    %13 = vector.load %arg12[%c0_21, %c0_22] : memref<16x32xf32, #tpu.memory_space<vmem>>, vector<16x32xf32>
    tpu.vector_store %arg12[%c0_21, %c0_22], %12 {strides = array<i32>} : memref<16x32xf32, #tpu.memory_space<vmem>>, vector<16x32xf32>,
    %c0_i32 = arith.constant 0 : i32
    %c8_i32 = arith.constant 8 : i32
    %14 = arith.addi %c0_i32, %c8_i32 : i32
    %c1_i32 = arith.constant 1 : i32
    scf.for %arg13 = %c0_i32 to %14 step %c1_i32  : i32 {
      %c1_i32_24 = arith.constant 1 : i32
      %15 = arith.muli %arg13, %c1_i32_24 : i32
      %c0_i32_25 = arith.constant 0 : i32
      %16 = arith.addi %c0_i32_25, %15 : i32
      %c0_26 = arith.constant 0 : index
      %c0_27 = arith.constant 0 : index
      %17 = vector.load %arg11[%c0_26, %c0_27] : memref<16x32xf32, #tpu.memory_space<vmem>>, vector<16x32xf32>
      %c0_28 = arith.constant 0 : index
      %c0_29 = arith.constant 0 : index
      %18 = vector.load %arg12[%c0_28, %c0_29] : memref<16x32xf32, #tpu.memory_space<vmem>>, vector<16x32xf32>
      %cst = arith.constant dense<0.000000e+00> : vector<16x32xf32>
      %19 = tpu.matmul %0, %17, %cst {dimension_numbers = #tpu.dot_dimension_numbers<[1], [0], [0], [1], [0, 0, 1, 1], [], []>, precision = #tpu.contract_precision<fp32>} : vector<16x16xf32>, vector<16x32xf32>, vector<16x32xf32> -> vector<16x32xf32>
      %cst_30 = arith.constant dense<0.000000e+00> : vector<16x128xf32>
      %20 = tpu.matmul %19, %1, %cst_30 {dimension_numbers = #tpu.dot_dimension_numbers<[1], [0], [0], [1], [0, 0, 1, 1], [], []>, precision = #tpu.contract_precision<fp32>} : vector<16x32xf32>, vector<32x128xf32>, vector<16x128xf32> -> vector<16x128xf32>
      %21 = vector.broadcast %3 : vector<1x128xf32> to vector<16x128xf32>
      %22 = arith.addf %20, %21 : vector<16x128xf32>
      %cst_31 = arith.constant 0.000000e+00 : f32
      %23 = vector.broadcast %cst_31 : f32 to vector<16x128xf32>
      %24 = arith.maximumf %22, %23 : vector<16x128xf32>
      %cst_32 = arith.constant dense<0.000000e+00> : vector<16x128xf32>
      %25 = tpu.matmul %0, %24, %cst_32 {dimension_numbers = #tpu.dot_dimension_numbers<[1], [0], [0], [1], [0, 0, 1, 1], [], []>, precision = #tpu.contract_precision<fp32>} : vector<16x16xf32>, vector<16x128xf32>, vector<16x128xf32> -> vector<16x128xf32>
      %cst_33 = arith.constant dense<0.000000e+00> : vector<16x128xf32>
      %26 = tpu.matmul %25, %2, %cst_33 {dimension_numbers = #tpu.dot_dimension_numbers<[1], [0], [0], [1], [0, 0, 1, 1], [], []>, precision = #tpu.contract_precision<fp32>} : vector<16x128xf32>, vector<128x128xf32>, vector<16x128xf32> -> vector<16x128xf32>
      %27 = vector.broadcast %4 : vector<1x128xf32> to vector<16x128xf32>
      %28 = arith.addf %26, %27 : vector<16x128xf32>
      %c0_34 = arith.constant 0 : index
      %29 = arith.index_cast %16 : i32 to index
      %c0_35 = arith.constant 0 : index
      %c0_36 = arith.constant 0 : index
      %30 = vector.load %arg2[%c0_34, %29, %c0_35, %c0_36] : memref<1x8x16x128xf32, #tpu.memory_space<vmem>>, vector<1x1x16x128xf32>
      %31 = vector.shape_cast %30 : vector<1x1x16x128xf32> to vector<16x128xf32>
      %32 = arith.addf %31, %28 : vector<16x128xf32>
      %33 = vector.broadcast %5 : vector<1x128xf32> to vector<16x128xf32>
      %34 = arith.addf %32, %33 : vector<16x128xf32>
      %35 = tpu.concatenate %18, %18 in 1 : vector<16x32xf32>, vector<16x32xf32> -> vector<16x64xf32>
      %36 = vector.extract_strided_slice %34 {offsets = [0, 0], sizes = [16, 64], strides = [1, 1]} : vector<16x128xf32> to vector<16x64xf32>
      %37 = vector.broadcast %6 : vector<1x64xf32> to vector<16x64xf32>
      %38 = arith.mulf %37, %35 : vector<16x64xf32>
      %39 = arith.addf %36, %38 : vector<16x64xf32>
      %40 = arith.negf %39 : vector<16x64xf32>
      %41 = math.exp %40 : vector<16x64xf32>
      %cst_37 = arith.constant 1.000000e+00 : f32
      %42 = vector.broadcast %cst_37 : f32 to vector<16x64xf32>
      %43 = arith.addf %42, %41 : vector<16x64xf32>
      %44 = arith.divf %42, %43 : vector<16x64xf32>
      %45 = vector.extract_strided_slice %44 {offsets = [0, 0], sizes = [16, 32], strides = [1, 1]} : vector<16x64xf32> to vector<16x32xf32>
      %46 = vector.extract_strided_slice %44 {offsets = [0, 32], sizes = [16, 32], strides = [1, 1]} : vector<16x64xf32> to vector<16x32xf32>
      %47 = vector.extract_strided_slice %34 {offsets = [0, 64], sizes = [16, 32], strides = [1, 1]} : vector<16x128xf32> to vector<16x32xf32>
      %48 = math.tanh %47 : vector<16x32xf32>
      %49 = arith.mulf %46, %18 : vector<16x32xf32>
      %50 = arith.mulf %45, %48 : vector<16x32xf32>
      %51 = arith.addf %49, %50 : vector<16x32xf32>
      %52 = vector.extract_strided_slice %34 {offsets = [0, 96], sizes = [16, 32], strides = [1, 1]} : vector<16x128xf32> to vector<16x32xf32>
      %53 = vector.broadcast %7 : vector<1x32xf32> to vector<16x32xf32>
      %54 = arith.mulf %53, %51 : vector<16x32xf32>
      %55 = arith.addf %52, %54 : vector<16x32xf32>
      %56 = arith.negf %55 : vector<16x32xf32>
      %57 = math.exp %56 : vector<16x32xf32>
      %cst_38 = arith.constant 1.000000e+00 : f32
      %58 = vector.broadcast %cst_38 : f32 to vector<16x32xf32>
      %59 = arith.addf %58, %57 : vector<16x32xf32>
      %60 = arith.divf %58, %59 : vector<16x32xf32>
      %61 = math.tanh %51 : vector<16x32xf32>
      %62 = arith.mulf %60, %61 : vector<16x32xf32>
      %c0_39 = arith.constant 0 : index
      %c0_40 = arith.constant 0 : index
      %63 = vector.load %arg11[%c0_39, %c0_40] : memref<16x32xf32, #tpu.memory_space<vmem>>, vector<16x32xf32>
      tpu.vector_store %arg11[%c0_39, %c0_40], %62 {strides = array<i32>} : memref<16x32xf32, #tpu.memory_space<vmem>>, vector<16x32xf32>,
      %c0_41 = arith.constant 0 : index
      %c0_42 = arith.constant 0 : index
      %64 = vector.load %arg12[%c0_41, %c0_42] : memref<16x32xf32, #tpu.memory_space<vmem>>, vector<16x32xf32>
      tpu.vector_store %arg12[%c0_41, %c0_42], %51 {strides = array<i32>} : memref<16x32xf32, #tpu.memory_space<vmem>>, vector<16x32xf32>,
      %c0_43 = arith.constant 0 : index
      %65 = arith.index_cast %16 : i32 to index
      %c0_44 = arith.constant 0 : index
      %c0_45 = arith.constant 0 : index
      %66 = vector.load %arg9[%c0_43, %65, %c0_44, %c0_45] : memref<1x8x16x32xf32, #tpu.memory_space<vmem>>, vector<1x1x16x32xf32>
      %67 = vector.shape_cast %66 : vector<1x1x16x32xf32> to vector<16x32xf32>
      %68 = vector.shape_cast %62 : vector<16x32xf32> to vector<1x1x16x32xf32>
      tpu.vector_store %arg9[%c0_43, %65, %c0_44, %c0_45], %68 {strides = array<i32>} : memref<1x8x16x32xf32, #tpu.memory_space<vmem>>, vector<1x1x16x32xf32>,
      %c0_46 = arith.constant 0 : index
      %69 = arith.index_cast %16 : i32 to index
      %c0_47 = arith.constant 0 : index
      %c0_48 = arith.constant 0 : index
      %70 = vector.load %arg10[%c0_46, %69, %c0_47, %c0_48] : memref<1x8x16x32xf32, #tpu.memory_space<vmem>>, vector<1x1x16x32xf32>
      %71 = vector.shape_cast %70 : vector<1x1x16x32xf32> to vector<16x32xf32>
      %72 = vector.shape_cast %51 : vector<16x32xf32> to vector<1x1x16x32xf32>
      tpu.vector_store %arg10[%c0_46, %69, %c0_47, %c0_48], %72 {strides = array<i32>} : memref<1x8x16x32xf32, #tpu.memory_space<vmem>>, vector<1x1x16x32xf32>,
    }
    %c8_i32_23 = arith.constant 8 : i32
    return
  }
  func.func @transform_0(%arg0: i32) -> (i32, i32) {
    %c0_i32 = arith.constant 0 : i32
    %c0_i32_0 = arith.constant 0 : i32
    %c0_i32_1 = arith.constant 0 : i32
    return %c0_i32, %c0_i32_0 : i32, i32
  }
  func.func @transform_1(%arg0: i32) -> (i32, i32, i32, i32) {
    %c0_i32 = arith.constant 0 : i32
    %c0_i32_0 = arith.constant 0 : i32
    %c0_i32_1 = arith.constant 0 : i32
    %c0_i32_2 = arith.constant 0 : i32
    return %arg0, %c0_i32, %c0_i32_0, %c0_i32_1 : i32, i32, i32, i32
  }
  func.func @transform_2(%arg0: i32) -> (i32, i32, i32) {
    %c0_i32 = arith.constant 0 : i32
    %c0_i32_0 = arith.constant 0 : i32
    %c0_i32_1 = arith.constant 0 : i32
    return %arg0, %c0_i32, %c0_i32_0 : i32, i32, i32
  }
  func.func @transform_3(%arg0: i32) -> (i32, i32, i32) {
    %c0_i32 = arith.constant 0 : i32
    %c0_i32_0 = arith.constant 0 : i32
    %c0_i32_1 = arith.constant 0 : i32
    return %arg0, %c0_i32, %c0_i32_0 : i32, i32, i32
  }
  func.func @transform_4(%arg0: i32) -> (i32, i32) {
    %c0_i32 = arith.constant 0 : i32
    %c0_i32_0 = arith.constant 0 : i32
    %c0_i32_1 = arith.constant 0 : i32
    return %c0_i32, %c0_i32_0 : i32, i32
  }
  func.func @transform_5(%arg0: i32) -> (i32, i32) {
    %c0_i32 = arith.constant 0 : i32
    %c0_i32_0 = arith.constant 0 : i32
    %c0_i32_1 = arith.constant 0 : i32
    return %c0_i32, %c0_i32_0 : i32, i32
  }
  func.func @transform_6(%arg0: i32) -> (i32, i32) {
    %c0_i32 = arith.constant 0 : i32
    %c0_i32_0 = arith.constant 0 : i32
    %c0_i32_1 = arith.constant 0 : i32
    return %c0_i32, %c0_i32_0 : i32, i32
  }
  func.func @transform_7(%arg0: i32) -> (i32, i32) {
    %c0_i32 = arith.constant 0 : i32
    %c0_i32_0 = arith.constant 0 : i32
    %c0_i32_1 = arith.constant 0 : i32
    return %c0_i32, %c0_i32_0 : i32, i32
  }
  func.func @transform_8(%arg0: i32) -> (i32, i32, i32, i32) {
    %c0_i32 = arith.constant 0 : i32
    %c0_i32_0 = arith.constant 0 : i32
    %c0_i32_1 = arith.constant 0 : i32
    %c0_i32_2 = arith.constant 0 : i32
    return %arg0, %c0_i32, %c0_i32_0, %c0_i32_1 : i32, i32, i32, i32
  }
  func.func @transform_9(%arg0: i32) -> (i32, i32, i32, i32) {
    %c0_i32 = arith.constant 0 : i32
    %c0_i32_0 = arith.constant 0 : i32
    %c0_i32_1 = arith.constant 0 : i32
    %c0_i32_2 = arith.constant 0 : i32
    return %arg0, %c0_i32, %c0_i32_0, %c0_i32_1 : i32, i32, i32, i32
  }
}

</mosaic_0001>

<bundles_post_ra>
// kernel: gcn_lstm_core.4
= control target key start
LH: loop header
LB: loop body
LE: loop exit
PB: predicated region body
PF: predicated region fallthrough
CT: control target
= control target key end

     0   :  { %s3104_s18 = smov 0   ;;  %s3691_s0 = inlined_call_operand.vmem [shape: f32[16,16], index: 0, kind: input, shape index: {}]   ;;  %s3692_s1 = inlined_call_operand.vmem [shape: f32[2,8,16,4], index: 1, kind: input, shape index: {}]   ;;  %s3693_s2 = inlined_call_operand.vmem [shape: f32[4,128], index: 2, kind: input, shape index: {}]   ;;  %s3694_s3 = inlined_call_operand.vmem [shape: f32[128,128], index: 3, kind: input, shape index: {}]   ;;  %s3695_s4 = inlined_call_operand.vmem [shape: f32[2,128], index: 4, kind: input, shape index: {}]   ;;  %s3696_s5 = inlined_call_operand.vmem [shape: f32[2,8,16,128], index: 5, kind: output, shape index: {}]  }
   0x1 LB: > { %s2528_s19 = sadd.s32 4294967295, %s3068_s18   ;;  %p2532_p0 = scmp.ge.s32.totalorder %s3068_s18, 1  ;;  %s3068_s18 = sphi %s3104_s18, %s15_s18  }
   0x2   : > { %p187_p1 = scmp.lt.s32.totalorder %s3068_s18, 3 }
   0x4   : > { %p188_p2 = pnand %p2532_p0, %p187_p1 }
   0x5   : > { %p215_p3 = scmp.lt.s32.totalorder (!%p188_p2), %s2528_s19, 1  ;;  %s3227_s22 = smov (!%p188_p2), 0  }
   0x6   : > { %191 = sbr.rel (%p188_p2) target bundleno = 969 (0x3c9), region = 40 }
   0xb   : > { %v3115_v0 = vld [vmem:[%s3691_s0] sm:$0xff]  ;;  %v3120_v1 = vld [vmem:[%s3691_s0 + $0x8] sm:$0xff]  ;;  %v3140_v5 = vld [vmem:[%s3694_s3 + $0x10] sm:$0xff]  ;;  %s3786_s19 = smov (!%p215_p3, %s2528_s19), 1 }
   0xc   : > { %3729 = vst [vmem:[#allocation2_spill] sm:$0xff] %v3115_v0  ;;  %3730 = vst [vmem:[#allocation3_spill] sm:$0xff] %v3120_v1  ;;  %v3125_v2 = vld [vmem:[%s3693_s2] sm:$0xf]  ;;  %v3135_v4 = vld [vmem:[%s3694_s3 + $0x8] sm:$0xff]  ;;  %s2542_s21 = sshll.u32 %s3786_s19, 7 }
   0xd   : > { %3731 = vst [vmem:[#allocation4_spill] sm:$0xff] %v3125_v2  ;;  %v3130_v3 = vld [vmem:[%s3694_s3] sm:$0xff]  ;;  %3733 = vst [vmem:[#allocation6_spill] sm:$0xff] %v3135_v4  ;;  %v3145_v6 = vld [vmem:[%s3694_s3 + $0x18] sm:$0xff]  ;;  %s3190_s30 = scalar_lea.vmem %s3692_s1, %s2542_s21  ;;  %s3195_s7 = scalar_lea.vmem %s3696_s5, %s2542_s21 }
   0xe   : > { %3732 = vst [vmem:[#allocation5_spill] sm:$0xff] %v3130_v3  ;;  %3734 = vst [vmem:[#allocation7_spill] sm:$0xff] %v3140_v5  ;;  %v3150_v7 = vld [vmem:[%s3694_s3 + $0x20] sm:$0xff]  ;;  %v3155_v8 = vld [vmem:[%s3694_s3 + $0x28] sm:$0xff] }
   0xf   : > { %3735 = vst [vmem:[#allocation8_spill] sm:$0xff] %v3145_v6  ;;  %3736 = vst [vmem:[#allocation9_spill] sm:$0xff] %v3150_v7  ;;  %v3160_v9 = vld [vmem:[%s3694_s3 + $0x30] sm:$0xff]  ;;  %v3165_v10 = vld [vmem:[%s3694_s3 + $0x38] sm:$0xff] }
  0x10   : > { %3737 = vst [vmem:[#allocation10_spill] sm:$0xff] %v3155_v8  ;;  %3738 = vst [vmem:[#allocation11_spill] sm:$0xff] %v3160_v9  ;;  %v3170_v11 = vld [vmem:[%s3694_s3 + $0x40] sm:$0xff]  ;;  %v3175_v12 = vld [vmem:[%s3694_s3 + $0x48] sm:$0xff] }
  0x11   : > { %3739 = vst [vmem:[#allocation12_spill] sm:$0xff] %v3165_v10  ;;  %3740 = vst [vmem:[#allocation13_spill] sm:$0xff] %v3170_v11  ;;  %v3180_v13 = vld [vmem:[%s3694_s3 + $0x50] sm:$0xff]  ;;  %v3185_v14 = vld [vmem:[%s3694_s3 + $0x58] sm:$0xff] }
  0x12   : > { %3741 = vst [vmem:[#allocation14_spill] sm:$0xff] %v3175_v12  ;;  %3742 = vst [vmem:[#allocation15_spill] sm:$0xff] %v3180_v13  ;;  %v3200_v15 = vld [vmem:[%s3694_s3 + $0x60] sm:$0xff]  ;;  %v3205_v16 = vld [vmem:[%s3694_s3 + $0x68] sm:$0xff] }
  0x13   : > { %3743 = vst [vmem:[#allocation16_spill] sm:$0xff] %v3185_v14  ;;  %3744 = vst [vmem:[#allocation17_spill] sm:$0xff] %v3200_v15  ;;  %v3210_v17 = vld [vmem:[%s3694_s3 + $0x70] sm:$0xff]  ;;  %v3215_v18 = vld [vmem:[%s3694_s3 + $0x78] sm:$0xff] }
  0x14   : > { %3745 = vst [vmem:[#allocation18_spill] sm:$0xff] %v3205_v16  ;;  %3746 = vst [vmem:[#allocation19_spill] sm:$0xff] %v3210_v17  ;;  %v3220_v19 = vld [vmem:[%s3695_s4] ss:$0 sm:$0xff]  ;;  %v3225_v20 = vld [vmem:[%s3695_s4 + $0x1] ss:$0 sm:$0xff] }
  0x15   : > { %3747 = vst [vmem:[#allocation20_spill] sm:$0xff] %v3215_v18  ;;  %3748 = vst [vmem:[#allocation21_spill] sm:$0xff] %v3220_v19 }
  0x16   : > { %3749 = vst [vmem:[#allocation22_spill] sm:$0xff] %v3225_v20 }
  0x17 LB: >> { %v3759_v3 = vld [vmem:[#allocation5_spill] sm:$0xff]  ;;  %v3760_v4 = vld [vmem:[#allocation6_spill] sm:$0xff]  ;;  %v3762_v9 = vld [vmem:[#allocation11_spill] sm:$0xff]  ;;  %vm256_vm0 = vcmask 130048   ;;  %s2537_s23 = sshll.u32 %s3072_s22, 4  ;;  %vm776_vm1 = vcmask 1043456   ;;  %s3072_s22 = sphi %s3227_s22, %s251_s22  }
  0x18   : >> { %v3758_v11 = vld [vmem:[#allocation13_spill] sm:$0xff]  ;;  %v3761_v10 = vld [vmem:[#allocation12_spill] sm:$0xff]  ;;  %v3763_v8 = vld [vmem:[#allocation10_spill] sm:$0xff]  ;;  %s253_s24 = scalar_lea.vmem %s3190_s30, %s2537_s23  ;;  %vm769_vm2 = vcmask 31744   ;;  %s2461_s25 = scalar_lea.vmem %s3195_s7, %s2537_s23 }
  0x19   : >> { %v3756_v13 = vld [vmem:[#allocation15_spill] sm:$0xff]  ;;  %v3757_v12 = vld [vmem:[#allocation14_spill] sm:$0xff]  ;;  %v3764_v7 = vld [vmem:[#allocation9_spill] sm:$0xff]  ;;  %s251_s22 = sadd.s32 1, %s3072_s22  }
  0x1a   : >> { %v3754_v15 = vld [vmem:[#allocation17_spill] sm:$0xff]  ;;  %v3755_v14 = vld [vmem:[#allocation16_spill] sm:$0xff]  ;;  %v3765_v5 = vld [vmem:[#allocation7_spill] sm:$0xff]  ;;  %p248_p4 = scmp.ge.s32.totalorder %s251_s22, 8  }
  0x1b   : >> { %v3752_v17 = vld [vmem:[#allocation19_spill] sm:$0xff]  ;;  %v3753_v16 = vld [vmem:[#allocation18_spill] sm:$0xff]  ;;  %v3766_v6 = vld [vmem:[#allocation8_spill] sm:$0xff] }
  0x1c   : >> { %v3750_v19 = vld [vmem:[#allocation21_spill] sm:$0xff]  ;;  %v3751_v18 = vld [vmem:[#allocation20_spill] sm:$0xff]  ;;  %v3767_v0 = vld [vmem:[#allocation2_spill] sm:$0xff] }
  0x1d   : >> { %v258_v21 = vsel %vm256_vm0, %v3767_v0, 0  ;;  %v3768_v1 = vld [vmem:[#allocation3_spill] sm:$0xff]  ;;  %v254_v26 = vld [vmem:[%s253_s24] sm:$0xff]  ;;  %v3769_v2 = vld [vmem:[#allocation4_spill] sm:$0xff] }
  0x1e   : >> { %v261_v22 = vsel %vm256_vm0, %v3768_v1, 0  ;;  %v3235_v23 = vand.u32 4294901760, %v258_v21  ;;  %v255_v25 = vld [vmem:[%s253_s24 + $0x8] sm:$0xff]  ;;  %v295_v30 = vand.u32 4294901760, %v254_v26  ;;  %v778_v45 = vsel %vm776_vm1, %v3769_v2, 0 }
  0x1f   : >> { %v3237_v24 = vand.u32 4294901760, %v261_v22  ;;  %v292_v29 = vand.u32 4294901760, %v255_v25  ;;  %v811_v46 = vand.u32 4294901760, %v778_v45  ;;  %v3492_v2 = vand.u32 4294901760, %v3760_v4 }
  0x20   : >> { %v3243_v27 = vsub.f32 %v258_v21, %v3235_v23  ;;  %2729 = vmatprep.mubr.f32.mxu1 %v3235_v23  ;;  %v387_v34 = vsub.f32 %v254_v26, %v295_v30 }
  0x21   : >> { %v3246_v28 = vsub.f32 %v261_v22, %v3237_v24  ;;  %2718 = vmatprep.subr.mxu0 %v292_v29  ;;  %v380_v33 = vsub.f32 %v255_v25, %v292_v29  ;;  %v898_v47 = vsub.f32 %v778_v45, %v811_v46 }
  0x22   : >> { %v3250_v31 = vand.u32 4294901760, %v3243_v27  ;;  %2719 = vmatpush3.msra.mxu0 %v292_v29  ;;  %v388_v38 = vand.u32 4294901760, %v387_v34 }
  0x23   : >> { %v3253_v32 = vand.u32 4294901760, %v3246_v28  ;;  %2720 = vmatprep.subr.mxu0 %v295_v30  ;;  %v381_v37 = vand.u32 4294901760, %v380_v33  ;;  %v899_v48 = vand.u32 4294901760, %v898_v47 }
  0x24   : >> { %v333_v35 = vsub.f32 %v3243_v27, %v3250_v31  ;;  %2721 = vmatpush3.msra.mxu0 %v295_v30  ;;  %v389_v42 = vsub.f32 %v387_v34, %v388_v38 }
  0x25   : >> { %v343_v36 = vsub.f32 %v3246_v28, %v3253_v32  ;;  %v382_v41 = vsub.f32 %v380_v33, %v381_v37  ;;  %2732 = vmatprep.subr.mxu0 %v380_v33  ;;  %v900_v49 = vsub.f32 %v898_v47, %v899_v48 }
  0x26   : >> { %v3259_v39 = vand.u32 4294901760, %v333_v35  ;;  %v390_v44 = vand.u32 4294901760, %v389_v42 }
  0x27   : >> { %v3261_v40 = vand.u32 4294901760, %v343_v36  ;;  %v383_v43 = vand.u32 4294901760, %v382_v41  ;;  %v901_v50 = vand.u32 4294901760, %v900_v49 }
  0x28   : >> { %2722 = vmatprep.mubr.f32.mxu0 %v3259_v39 }
  0x29   : >> { %2723 = vmatmul.mubr.f32.vlgmr.msra.gmra.mxu0 %v3261_v40  ;;  %2725 = vmatprep.subr.mxu1 %v383_v43 }
  0x2a   : >> { %2733 = vmatpush3.msra.mxu0 %v380_v33  ;;  %2736 = vmatprep.mubr.f32.mxu0 %v3243_v27 }
  0x2b   : >> { %2734 = vmatprep.subr.mxu0 %v387_v34  ;;  %2726 = vmatpush3.msra.mxu1 %v383_v43 }
  0x2c   : >> { %2735 = vmatpush3.msra.mxu0 %v387_v34  ;;  %2727 = vmatprep.subr.mxu1 %v390_v44 }
  0x2d   : >> { %2737 = vmatmul.mubr.f32.vlgmr.msra.gmra.mxu0 %v3246_v28  ;;  %2728 = vmatpush3.msra.mxu1 %v390_v44 }
  0x2e   : >> { %2746 = vmatprep.subr.mxu0 %v381_v37  ;;  %2730 = vmatmul.mubr.f32.vlgmr.msra.gmra.mxu1 %v3237_v24 }
  0x2f   : >> { %2739 = vmatprep.subr.mxu1 %v292_v29  ;;  %2747 = vmatpush3.msra.mxu0 %v381_v37 }
  0x30   : >> { %2740 = vmatpush3.msra.mxu1 %v292_v29  ;;  %2748 = vmatprep.subr.mxu0 %v388_v38 }
  0x31   : >> { %2741 = vmatprep.subr.mxu1 %v295_v30  ;;  %2743 = vmatprep.mubr.f32.mxu1 %v3250_v31 }
  0x32   : >> { %2742 = vmatpush3.msra.mxu1 %v295_v30  ;;  %2749 = vmatpush3.msra.mxu0 %v388_v38 }
  0x33   : >> { %2750 = vmatprep.mubr.f32.mxu0 %v3235_v23  ;;  %2744 = vmatmul.mubr.f32.vlgmr.msra.gmra.mxu1 %v3253_v32 }
  0x34   : >> { %2751 = vmatmul.mubr.f32.vlgmr.msra.gmra.mxu0 %v3237_v24  ;;  %2753 = vmatprep.subr.mxu1 %v292_v29 }
  0x35   : >> { %2757 = vmatprep.mubr.f32.mxu1 %v3235_v23  ;;  %2754 = vmatpush3.msra.mxu1 %v292_v29 }
  0x36   : >> { %2755 = vmatprep.subr.mxu1 %v295_v30  ;;  %2760 = vmatprep.subr.mxu0 %v811_v46 }
  0x37   : >> { %2756 = vmatpush3.msra.mxu1 %v295_v30  ;;  %2761 = vmatpush3.msra.mxu0 %v811_v46 }
  0x38   : >> { %2758 = vmatmul.mubr.f32.vlgmr.msra.gmra.mxu1 %v3237_v24  ;;  %2770 = vmatprep.subr.mxu0 %v898_v47 }
  0x39   : >> { %2765 = vmatprep.subr.mxu1 %v901_v50 }
  0x3a   : >> { %2766 = vmatpush3.msra.mxu1 %v901_v50 }
  0x3b   : >> { %2775 = vmatprep.subr.mxu1 %v811_v46 }
  0xe9   : >> { %v2724_v51 = vpop.f32.mrf.mxu0 }
  0xeb   : >> { %v336_v52 = vpop.f32.mrf.mxu0 }
  0xed   : >> { %v2738_v53 = vpop.f32.mrf.mxu0 }
  0xee   : >> { %v2731_v54 = vpop.f32.mrf.mxu1 }
  0xef   : >> { %v434_v55 = vadd.f32 %v2731_v54, %v2724_v51  ;;  %v509_v56 = vpop.f32.mrf.mxu0 }
  0xf0   : >> { %v427_v57 = vpop.f32.mrf.mxu1 }
  0xf1   : >> { %v517_v58 = vadd.f32 %v2738_v53, %v434_v55  ;;  %v428_v59 = vadd.f32 %v427_v57, %v336_v52 }
  0xf3   : >> { %v510_v60 = vadd.f32 %v509_v56, %v428_v59  ;;  %v2745_v61 = vpop.f32.mrf.mxu1 }
  0xf4   : >> { %v2752_v62 = vpop.f32.mrf.mxu0  ;;  %v600_v63 = vadd.f32 %v2745_v61, %v517_v58 }
  0xf5   : >> { %v591_v21 = vpop.f32.mrf.mxu1 }
  0xf6   : >> { %v683_v22 = vadd.f32 %v2752_v62, %v600_v63  ;;  %v592_v25 = vadd.f32 %v591_v21, %v510_v60  ;;  %v676_v26 = vpop.f32.mrf.mxu0 }
  0xf8   : >> { %v677_v29 = vadd.f32 %v676_v26, %v592_v25  ;;  %v2759_v30 = vpop.f32.mrf.mxu1 }
  0xf9   : >> { %v762_v33 = vadd.f32 %v2759_v30, %v683_v22 }
  0xfa   : >> { %v755_v34 = vpop.f32.mrf.mxu1 }
  0xfb   : >> { %v774_v35 = vsel %vm769_vm2, %v762_v33, 0  ;;  %v756_v36 = vadd.f32 %v755_v34, %v677_v29 }
  0xfc   : >> { %v856_v37 = vand.u32 4294901760, %v774_v35 }
  0xfd   : >> { %v771_v38 = vsel %vm769_vm2, %v756_v36, 0 }
  0xfe   : >> { %v857_v41 = vsub.f32 %v774_v35, %v856_v37  ;;  %v846_v42 = vand.u32 4294901760, %v771_v38 }
 0x100   : >> { %v847_v43 = vsub.f32 %v771_v38, %v846_v42  ;;  %2767 = vmatprep.mubr.f32.mxu1 %v846_v42  ;;  %v858_v44 = vand.u32 4294901760, %v857_v41 }
 0x101   : >> { %2768 = vmatmul.mubr.f32.vlgmr.msra.gmra.mxu1 %v856_v37 }
 0x102   : >> { %2776 = vmatpush3.msra.mxu1 %v811_v46  ;;  %v848_v45 = vand.u32 4294901760, %v847_v43  ;;  %v859_v49 = vsub.f32 %v857_v41, %v858_v44 }
 0x103   : >> { %2785 = vmatprep.subr.mxu1 %v811_v46 }
 0x104   : >> { %2777 = vmatprep.mubr.f32.mxu1 %v848_v45  ;;  %v849_v50 = vsub.f32 %v847_v43, %v848_v45  ;;  %v860_v52 = vand.u32 4294901760, %v859_v49  ;;  %v3293_v49 = vand.u32 4294901760, %v3752_v17 }
 0x105   : >> { %2778 = vmatmul.mubr.f32.vlgmr.msra.gmra.mxu1 %v858_v44 }
 0x106   : >> { %2787 = vmatprep.mubr.f32.mxu1 %v846_v42  ;;  %v850_v51 = vand.u32 4294901760, %v849_v50  ;;  %2786 = vmatpush3.msra.mxu1 %v811_v46 }
 0x108   : >> { %2762 = vmatprep.mubr.f32.mxu0 %v850_v51 }
 0x109   : >> { %2763 = vmatmul.mubr.f32.vlgmr.msra.gmra.mxu0 %v860_v52  ;;  %2788 = vmatmul.mubr.f32.vlgmr.msra.gmra.mxu1 %v856_v37 }
 0x10a   : >> { %2771 = vmatpush3.msra.mxu0 %v898_v47  ;;  %2772 = vmatprep.mubr.f32.mxu0 %v847_v43  ;;  %v3287_v43 = vand.u32 4294901760, %v3751_v18 }
 0x10b   : >> { %2780 = vmatprep.subr.mxu0 %v899_v48  ;;  %2801 = vmatprep.mubr.f32.mxu1 %v3235_v23 }
 0x10c   : >> { %v3299_v52 = vsub.f32 %v3751_v18, %v3287_v43 }
 0x10d   : >> { %2773 = vmatmul.mubr.f32.vlgmr.msra.gmra.mxu0 %v857_v41 }
 0x10e   : >> { %2781 = vmatpush3.msra.mxu0 %v899_v48  ;;  %2782 = vmatprep.mubr.f32.mxu0 %v846_v42 }
 0x111   : >> { %2783 = vmatmul.mubr.f32.vlgmr.msra.gmra.mxu0 %v856_v37 }
 0x112   : >> { %2794 = vmatprep.mubr.f32.mxu0 %v3259_v39 }
 0x1c1   : >> { %v2769_v53 = vpop.f32.mrf.mxu1 }
 0x1c3   : >> { %v938_v54 = vpop.f32.mrf.mxu1 }
 0x1c5   : >> { %v2779_v55 = vpop.f32.mrf.mxu1 }
 0x1c7   : >> { %v1099_v59 = vpop.f32.mrf.mxu1 }
 0x1c9   : >> { %v2764_v56 = vpop.f32.mrf.mxu0  ;;  %v2789_v22 = vpop.f32.mrf.mxu1 }
 0x1ca   : >> { %v863_v46 = vadd.f32 %v2764_v56, %v3750_v19  ;;  %v3306_v56 = vsub.f32 %v3752_v17, %v3293_v49 }
 0x1cb   : >> { %v852_v57 = vpop.f32.mrf.mxu0  ;;  %v1259_v34 = vpop.f32.mrf.mxu1 }
 0x1cc   : >> { %v853_v58 = vadd.f32 %v3750_v19, %v852_v57  ;;  %v945_v47 = vadd.f32 %v2769_v53, %v863_v46  ;;  %v3302_v53 = vand.u32 4294901760, %v3753_v16  ;;  %v3313_v46 = vand.u32 4294901760, %v3299_v52 }
 0x1cd   : >> { %v2774_v60 = vpop.f32.mrf.mxu0 }
 0x1ce   : >> { %v1026_v61 = vadd.f32 %v2774_v60, %v945_v47  ;;  %v939_v62 = vadd.f32 %v938_v54, %v853_v58  ;;  %v3317_v57 = vsub.f32 %v3753_v16, %v3302_v53  ;;  %v3320_v58 = vand.u32 4294901760, %v3755_v14 }
 0x1cf   : >> { %v1018_v63 = vpop.f32.mrf.mxu0  ;;  %v3323_v47 = vand.u32 4294901760, %v3306_v56  ;;  %v1882_v60 = vsub.f32 %v3299_v52, %v3313_v46 }
 0x1d0   : >> { %v1019_v48 = vadd.f32 %v1018_v63, %v939_v62  ;;  %v1108_v21 = vadd.f32 %v2779_v55, %v1026_v61  ;;  %v3338_v61 = vand.u32 4294901760, %v3317_v57  ;;  %v3342_v62 = vsub.f32 %v3755_v14, %v3320_v58 }
 0x1d1   : >> { %v2784_v25 = vpop.f32.mrf.mxu0  ;;  %v3345_v63 = vand.u32 4294901760, %v3757_v12 }
 0x1d2   : >> { %v1188_v39 = vadd.f32 %v2784_v25, %v1108_v21  ;;  %v1100_v26 = vadd.f32 %v1099_v59, %v1019_v48  ;;  %v3330_v59 = vand.u32 4294901760, %v3756_v13  ;;  %v1896_v25 = vsub.f32 %v3317_v57, %v3338_v61 }
 0x1d3   : >> { %v1181_v29 = vpop.f32.mrf.mxu0 }
 0x1d4   : >> { %v1266_v30 = vadd.f32 %v2789_v22, %v1188_v39  ;;  %v1182_v33 = vadd.f32 %v1181_v29, %v1100_v26  ;;  %v3358_v21 = vsub.f32 %v3756_v13, %v3330_v59  ;;  %v1883_v22 = vand.u32 4294901760, %v1882_v60 }
 0x1d5   : >> { %v3367_v39 = vand.u32 4294901760, %v3342_v62  ;;  %v3371_v26 = vsub.f32 %v3757_v12, %v3345_v63 }
 0x1d6   : >> { %v1270_v35 = vmax.f32 %v1266_v30, 0.0  ;;  %v1260_v36 = vadd.f32 %v1259_v34, %v1182_v33  ;;  %v3380_v30 = vand.u32 4294901760, %v3358_v21  ;;  %v1897_v33 = vand.u32 4294901760, %v1896_v25 }
 0x1d7   : >> { %v3388_v34 = vand.u32 4294901760, %v3371_v26 }
 0x1d8   : >> { %v3279_v37 = vand.u32 4294901760, %v1270_v35  ;;  %v1269_v38 = vmax.f32 %v1260_v36, 0.0  ;;  %v1917_v36 = vsub.f32 %v3358_v21, %v3380_v30 }
 0x1da   : >> { %v1388_v41 = vsub.f32 %v1270_v35, %v3279_v37  ;;  %v3282_v42 = vand.u32 4294901760, %v1269_v38  ;;  %2790 = vmatprep.subr.mxu0 %v3279_v37 }
 0x1db   : >> { %2791 = vmatpush3.msra.mxu0 %v3279_v37 }
 0x1dc   : >> { %v1395_v44 = vsub.f32 %v1269_v38, %v3282_v42  ;;  %2792 = vmatprep.subr.mxu0 %v3282_v42  ;;  %v1389_v45 = vand.u32 4294901760, %v1388_v41  ;;  %v1918_v38 = vand.u32 4294901760, %v1917_v36 }
 0x1dd   : >> { %2793 = vmatpush3.msra.mxu0 %v3282_v42 }
 0x1de   : >> { %2804 = vmatprep.subr.mxu0 %v1388_v41  ;;  %2795 = vmatmul.mubr.f32.vlgmr.msra.gmra.mxu0 %v3261_v40  ;;  %v1390_v50 = vsub.f32 %v1388_v41, %v1389_v45  ;;  %v1396_v51 = vand.u32 4294901760, %v1395_v44  ;;  %v3309_v40 = vand.u32 4294901760, %v3754_v15 }
 0x1df   : >> { %2805 = vmatpush3.msra.mxu0 %v1388_v41  ;;  %2808 = vmatprep.mubr.f32.mxu0 %v3243_v27 }
 0x1e0   : >> { %2806 = vmatprep.subr.mxu0 %v1395_v44  ;;  %v1391_v54 = vand.u32 4294901760, %v1390_v50  ;;  %v1397_v55 = vsub.f32 %v1395_v44, %v1396_v51 }
 0x1e1   : >> { %2807 = vmatpush3.msra.mxu0 %v1395_v44 }
 0x1e2   : >> { %2797 = vmatprep.subr.mxu1 %v1391_v54  ;;  %2818 = vmatprep.subr.mxu0 %v1389_v45  ;;  %v1398_v27 = vand.u32 4294901760, %v1397_v55 }
 0x1e3   : >> { %2798 = vmatpush3.msra.mxu1 %v1391_v54  ;;  %2809 = vmatmul.mubr.f32.vlgmr.msra.gmra.mxu0 %v3246_v28  ;;  %v3327_v28 = vsub.f32 %v3754_v15, %v3309_v40  ;;  %v3425_v54 = vand.u32 4294901760, %v3762_v9 }
 0x1e4   : >> { %2819 = vmatpush3.msra.mxu0 %v1389_v45  ;;  %2799 = vmatprep.subr.mxu1 %v1398_v27  ;;  %v3413_v45 = vand.u32 4294901760, %v3761_v10 }
 0x1e5   : >> { %2820 = vmatprep.subr.mxu0 %v1396_v51  ;;  %2800 = vmatpush3.msra.mxu1 %v1398_v27  ;;  %v3354_v48 = vand.u32 4294901760, %v3327_v28  ;;  %v3436_v60 = vsub.f32 %v3762_v9, %v3425_v54 }
 0x1e6   : >> { %2821 = vmatpush3.msra.mxu0 %v1396_v51  ;;  %2802 = vmatmul.mubr.f32.vlgmr.msra.gmra.mxu1 %v3237_v24  ;;  %v3422_v51 = vsub.f32 %v3761_v10, %v3413_v45 }
 0x1e7   : >> { %2811 = vmatprep.subr.mxu1 %v3279_v37  ;;  %2815 = vmatprep.mubr.f32.mxu1 %v3250_v31  ;;  %v1889_v31 = vsub.f32 %v3306_v56, %v3323_v47  ;;  %v1903_v29 = vsub.f32 %v3327_v28, %v3354_v48 }
 0x1e8   : >> { %2812 = vmatpush3.msra.mxu1 %v3279_v37  ;;  %2822 = vmatprep.mubr.f32.mxu0 %v3235_v23  ;;  %v3432_v27 = vand.u32 4294901760, %v3422_v51 }
 0x1e9   : >> { %2813 = vmatprep.subr.mxu1 %v3282_v42  ;;  %2823 = vmatmul.mubr.f32.vlgmr.msra.gmra.mxu0 %v3237_v24  ;;  %v1904_v35 = vand.u32 4294901760, %v1903_v29 }
 0x1ea   : >> { %2814 = vmatpush3.msra.mxu1 %v3282_v42  ;;  %2832 = vmatprep.subr.mxu0 %v3287_v43  ;;  %v1938_v25 = vsub.f32 %v3422_v51, %v3432_v27 }
 0x1eb   : >> { %2816 = vmatmul.mubr.f32.vlgmr.msra.gmra.mxu1 %v3253_v32  ;;  %2825 = vmatprep.subr.mxu1 %v3279_v37  ;;  %v1890_v32 = vand.u32 4294901760, %v1889_v31  ;;  %v3439_v31 = vand.u32 4294901760, %v3763_v8 }
 0x1ec   : >> { %2826 = vmatpush3.msra.mxu1 %v3279_v37  ;;  %2829 = vmatprep.mubr.f32.mxu1 %v3235_v23  ;;  %v1910_v23 = vsub.f32 %v3342_v62, %v3367_v39  ;;  %v1924_v37 = vsub.f32 %v3371_v26, %v3388_v34 }
 0x1ed   : >> { %2827 = vmatprep.subr.mxu1 %v3282_v42  ;;  %2833 = vmatpush3.msra.mxu0 %v3287_v43  ;;  %v3450_v29 = vsub.f32 %v3763_v8, %v3439_v31 }
 0x1ee   : >> { %2828 = vmatpush3.msra.mxu1 %v3282_v42  ;;  %2834 = vmatprep.subr.mxu0 %v3293_v49  ;;  %v1925_v41 = vand.u32 4294901760, %v1924_v37  ;;  %v3406_v42 = vand.u32 4294901760, %v3758_v11 }
 0x1ef   : >> { %2830 = vmatmul.mubr.f32.vlgmr.msra.gmra.mxu1 %v3237_v24  ;;  %2867 = vmatprep.subr.mxu1 %v1883_v22  ;;  %v1911_v24 = vand.u32 4294901760, %v1910_v23  ;;  %v1939_v23 = vand.u32 4294901760, %v1938_v25  ;;  %v3460_v36 = vand.u32 4294901760, %v3450_v29  ;;  %v3477_v25 = vand.u32 4294901760, %v3765_v5 }
 0x1f0   : >> { %2868 = vmatpush3.msra.mxu1 %v1883_v22  ;;  %2835 = vmatpush3.msra.mxu0 %v3293_v49  ;;  %v3410_v44 = vsub.f32 %v3758_v11, %v3406_v42 }
 0x1f1   : >> { %2869 = vmatprep.subr.mxu1 %v1890_v32  ;;  %2836 = vmatprep.subr.mxu0 %v3302_v53  ;;  %3771 = vst [vmem:[#allocation24_spill] sm:$0xff] %v3460_v36  ;;  %v3489_v1 = vsub.f32 %v3765_v5, %v3477_v25  ;;  %v3505_v5 = vsub.f32 %v3760_v4, %v3492_v2 }
 0x1f2   : >> { %2870 = vmatpush3.msra.mxu1 %v1890_v32  ;;  %2837 = vmatpush3.msra.mxu0 %v3302_v53  ;;  %v3418_v50 = vand.u32 4294901760, %v3410_v44  ;;  %v3446_v32 = vand.u32 4294901760, %v3436_v60 }
 0x1f3   : >> { %2871 = vmatprep.subr.mxu1 %v1897_v33  ;;  %2838 = vmatprep.subr.mxu0 %v3309_v40  ;;  %v3515_v10 = vand.u32 4294901760, %v3505_v5 }
 0x1f4   : >> { %2872 = vmatpush3.msra.mxu1 %v1897_v33  ;;  %2839 = vmatpush3.msra.mxu0 %v3309_v40  ;;  %v1931_v55 = vsub.f32 %v3410_v44, %v3418_v50  ;;  %3770 = vst [vmem:[#allocation23_spill] sm:$0xff] %v3446_v32  ;;  %v3454_v33 = vand.u32 4294901760, %v3764_v7 }
 0x1f5   : >> { %2873 = vmatprep.subr.mxu1 %v1904_v35  ;;  %2840 = vmatprep.subr.mxu0 %v3320_v58  ;;  %3775 = vst [vmem:[#allocation28_spill] sm:$0xff] %v3515_v10 }
 0x1f6   : >> { %2874 = vmatpush3.msra.mxu1 %v1904_v35  ;;  %2841 = vmatpush3.msra.mxu0 %v3320_v58  ;;  %v1932_v22 = vand.u32 4294901760, %v1931_v55  ;;  %v1945_v35 = vsub.f32 %v3436_v60, %v3446_v32  ;;  %v3467_v37 = vsub.f32 %v3764_v7, %v3454_v33  ;;  %v3508_v7 = vand.u32 4294901760, %v3759_v3 }
 0x1f7   : >> { %2875 = vmatprep.subr.mxu1 %v1911_v24  ;;  %2842 = vmatprep.subr.mxu0 %v3330_v59 }
 0x1f8   : >> { %2876 = vmatpush3.msra.mxu1 %v1911_v24  ;;  %2843 = vmatpush3.msra.mxu0 %v3330_v59  ;;  %v3463_v24 = vand.u32 4294901760, %v3766_v6  ;;  %v3519_v4 = vsub.f32 %v3759_v3, %v3508_v7 }
 0x1f9   : >> { %2877 = vmatprep.subr.mxu1 %v1918_v38  ;;  %2844 = vmatprep.subr.mxu0 %v3345_v63 }
 0x1fa   : >> { %2878 = vmatpush3.msra.mxu1 %v1918_v38  ;;  %2845 = vmatpush3.msra.mxu0 %v3345_v63  ;;  %v1946_v38 = vand.u32 4294901760, %v1945_v35  ;;  %v3474_v55 = vsub.f32 %v3766_v6, %v3463_v24  ;;  %v3501_v6 = vand.u32 4294901760, %v3489_v1 }
 0x1fb   : >> { %2879 = vmatprep.subr.mxu1 %v1925_v41  ;;  %2846 = vmatprep.subr.mxu0 %v3406_v42 }
 0x1fc   : >> { %2880 = vmatpush3.msra.mxu1 %v1925_v41  ;;  %2847 = vmatpush3.msra.mxu0 %v3406_v42  ;;  %v1952_v41 = vsub.f32 %v3450_v29, %v3460_v36  ;;  %v3485_v0 = vand.u32 4294901760, %v3474_v55  ;;  %3774 = vst [vmem:[#allocation27_spill] sm:$0xff] %v3501_v6  ;;  %v1973_v9 = vsub.f32 %v3489_v1, %v3501_v6 }
 0x1fd   : >> { %2848 = vmatprep.subr.mxu0 %v3413_v45  ;;  %2881 = vmatprep.subr.mxu1 %v1932_v22 }
 0x1fe   : >> { %2849 = vmatpush3.msra.mxu0 %v3413_v45  ;;  %2882 = vmatpush3.msra.mxu1 %v1932_v22  ;;  %v3481_v22 = vand.u32 4294901760, %v3467_v37  ;;  %v1953_v35 = vand.u32 4294901760, %v1952_v41  ;;  %3773 = vst [vmem:[#allocation26_spill] sm:$0xff] %v3485_v0  ;;  %v1966_v41 = vsub.f32 %v3474_v55, %v3485_v0 }
 0x1ff   : >> { %2850 = vmatprep.subr.mxu0 %v3425_v54  ;;  %2883 = vmatprep.subr.mxu1 %v1939_v23 }
 0x200   : >> { %2851 = vmatpush3.msra.mxu0 %v3425_v54  ;;  %2884 = vmatpush3.msra.mxu1 %v1939_v23  ;;  %3772 = vst [vmem:[#allocation25_spill] sm:$0xff] %v3481_v22  ;;  %v1959_v23 = vsub.f32 %v3467_v37, %v3481_v22  ;;  %v1967_v8 = vand.u32 4294901760, %v1966_v41  ;;  %v3526_v41 = vand.u32 4294901760, %v3519_v4 }
 0x201   : >> { %2852 = vmatprep.subr.mxu0 %v3439_v31  ;;  %2885 = vmatprep.subr.mxu1 %v1946_v38 }
 0x202   : >> { %2853 = vmatpush3.msra.mxu0 %v3439_v31  ;;  %2886 = vmatpush3.msra.mxu1 %v1946_v38  ;;  %v1960_v38 = vand.u32 4294901760, %v1959_v23  ;;  %v1980_v23 = vsub.f32 %v3505_v5, %v3515_v10  ;;  %3776 = vst [vmem:[#allocation29_spill] sm:$0xff] %v3526_v41  ;;  %v1987_v11 = vsub.f32 %v3519_v4, %v3526_v41 }
 0x203   : >> { %2854 = vmatprep.subr.mxu0 %v3454_v33  ;;  %2887 = vmatprep.subr.mxu1 %v1953_v35 }
 0x204   : >> { %2855 = vmatpush3.msra.mxu0 %v3454_v33  ;;  %2888 = vmatpush3.msra.mxu1 %v1953_v35  ;;  %v1974_v35 = vand.u32 4294901760, %v1973_v9  ;;  %v1981_v3 = vand.u32 4294901760, %v1980_v23 }
 0x205   : >> { %2856 = vmatprep.subr.mxu0 %v3463_v24  ;;  %2889 = vmatprep.subr.mxu1 %v1960_v38 }
 0x206   : >> { %2857 = vmatpush3.msra.mxu0 %v3463_v24  ;;  %2890 = vmatpush3.msra.mxu1 %v1960_v38  ;;  %v1988_v38 = vand.u32 4294901760, %v1987_v11 }
 0x207   : >> { %2858 = vmatprep.subr.mxu0 %v3477_v25  ;;  %2891 = vmatprep.subr.mxu1 %v1967_v8 }
 0x208   : >> { %2859 = vmatpush3.msra.mxu0 %v3477_v25  ;;  %2892 = vmatpush3.msra.mxu1 %v1967_v8 }
 0x209   : >> { %2860 = vmatprep.subr.mxu0 %v3492_v2  ;;  %2893 = vmatprep.subr.mxu1 %v1974_v35 }
 0x20a   : >> { %2861 = vmatpush3.msra.mxu0 %v3492_v2  ;;  %2894 = vmatpush3.msra.mxu1 %v1974_v35 }
 0x20b   : >> { %2862 = vmatprep.subr.mxu0 %v3508_v7  ;;  %2895 = vmatprep.subr.mxu1 %v1981_v3 }
 0x20c   : >> { %2863 = vmatpush3.msra.mxu0 %v3508_v7  ;;  %2896 = vmatpush3.msra.mxu1 %v1981_v3 }
 0x20d   : >> { %2902 = vmatprep.subr.mxu0 %v3299_v52  ;;  %2897 = vmatprep.subr.mxu1 %v1988_v38 }
 0x20e   : >> { %2898 = vmatpush3.msra.mxu1 %v1988_v38 }
 0x20f   : >> { %2937 = vmatprep.subr.mxu1 %v3287_v43 }
 0x29e   : >> { %v2796_v9 = vpop.f32.mrf.mxu0 }
 0x2a0   : >> { %v1344_v12 = vpop.f32.mrf.mxu0 }
 0x2a3   : >> { %v2810_v13 = vpop.f32.mrf.mxu0 }
 0x2a5   : >> { %v1517_v16 = vpop.f32.mrf.mxu0 }
 0x2a6   : >> { %v2803_v14 = vpop.f32.mrf.mxu1 }
 0x2a7   : >> { %v1442_v15 = vadd.f32 %v2803_v14, %v2796_v9 }
 0x2a8   : >> { %v1435_v8 = vpop.f32.mrf.mxu1 }
 0x2a9   : >> { %v1525_v23 = vadd.f32 %v2810_v13, %v1442_v15  ;;  %v1436_v17 = vadd.f32 %v1435_v8, %v1344_v12  ;;  %v2824_v20 = vpop.f32.mrf.mxu0 }
 0x2ab   : >> { %v1518_v18 = vadd.f32 %v1517_v16, %v1436_v17  ;;  %v2817_v19 = vpop.f32.mrf.mxu1  ;;  %v1684_v10 = vpop.f32.mrf.mxu0 }
 0x2ac   : >> { %v1608_v35 = vadd.f32 %v2817_v19, %v1525_v23  ;;  %v3781_v19 = vld [vmem:[#allocation27_spill] sm:$0xff] }
 0x2ad   : >> { %v1599_v11 = vpop.f32.mrf.mxu1 }
 0x2ae   : >> { %v1691_v41 = vadd.f32 %v2824_v20, %v1608_v35  ;;  %v1600_v3 = vadd.f32 %v1599_v11, %v1518_v18  ;;  %v3780_v18 = vld [vmem:[#allocation26_spill] sm:$0xff]  ;;  %v3782_v20 = vld [vmem:[#allocation28_spill] sm:$0xff] }
 0x2af   : >> { %v2831_v38 = vpop.f32.mrf.mxu1 }
 0x2b0   : >> { %v1685_v6 = vadd.f32 %v1684_v10, %v1600_v3  ;;  %v1770_v0 = vadd.f32 %v2831_v38, %v1691_v41 }
 0x2b1   : >> { %v1763_v22 = vpop.f32.mrf.mxu1 }
 0x2b2   : >> { %v3533_v36 = vand.u32 4294901760, %v1770_v0  ;;  %v1764_v32 = vadd.f32 %v1763_v22, %v1685_v6 }
 0x2b4   : >> { %v3536_v14 = vsub.f32 %v1770_v0, %v3533_v36  ;;  %v3538_v13 = vand.u32 4294901760, %v1764_v32 }
 0x2b6   : >> { %v1870_v12 = vand.u32 4294901760, %v3536_v14  ;;  %v1859_v15 = vsub.f32 %v1764_v32, %v3538_v13  ;;  %2899 = vmatprep.mubr.f32.mxu1 %v3538_v13 }
 0x2b7   : >> { %2900 = vmatmul.mubr.f32.vlgmr.msra.gmra.mxu1 %v3533_v36 }
 0x2b8   : >> { %2938 = vmatpush3.msra.mxu1 %v3287_v43  ;;  %v1860_v10 = vand.u32 4294901760, %v1859_v15  ;;  %v1871_v6 = vsub.f32 %v3536_v14, %v1870_v12 }
 0x2b9   : >> { %2939 = vmatprep.subr.mxu1 %v3293_v49 }
 0x2ba   : >> { %2940 = vmatpush3.msra.mxu1 %v3293_v49  ;;  %2969 = vmatprep.mubr.f32.mxu1 %v1860_v10  ;;  %v1861_v0 = vsub.f32 %v1859_v15, %v1860_v10  ;;  %v1872_v17 = vand.u32 4294901760, %v1871_v6 }
 0x2bb   : >> { %2941 = vmatprep.subr.mxu1 %v3302_v53 }
 0x2bc   : >> { %2942 = vmatpush3.msra.mxu1 %v3302_v53  ;;  %v1862_v16 = vand.u32 4294901760, %v1861_v0 }
 0x2bd   : >> { %2943 = vmatprep.subr.mxu1 %v3309_v40 }
 0x2be   : >> { %2944 = vmatpush3.msra.mxu1 %v3309_v40  ;;  %2864 = vmatprep.mubr.f32.mxu0 %v1862_v16 }
 0x2bf   : >> { %2945 = vmatprep.subr.mxu1 %v3320_v58  ;;  %2865 = vmatmul.mubr.f32.vlgmr.msra.gmra.mxu0 %v1872_v17 }
 0x2c0   : >> { %2903 = vmatpush3.msra.mxu0 %v3299_v52  ;;  %2946 = vmatpush3.msra.mxu1 %v3320_v58  ;;  %v3784_v52 = vld [vmem:[#allocation22_spill] sm:$0xff] }
 0x2c1   : >> { %2904 = vmatprep.subr.mxu0 %v3306_v56  ;;  %2934 = vmatprep.mubr.f32.mxu0 %v1859_v15 }
 0x2c2   : >> { %2947 = vmatprep.subr.mxu1 %v3330_v59  ;;  %2905 = vmatpush3.msra.mxu0 %v3306_v56 }
 0x2c3   : >> { %2948 = vmatpush3.msra.mxu1 %v3330_v59  ;;  %2906 = vmatprep.subr.mxu0 %v3317_v57 }
 0x2c4   : >> { %2949 = vmatprep.subr.mxu1 %v3345_v63  ;;  %2907 = vmatpush3.msra.mxu0 %v3317_v57 }
 0x2c5   : >> { %2950 = vmatpush3.msra.mxu1 %v3345_v63  ;;  %2908 = vmatprep.subr.mxu0 %v3327_v28 }
 0x2c6   : >> { %2951 = vmatprep.subr.mxu1 %v3406_v42  ;;  %2909 = vmatpush3.msra.mxu0 %v3327_v28 }
 0x2c7   : >> { %2952 = vmatpush3.msra.mxu1 %v3406_v42  ;;  %2910 = vmatprep.subr.mxu0 %v3342_v62 }
 0x2c8   : >> { %2953 = vmatprep.subr.mxu1 %v3413_v45  ;;  %2911 = vmatpush3.msra.mxu0 %v3342_v62 }
 0x2c9   : >> { %2954 = vmatpush3.msra.mxu1 %v3413_v45  ;;  %2912 = vmatprep.subr.mxu0 %v3358_v21 }
 0x2ca   : >> { %2955 = vmatprep.subr.mxu1 %v3425_v54  ;;  %2913 = vmatpush3.msra.mxu0 %v3358_v21 }
 0x2cb   : >> { %2956 = vmatpush3.msra.mxu1 %v3425_v54  ;;  %2914 = vmatprep.subr.mxu0 %v3371_v26 }
 0x2cc   : >> { %2957 = vmatprep.subr.mxu1 %v3439_v31  ;;  %2915 = vmatpush3.msra.mxu0 %v3371_v26 }
 0x2cd   : >> { %2958 = vmatpush3.msra.mxu1 %v3439_v31  ;;  %2916 = vmatprep.subr.mxu0 %v3410_v44 }
 0x2ce   : >> { %2959 = vmatprep.subr.mxu1 %v3454_v33  ;;  %2917 = vmatpush3.msra.mxu0 %v3410_v44 }
 0x2cf   : >> { %2960 = vmatpush3.msra.mxu1 %v3454_v33  ;;  %2918 = vmatprep.subr.mxu0 %v3422_v51 }
 0x2d0   : >> { %2961 = vmatprep.subr.mxu1 %v3463_v24  ;;  %2919 = vmatpush3.msra.mxu0 %v3422_v51 }
 0x2d1   : >> { %2962 = vmatpush3.msra.mxu1 %v3463_v24  ;;  %2920 = vmatprep.subr.mxu0 %v3436_v60 }
 0x2d2   : >> { %2963 = vmatprep.subr.mxu1 %v3477_v25  ;;  %2921 = vmatpush3.msra.mxu0 %v3436_v60 }
 0x2d3   : >> { %2964 = vmatpush3.msra.mxu1 %v3477_v25  ;;  %2922 = vmatprep.subr.mxu0 %v3450_v29 }
 0x2d4   : >> { %2965 = vmatprep.subr.mxu1 %v3492_v2  ;;  %2923 = vmatpush3.msra.mxu0 %v3450_v29 }
 0x2d5   : >> { %2966 = vmatpush3.msra.mxu1 %v3492_v2  ;;  %2924 = vmatprep.subr.mxu0 %v3467_v37 }
 0x2d6   : >> { %2967 = vmatprep.subr.mxu1 %v3508_v7  ;;  %2925 = vmatpush3.msra.mxu0 %v3467_v37 }
 0x2d7   : >> { %2968 = vmatpush3.msra.mxu1 %v3508_v7  ;;  %2926 = vmatprep.subr.mxu0 %v3474_v55 }
 0x2d8   : >> { %2970 = vmatmul.mubr.f32.vlgmr.msra.gmra.mxu1 %v1870_v12  ;;  %3007 = vmatprep.subr.mxu1 %v3287_v43 }
 0x2d9   : >> { %2927 = vmatpush3.msra.mxu0 %v3474_v55  ;;  %3008 = vmatpush3.msra.mxu1 %v3287_v43 }
 0x2da   : >> { %3039 = vmatprep.mubr.f32.mxu1 %v3538_v13  ;;  %2928 = vmatprep.subr.mxu0 %v3489_v1 }
 0x2db   : >> { %3009 = vmatprep.subr.mxu1 %v3293_v49  ;;  %2929 = vmatpush3.msra.mxu0 %v3489_v1  ;;  %v3777_v1 = vld [vmem:[#allocation23_spill] sm:$0xff] }
 0x2dc   : >> { %3010 = vmatpush3.msra.mxu1 %v3293_v49  ;;  %2930 = vmatprep.subr.mxu0 %v3505_v5 }
 0x2dd   : >> { %3011 = vmatprep.subr.mxu1 %v3302_v53  ;;  %2931 = vmatpush3.msra.mxu0 %v3505_v5  ;;  %v3779_v5 = vld [vmem:[#allocation25_spill] sm:$0xff] }
 0x2de   : >> { %3012 = vmatpush3.msra.mxu1 %v3302_v53  ;;  %2932 = vmatprep.subr.mxu0 %v3519_v4 }
 0x2df   : >> { %3013 = vmatprep.subr.mxu1 %v3309_v40  ;;  %2933 = vmatpush3.msra.mxu0 %v3519_v4  ;;  %v3778_v4 = vld [vmem:[#allocation24_spill] sm:$0xff] }
 0x2e0   : >> { %3014 = vmatpush3.msra.mxu1 %v3309_v40  ;;  %2935 = vmatmul.mubr.f32.vlgmr.msra.gmra.mxu0 %v3536_v14 }
 0x2e1   : >> { %2972 = vmatprep.subr.mxu0 %v3313_v46  ;;  %3015 = vmatprep.subr.mxu1 %v3320_v58 }
 0x2e2   : >> { %2973 = vmatpush3.msra.mxu0 %v3313_v46  ;;  %3004 = vmatprep.mubr.f32.mxu0 %v3538_v13 }
 0x2e3   : >> { %3016 = vmatpush3.msra.mxu1 %v3320_v58  ;;  %2974 = vmatprep.subr.mxu0 %v3323_v47 }
 0x2e4   : >> { %3017 = vmatprep.subr.mxu1 %v3330_v59  ;;  %2975 = vmatpush3.msra.mxu0 %v3323_v47 }
 0x2e5   : >> { %3018 = vmatpush3.msra.mxu1 %v3330_v59  ;;  %2976 = vmatprep.subr.mxu0 %v3338_v61 }
 0x2e6   : >> { %3019 = vmatprep.subr.mxu1 %v3345_v63  ;;  %2977 = vmatpush3.msra.mxu0 %v3338_v61 }
 0x2e7   : >> { %3020 = vmatpush3.msra.mxu1 %v3345_v63  ;;  %2978 = vmatprep.subr.mxu0 %v3354_v48 }
 0x2e8   : >> { %3021 = vmatprep.subr.mxu1 %v3406_v42  ;;  %2979 = vmatpush3.msra.mxu0 %v3354_v48 }
 0x2e9   : >> { %3022 = vmatpush3.msra.mxu1 %v3406_v42  ;;  %2980 = vmatprep.subr.mxu0 %v3367_v39 }
 0x2ea   : >> { %3023 = vmatprep.subr.mxu1 %v3413_v45  ;;  %2981 = vmatpush3.msra.mxu0 %v3367_v39 }
 0x2eb   : >> { %3024 = vmatpush3.msra.mxu1 %v3413_v45  ;;  %2982 = vmatprep.subr.mxu0 %v3380_v30 }
 0x2ec   : >> { %3025 = vmatprep.subr.mxu1 %v3425_v54  ;;  %2983 = vmatpush3.msra.mxu0 %v3380_v30 }
 0x2ed   : >> { %3026 = vmatpush3.msra.mxu1 %v3425_v54  ;;  %2984 = vmatprep.subr.mxu0 %v3388_v34 }
 0x2ee   : >> { %3027 = vmatprep.subr.mxu1 %v3439_v31  ;;  %2985 = vmatpush3.msra.mxu0 %v3388_v34 }
 0x2ef   : >> { %3028 = vmatpush3.msra.mxu1 %v3439_v31  ;;  %2986 = vmatprep.subr.mxu0 %v3418_v50 }
 0x2f0   : >> { %3029 = vmatprep.subr.mxu1 %v3454_v33  ;;  %2987 = vmatpush3.msra.mxu0 %v3418_v50 }
 0x2f1   : >> { %3030 = vmatpush3.msra.mxu1 %v3454_v33  ;;  %2988 = vmatprep.subr.mxu0 %v3432_v27 }
 0x2f2   : >> { %3031 = vmatprep.subr.mxu1 %v3463_v24  ;;  %2989 = vmatpush3.msra.mxu0 %v3432_v27 }
 0x2f3   : >> { %3032 = vmatpush3.msra.mxu1 %v3463_v24  ;;  %2990 = vmatprep.subr.mxu0 %v3777_v1 }
 0x2f4   : >> { %3033 = vmatprep.subr.mxu1 %v3477_v25  ;;  %2991 = vmatpush3.msra.mxu0 %v3777_v1 }
 0x2f5   : >> { %3034 = vmatpush3.msra.mxu1 %v3477_v25  ;;  %2992 = vmatprep.subr.mxu0 %v3778_v4 }
 0x2f6   : >> { %3035 = vmatprep.subr.mxu1 %v3492_v2  ;;  %2993 = vmatpush3.msra.mxu0 %v3778_v4 }
 0x2f7   : >> { %3036 = vmatpush3.msra.mxu1 %v3492_v2  ;;  %2994 = vmatprep.subr.mxu0 %v3779_v5  ;;  %v3783_v2 = vld [vmem:[#allocation29_spill] sm:$0xff] }
 0x2f8   : >> { %3037 = vmatprep.subr.mxu1 %v3508_v7  ;;  %2995 = vmatpush3.msra.mxu0 %v3779_v5 }
 0x2f9   : >> { %3038 = vmatpush3.msra.mxu1 %v3508_v7  ;;  %2996 = vmatprep.subr.mxu0 %v3780_v18 }
 0x2fa   : >> { %3040 = vmatmul.mubr.f32.vlgmr.msra.gmra.mxu1 %v3533_v36  ;;  %2997 = vmatpush3.msra.mxu0 %v3780_v18 }
 0x2fb   : >> { %2998 = vmatprep.subr.mxu0 %v3781_v19 }
 0x2fc   : >> { %2999 = vmatpush3.msra.mxu0 %v3781_v19 }
 0x2fd   : >> { %3000 = vmatprep.subr.mxu0 %v3782_v20 }
 0x2fe   : >> { %3001 = vmatpush3.msra.mxu0 %v3782_v20 }
 0x2ff   : >> { %3002 = vmatprep.subr.mxu0 %v3783_v2 }
 0x300   : >> { %3003 = vmatpush3.msra.mxu0 %v3783_v2 }
 0x301   : >> { %3005 = vmatmul.mubr.f32.vlgmr.msra.gmra.mxu0 %v3533_v36 }
 0x377   : >> { %v2901_v43 = vpop.f32.mrf.mxu1 }
 0x379   : >> { %v2025_v46 = vpop.f32.mrf.mxu1 }
 0x37f   : >> { %v2866_v7 = vpop.f32.mrf.mxu0 }
 0x380   : >> { %v1875_v53 = vadd.f32 %v2866_v7, %v3784_v52 }
 0x381   : >> { %v1864_v49 = vpop.f32.mrf.mxu0 }
 0x382   : >> { %v1865_v40 = vadd.f32 %v3784_v52, %v1864_v49  ;;  %v2032_v57 = vadd.f32 %v2901_v43, %v1875_v53 }
 0x384   : >> { %v2026_v59 = vadd.f32 %v2025_v46, %v1865_v40 }
 0x398   : >> { %v2971_v58 = vpop.f32.mrf.mxu1 }
 0x39a   : >> { %v2231_v62 = vpop.f32.mrf.mxu1 }
 0x3a0   : >> { %v2936_v56 = vpop.f32.mrf.mxu0 }
 0x3a1   : >> { %v2143_v28 = vadd.f32 %v2936_v56, %v2032_v57 }
 0x3a2   : >> { %v2135_v47 = vpop.f32.mrf.mxu0 }
 0x3a3   : >> { %v2136_v61 = vadd.f32 %v2135_v47, %v2026_v59  ;;  %v2240_v63 = vadd.f32 %v2971_v58, %v2143_v28 }
 0x3a5   : >> { %v2232_v26 = vadd.f32 %v2231_v62, %v2136_v61 }
 0x3ba   : >> { %v3041_v48 = vpop.f32.mrf.mxu1 }
 0x3bc   : >> { %v2451_v44 = vpop.f32.mrf.mxu1 }
 0x3c1   : >> { %v3006_v21 = vpop.f32.mrf.mxu0 }
 0x3c2   : >> { %v2365_v39 = vadd.f32 %v3006_v21, %v2240_v63 }
 0x3c3   : >> { %v2358_v30 = vpop.f32.mrf.mxu0 }
 0x3c4   : >> { %v2458_v34 = vadd.f32 %v3041_v48, %v2365_v39  ;;  %v2359_v42 = vadd.f32 %v2358_v30, %v2232_v26  ;;  %250 = sbr.rel (!%p248_p4) target bundleno = 23 (0x17), region = 79 }
 0x3c6   : >> { %2463 = vst [vmem:[%s2461_s25 + $0x8] sm:$0xff] %v2458_v34  ;;  %v2452_v45 = vadd.f32 %v2451_v44, %v2359_v42 }
 0x3c8   : >> { %2462 = vst [vmem:[%s2461_s25] sm:$0xff] %v2452_v45 }
 0x3c9 PF: > { %s15_s18 = sadd.s32 1, %s3068_s18  }
 0x3ca   : > { %p12_p5 = scmp.ge.s32.totalorder %s15_s18, 4  }
 0x3cc   :  { %14 = sbr.rel (!%p12_p5) target bundleno = 1 (0x1), region = 90 }

// kernel: gcn_lstm_core.5
= control target key start
LH: loop header
LB: loop body
LE: loop exit
PB: predicated region body
PF: predicated region fallthrough
CT: control target
= control target key end

     0   :  { %s3536_s27 = smov 0   ;;  %s4283_s0 = inlined_call_operand.vmem [shape: f32[16,16], index: 0, kind: input, shape index: {}]   ;;  %s4284_s1 = inlined_call_operand.vmem [shape: f32[2,8,16,128], index: 1, kind: input, shape index: {}]   ;;  %s4285_s2 = inlined_call_operand.vmem [shape: f32[2,16,32], index: 2, kind: input, shape index: {}]   ;;  %s4286_s3 = inlined_call_operand.vmem [shape: f32[2,16,32], index: 3, kind: input, shape index: {}]   ;;  %s4287_s4 = inlined_call_operand.vmem [shape: f32[32,128], index: 4, kind: input, shape index: {}]   ;;  %s4288_s5 = inlined_call_operand.vmem [shape: f32[128,128], index: 5, kind: input, shape index: {}]   ;;  %s4289_s6 = inlined_call_operand.vmem [shape: f32[2,128], index: 6, kind: input, shape index: {}]   ;;  %s4290_s7 = inlined_call_operand.vmem [shape: f32[2,128], index: 7, kind: input, shape index: {}]   ;;  %s4291_s8 = inlined_call_operand.vmem [shape: f32[2,8,16,32], index: 8, kind: output, shape index: {}]  }
   0x1 LB: > { %s2849_s28 = sadd.s32 4294967295, %s3482_s27   ;;  %p2853_p0 = scmp.ge.s32.totalorder %s3482_s27, 1  ;;  %s3482_s27 = sphi %s3536_s27, %s18_s27  }
   0x2   : > { %p282_p1 = scmp.lt.s32.totalorder %s3482_s27, 3 }
   0x4   : > { %p283_p2 = pnand %p2853_p0, %p282_p1 }
   0x5   : > { %p326_p3 = scmp.lt.s32.totalorder (!%p283_p2), %s2849_s28, 1  ;;  %s3694_s16 = smov (!%p283_p2), 0  }
   0x6   : > { %286 = sbr.rel (%p283_p2) target bundleno = 1627 (0x65b), region = 52 }
   0xb   : > { %v3547_v0 = vld [vmem:[%s4283_s0] sm:$0xff]  ;;  %v3552_v1 = vld [vmem:[%s4283_s0 + $0x8] sm:$0xff]  ;;  %v3567_v4 = vld [vmem:[%s4287_s4 + $0x10] sm:$0xff]  ;;  %s4403_s28 = smov (!%p326_p3, %s2849_s28), 1  ;;  %vm374_vm0 = vcmask 261120  }
   0xc   : > { %4332 = vst [vmem:[#allocation4_spill] sm:$0xff] %v3547_v0  ;;  %4333 = vst [vmem:[#allocation5_spill] sm:$0xff] %v3552_v1  ;;  %v3557_v2 = vld [vmem:[%s4287_s4] sm:$0xff]  ;;  %v3562_v3 = vld [vmem:[%s4287_s4 + $0x8] sm:$0xff]  ;;  %s2873_s11 = sshll.u32 %s4403_s28, 7  ;;  %s2874_s12 = sshll.u32 %s4403_s28, 4 }
   0xd   : > { %4334 = vst [vmem:[#allocation6_spill] sm:$0xff] %v3557_v2  ;;  %4335 = vst [vmem:[#allocation7_spill] sm:$0xff] %v3562_v3  ;;  %v3572_v5 = vld [vmem:[%s4287_s4 + $0x18] sm:$0xff]  ;;  %v3577_v6 = vld [vmem:[%s4288_s5] sm:$0xff]  ;;  %s3622_s21 = scalar_lea.vmem %s4284_s1, %s2873_s11  ;;  %s335_s23 = scalar_lea.vmem %s4285_s2, %s2874_s12 }
   0xe   : > { %4336 = vst [vmem:[#allocation8_spill] sm:$0xff] %v3567_v4  ;;  %4337 = vst [vmem:[#allocation9_spill] sm:$0xff] %v3572_v5  ;;  %v3582_v7 = vld [vmem:[%s4288_s5 + $0x8] sm:$0xff]  ;;  %v3587_v8 = vld [vmem:[%s4288_s5 + $0x10] sm:$0xff]  ;;  %s3645_s14 = scalar_lea.vmem %s4291_s8, %s2873_s11  ;;  %s340_s11 = scalar_lea.vmem %s4286_s3, %s2874_s12 }
   0xf   : > { %4338 = vst [vmem:[#allocation10_spill] sm:$0xff] %v3577_v6  ;;  %4339 = vst [vmem:[#allocation11_spill] sm:$0xff] %v3582_v7  ;;  %v3592_v9 = vld [vmem:[%s4288_s5 + $0x18] sm:$0xff]  ;;  %v3597_v10 = vld [vmem:[%s4288_s5 + $0x20] sm:$0xff] }
  0x10   : > { %4340 = vst [vmem:[#allocation12_spill] sm:$0xff] %v3587_v8  ;;  %4341 = vst [vmem:[#allocation13_spill] sm:$0xff] %v3592_v9  ;;  %v3602_v11 = vld [vmem:[%s4288_s5 + $0x28] sm:$0xff]  ;;  %v3607_v12 = vld [vmem:[%s4288_s5 + $0x30] sm:$0xff] }
  0x11   : > { %4342 = vst [vmem:[#allocation14_spill] sm:$0xff] %v3597_v10  ;;  %4343 = vst [vmem:[#allocation15_spill] sm:$0xff] %v3602_v11  ;;  %v3612_v13 = vld [vmem:[%s4288_s5 + $0x38] sm:$0xff]  ;;  %v3617_v14 = vld [vmem:[%s4288_s5 + $0x40] sm:$0xff] }
  0x12   : > { %4344 = vst [vmem:[#allocation16_spill] sm:$0xff] %v3607_v12  ;;  %4345 = vst [vmem:[#allocation17_spill] sm:$0xff] %v3612_v13  ;;  %v3630_v15 = vld [vmem:[%s4288_s5 + $0x48] sm:$0xff]  ;;  %v3635_v16 = vld [vmem:[%s4288_s5 + $0x50] sm:$0xff] }
  0x13   : > { %4346 = vst [vmem:[#allocation18_spill] sm:$0xff] %v3617_v14  ;;  %4347 = vst [vmem:[#allocation19_spill] sm:$0xff] %v3630_v15  ;;  %v3640_v17 = vld [vmem:[%s4288_s5 + $0x58] sm:$0xff]  ;;  %v3650_v18 = vld [vmem:[%s4288_s5 + $0x60] sm:$0xff] }
  0x14   : > { %4348 = vst [vmem:[#allocation20_spill] sm:$0xff] %v3635_v16  ;;  %4349 = vst [vmem:[#allocation21_spill] sm:$0xff] %v3640_v17  ;;  %v3655_v19 = vld [vmem:[%s4288_s5 + $0x68] sm:$0xff]  ;;  %v3660_v20 = vld [vmem:[%s4288_s5 + $0x70] sm:$0xff] }
  0x15   : > { %4350 = vst [vmem:[#allocation22_spill] sm:$0xff] %v3650_v18  ;;  %4351 = vst [vmem:[#allocation23_spill] sm:$0xff] %v3655_v19  ;;  %v3668_v21 = vld [vmem:[%s4288_s5 + $0x78] sm:$0xff]  ;;  %v3673_v22 = vld [vmem:[%s4289_s6] ss:$0 sm:$0xff] }
  0x16   : > { %4352 = vst [vmem:[#allocation24_spill] sm:$0xff] %v3660_v20  ;;  %4353 = vst [vmem:[#allocation25_spill] sm:$0xff] %v3668_v21  ;;  %v3678_v23 = vld [vmem:[%s4289_s6 + $0x1] ss:$0 sm:$0xff]  ;;  %v3683_v24 = vld [vmem:[%s4290_s7] ss:$0 sm:$0xff] }
  0x17   : > { %4354 = vst [vmem:[#allocation26_spill] sm:$0xff] %v3673_v22  ;;  %4355 = vst [vmem:[#allocation27_spill] sm:$0xff] %v3678_v23  ;;  %v3688_v25 = vld [vmem:[%s4290_s7 + $0x1] ss:$0 sm:$0xff]  ;;  %v373_v27 = vld [vmem:[%s335_s23 + $0x8] sm:$0xff] }
  0x18   : > { %4356 = vst [vmem:[#allocation28_spill] sm:$0xff] %v3683_v24  ;;  %4357 = vst [vmem:[#allocation29_spill] sm:$0xff] %v3688_v25  ;;  %v372_v26 = vld [vmem:[%s335_s23] sm:$0xff]  ;;  %v378_v29 = vld [vmem:[%s340_s11 + $0x8] sm:$0xff] }
  0x19   : > { %375 = vst.msk [vmem:[#allocation2] sm:$0xff] %vm374_vm0, %v372_v26  ;;  %v377_v28 = vld [vmem:[%s340_s11] sm:$0xff]  ;;  %376 = vst.msk [vmem:[#allocation2 + $0x8] sm:$0xff] %vm374_vm0, %v373_v27 }
  0x1a   : > { %379 = vst.msk [vmem:[#allocation3] sm:$0xff] %vm374_vm0, %v377_v28  ;;  %380 = vst.msk [vmem:[#allocation3 + $0x8] sm:$0xff] %vm374_vm0, %v378_v29 }
  0x1b LB: >> { %v4363_v17 = vld [vmem:[#allocation21_spill] sm:$0xff]  ;;  %v4364_v16 = vld [vmem:[#allocation20_spill] sm:$0xff]  ;;  %v4365_v6 = vld [vmem:[#allocation10_spill] sm:$0xff]  ;;  %vm391_vm1 = vcmask 130048   ;;  %s3488_s23 = smov 32   ;;  %s2864_s17 = sshll.u32 %s3486_s16, 4  ;;  %s3486_s16 = sphi %s3694_s16, %s386_s16  }
  0x1c   : >> { %v4361_v19 = vld [vmem:[#allocation23_spill] sm:$0xff]  ;;  %v4362_v18 = vld [vmem:[#allocation22_spill] sm:$0xff]  ;;  %v4369_v13 = vld [vmem:[#allocation17_spill] sm:$0xff]  ;;  %s2631_s18 = scalar_lea.vmem %s3622_s21, %s2864_s17  ;;  %s3489_s19 = smov 64  }
  0x1d   : >> { %v4359_v21 = vld [vmem:[#allocation25_spill] sm:$0xff]  ;;  %v4360_v20 = vld [vmem:[#allocation24_spill] sm:$0xff]  ;;  %v4366_v7 = vld [vmem:[#allocation11_spill] sm:$0xff]  ;;  %s3490_s20 = smov 96   ;;  %s2758_s28 = scalar_lea.vmem %s3645_s14, %s2864_s17 }
  0x1e   : >> { %v4358_v22 = vld [vmem:[#allocation26_spill] sm:$0xff]  ;;  %v4367_v15 = vld [vmem:[#allocation19_spill] sm:$0xff]  ;;  %v4370_v12 = vld [vmem:[#allocation16_spill] sm:$0xff]  ;;  %s386_s16 = sadd.s32 1, %s3486_s16  }
  0x1f   : >> { %v4368_v14 = vld [vmem:[#allocation18_spill] sm:$0xff]  ;;  %v4371_v8 = vld [vmem:[#allocation12_spill] sm:$0xff]  ;;  %v4372_v11 = vld [vmem:[#allocation15_spill] sm:$0xff]  ;;  %p383_p4 = scmp.ge.s32.totalorder %s386_s16, 8  }
  0x20   : >> { %v4373_v10 = vld [vmem:[#allocation14_spill] sm:$0xff]  ;;  %v4374_v9 = vld [vmem:[#allocation13_spill] sm:$0xff]  ;;  %v4376_v4 = vld [vmem:[#allocation8_spill] sm:$0xff] }
  0x21   : >> { %v4375_v5 = vld [vmem:[#allocation9_spill] sm:$0xff]  ;;  %v4377_v3 = vld [vmem:[#allocation7_spill] sm:$0xff]  ;;  %v4378_v2 = vld [vmem:[#allocation6_spill] sm:$0xff]  ;;  %v3745_v56 = vand.u32 4294901760, %v4376_v4 }
  0x22   : >> { %v388_v30 = vld [vmem:[#allocation2 + $0x8] sm:$0xff]  ;;  %v387_v31 = vld [vmem:[#allocation2] sm:$0xff]  ;;  %v3738_v54 = vand.u32 4294901760, %v4375_v5  ;;  %v3757_v59 = vand.u32 4294901760, %v4377_v3  ;;  %v3771_v63 = vand.u32 4294901760, %v4378_v2 }
  0x23   : >> { %v427_v32 = vand.u32 4294901760, %v388_v30  ;;  %v430_v33 = vand.u32 4294901760, %v387_v31  ;;  %v4379_v0 = vld [vmem:[#allocation4_spill] sm:$0xff]  ;;  %v4380_v1 = vld [vmem:[#allocation5_spill] sm:$0xff]  ;;  %v3754_v58 = vsub.f32 %v4376_v4, %v3745_v56  ;;  %v4029_v4 = vand.u32 4294901760, %v4371_v8 }
  0x24   : >> { %v393_v34 = vsel %vm391_vm1, %v4379_v0, 0  ;;  %v396_v35 = vsel %vm391_vm1, %v4380_v1, 0  ;;  %v3742_v55 = vsub.f32 %v4375_v5, %v3738_v54  ;;  %v3768_v62 = vsub.f32 %v4377_v3, %v3757_v59 }
  0x25   : >> { %v3701_v36 = vand.u32 4294901760, %v393_v34  ;;  %v3703_v37 = vand.u32 4294901760, %v396_v35  ;;  %3069 = vmatprep.subr.mxu0 %v427_v32  ;;  %v515_v38 = vsub.f32 %v388_v30, %v427_v32  ;;  %v522_v39 = vsub.f32 %v387_v31, %v430_v33 }
  0x26   : >> { %3070 = vmatpush3.msra.mxu0 %v427_v32  ;;  %v3750_v57 = vand.u32 4294901760, %v3742_v55  ;;  %v3764_v61 = vand.u32 4294901760, %v3754_v58  ;;  %v3778_v28 = vand.u32 4294901760, %v3768_v62  ;;  %v3782_v29 = vsub.f32 %v4378_v2, %v3771_v63 }
  0x27   : >> { %v3706_v40 = vsub.f32 %v393_v34, %v3701_v36  ;;  %v3709_v41 = vsub.f32 %v396_v35, %v3703_v37  ;;  %3080 = vmatprep.mubr.f32.mxu1 %v3701_v36  ;;  %3071 = vmatprep.subr.mxu0 %v430_v33  ;;  %v516_v42 = vand.u32 4294901760, %v515_v38  ;;  %v523_v43 = vand.u32 4294901760, %v522_v39 }
  0x28   : >> { %3072 = vmatpush3.msra.mxu0 %v430_v33  ;;  %v1027_v60 = vsub.f32 %v3742_v55, %v3750_v57  ;;  %v1034_v27 = vsub.f32 %v3754_v58, %v3764_v61  ;;  %v1041_v31 = vsub.f32 %v3768_v62, %v3778_v28 }
  0x29   : >> { %v3713_v44 = vand.u32 4294901760, %v3706_v40  ;;  %v3716_v45 = vand.u32 4294901760, %v3709_v41  ;;  %v517_v46 = vsub.f32 %v515_v38, %v516_v42  ;;  %v524_v47 = vsub.f32 %v522_v39, %v523_v43  ;;  %3083 = vmatprep.subr.mxu0 %v515_v38 }
  0x2a   : >> { %v1028_v26 = vand.u32 4294901760, %v1027_v60  ;;  %v1035_v30 = vand.u32 4294901760, %v1034_v27 }
  0x2b   : >> { %v468_v48 = vsub.f32 %v3706_v40, %v3713_v44  ;;  %v478_v49 = vsub.f32 %v3709_v41, %v3716_v45  ;;  %v518_v50 = vand.u32 4294901760, %v517_v46  ;;  %v525_v51 = vand.u32 4294901760, %v524_v47 }
  0x2d   : >> { %v3722_v52 = vand.u32 4294901760, %v468_v48  ;;  %v3724_v53 = vand.u32 4294901760, %v478_v49  ;;  %3076 = vmatprep.subr.mxu1 %v518_v50 }
  0x2e   : >> { %3077 = vmatpush3.msra.mxu1 %v518_v50 }
  0x2f   : >> { %3073 = vmatprep.mubr.f32.mxu0 %v3722_v52  ;;  %3078 = vmatprep.subr.mxu1 %v525_v51 }
  0x30   : >> { %3074 = vmatmul.mubr.f32.vlgmr.msra.gmra.mxu0 %v3724_v53  ;;  %3079 = vmatpush3.msra.mxu1 %v525_v51 }
  0x31   : >> { %3084 = vmatpush3.msra.mxu0 %v515_v38  ;;  %3081 = vmatmul.mubr.f32.vlgmr.msra.gmra.mxu1 %v3703_v37 }
  0x32   : >> { %3085 = vmatprep.subr.mxu0 %v522_v39  ;;  %3090 = vmatprep.subr.mxu1 %v427_v32 }
  0x33   : >> { %3086 = vmatpush3.msra.mxu0 %v522_v39  ;;  %3087 = vmatprep.mubr.f32.mxu0 %v3706_v40 }
  0x34   : >> { %3091 = vmatpush3.msra.mxu1 %v427_v32  ;;  %3088 = vmatmul.mubr.f32.vlgmr.msra.gmra.mxu0 %v3709_v41 }
  0x35   : >> { %3092 = vmatprep.subr.mxu1 %v430_v33  ;;  %3097 = vmatprep.subr.mxu0 %v516_v42 }
  0x36   : >> { %3093 = vmatpush3.msra.mxu1 %v430_v33  ;;  %3094 = vmatprep.mubr.f32.mxu1 %v3713_v44 }
  0x37   : >> { %3098 = vmatpush3.msra.mxu0 %v516_v42  ;;  %3095 = vmatmul.mubr.f32.vlgmr.msra.gmra.mxu1 %v3716_v45 }
  0x38   : >> { %3099 = vmatprep.subr.mxu0 %v523_v43  ;;  %3104 = vmatprep.subr.mxu1 %v427_v32 }
  0x39   : >> { %3100 = vmatpush3.msra.mxu0 %v523_v43  ;;  %3101 = vmatprep.mubr.f32.mxu0 %v3701_v36 }
  0x3a   : >> { %3105 = vmatpush3.msra.mxu1 %v427_v32  ;;  %3102 = vmatmul.mubr.f32.vlgmr.msra.gmra.mxu0 %v3703_v37  ;;  %v3789_v32 = vand.u32 4294901760, %v3782_v29 }
  0x3b   : >> { %3106 = vmatprep.subr.mxu1 %v430_v33  ;;  %3108 = vmatprep.mubr.f32.mxu1 %v3701_v36 }
  0x3c   : >> { %3107 = vmatpush3.msra.mxu1 %v430_v33  ;;  %3111 = vmatprep.subr.mxu0 %v3738_v54  ;;  %v1042_v33 = vand.u32 4294901760, %v1041_v31  ;;  %v1048_v34 = vsub.f32 %v3782_v29, %v3789_v32 }
  0x3d   : >> { %3109 = vmatmul.mubr.f32.vlgmr.msra.gmra.mxu1 %v3703_v37  ;;  %3112 = vmatpush3.msra.mxu0 %v3738_v54 }
  0x3e   : >> { %3113 = vmatprep.subr.mxu0 %v3745_v56  ;;  %3122 = vmatprep.subr.mxu1 %v1028_v26  ;;  %v1049_v35 = vand.u32 4294901760, %v1048_v34 }
  0x3f   : >> { %3114 = vmatpush3.msra.mxu0 %v3745_v56  ;;  %3123 = vmatpush3.msra.mxu1 %v1028_v26 }
  0x40   : >> { %3115 = vmatprep.subr.mxu0 %v3757_v59  ;;  %3124 = vmatprep.subr.mxu1 %v1035_v30 }
  0x41   : >> { %3116 = vmatpush3.msra.mxu0 %v3757_v59  ;;  %3125 = vmatpush3.msra.mxu1 %v1035_v30 }
  0x42   : >> { %3117 = vmatprep.subr.mxu0 %v3771_v63  ;;  %3126 = vmatprep.subr.mxu1 %v1042_v33 }
  0x43   : >> { %3118 = vmatpush3.msra.mxu0 %v3771_v63  ;;  %3127 = vmatpush3.msra.mxu1 %v1042_v33 }
  0x44   : >> { %3133 = vmatprep.subr.mxu0 %v3742_v55  ;;  %3128 = vmatprep.subr.mxu1 %v1049_v35 }
  0x45   : >> { %3129 = vmatpush3.msra.mxu1 %v1049_v35 }
  0x46   : >> { %3144 = vmatprep.subr.mxu1 %v3738_v54 }
  0xf0   : >> { %v3075_v38 = vpop.f32.mrf.mxu0 }
  0xf1   : >> { %v3082_v42 = vpop.f32.mrf.mxu1 }
  0xf2   : >> { %v471_v39 = vpop.f32.mrf.mxu0  ;;  %v569_v43 = vadd.f32 %v3082_v42, %v3075_v38 }
  0xf3   : >> { %v562_v46 = vpop.f32.mrf.mxu1 }
  0xf4   : >> { %v563_v47 = vadd.f32 %v562_v46, %v471_v39  ;;  %v3089_v48 = vpop.f32.mrf.mxu0 }
  0xf5   : >> { %v652_v49 = vadd.f32 %v3089_v48, %v569_v43 }
  0xf6   : >> { %v644_v50 = vpop.f32.mrf.mxu0 }
  0xf7   : >> { %v645_v51 = vadd.f32 %v644_v50, %v563_v47  ;;  %v3096_v60 = vpop.f32.mrf.mxu1 }
  0xf8   : >> { %v735_v26 = vadd.f32 %v3096_v60, %v652_v49 }
  0xf9   : >> { %v726_v27 = vpop.f32.mrf.mxu1 }
  0xfa   : >> { %v727_v30 = vadd.f32 %v726_v27, %v645_v51  ;;  %v3103_v31 = vpop.f32.mrf.mxu0 }
  0xfb   : >> { %v818_v33 = vadd.f32 %v3103_v31, %v735_v26 }
  0xfc   : >> { %v811_v34 = vpop.f32.mrf.mxu0 }
  0xfd   : >> { %v3110_v35 = vpop.f32.mrf.mxu1  ;;  %v812_v0 = vadd.f32 %v811_v34, %v727_v30 }
  0xfe   : >> { %v897_v1 = vadd.f32 %v3110_v35, %v818_v33 }
  0xff   : >> { %v890_v2 = vpop.f32.mrf.mxu1 }
 0x100   : >> { %v908_v3 = vsel %vm374_vm0, %v897_v1, 0  ;;  %v891_v38 = vadd.f32 %v890_v2, %v812_v0 }
 0x101   : >> { %v989_v42 = vand.u32 4294901760, %v908_v3 }
 0x102   : >> { %v905_v39 = vsel %vm374_vm0, %v891_v38, 0 }
 0x103   : >> { %v990_v43 = vsub.f32 %v908_v3, %v989_v42  ;;  %v979_v46 = vand.u32 4294901760, %v905_v39 }
 0x105   : >> { %v991_v47 = vand.u32 4294901760, %v990_v43  ;;  %v980_v48 = vsub.f32 %v905_v39, %v979_v46  ;;  %3130 = vmatprep.mubr.f32.mxu1 %v979_v46 }
 0x106   : >> { %3131 = vmatmul.mubr.f32.vlgmr.msra.gmra.mxu1 %v989_v42 }
 0x107   : >> { %3145 = vmatpush3.msra.mxu1 %v3738_v54  ;;  %v981_v49 = vand.u32 4294901760, %v980_v48  ;;  %v992_v50 = vsub.f32 %v990_v43, %v991_v47 }
 0x108   : >> { %3146 = vmatprep.subr.mxu1 %v3745_v56 }
 0x109   : >> { %3147 = vmatpush3.msra.mxu1 %v3745_v56  ;;  %3152 = vmatprep.mubr.f32.mxu1 %v981_v49  ;;  %v982_v1 = vsub.f32 %v980_v48, %v981_v49  ;;  %v993_v2 = vand.u32 4294901760, %v992_v50 }
 0x10a   : >> { %3148 = vmatprep.subr.mxu1 %v3757_v59 }
 0x10b   : >> { %3149 = vmatpush3.msra.mxu1 %v3757_v59  ;;  %v983_v0 = vand.u32 4294901760, %v982_v1  ;;  %v3845_v1 = vand.u32 4294901760, %v4360_v20 }
 0x10c   : >> { %3150 = vmatprep.subr.mxu1 %v3771_v63 }
 0x10d   : >> { %3151 = vmatpush3.msra.mxu1 %v3771_v63  ;;  %3119 = vmatprep.mubr.f32.mxu0 %v983_v0 }
 0x10e   : >> { %3153 = vmatmul.mubr.f32.vlgmr.msra.gmra.mxu1 %v991_v47  ;;  %3166 = vmatprep.subr.mxu1 %v3738_v54 }
 0x10f   : >> { %3120 = vmatmul.mubr.f32.vlgmr.msra.gmra.mxu0 %v993_v2  ;;  %3167 = vmatpush3.msra.mxu1 %v3738_v54 }
 0x110   : >> { %3134 = vmatpush3.msra.mxu0 %v3742_v55  ;;  %3174 = vmatprep.mubr.f32.mxu1 %v979_v46 }
 0x111   : >> { %3135 = vmatprep.subr.mxu0 %v3754_v58  ;;  %3141 = vmatprep.mubr.f32.mxu0 %v980_v48  ;;  %v3839_v48 = vand.u32 4294901760, %v4359_v21 }
 0x112   : >> { %3168 = vmatprep.subr.mxu1 %v3745_v56  ;;  %3136 = vmatpush3.msra.mxu0 %v3754_v58 }
 0x113   : >> { %3169 = vmatpush3.msra.mxu1 %v3745_v56  ;;  %3137 = vmatprep.subr.mxu0 %v3768_v62 }
 0x114   : >> { %3170 = vmatprep.subr.mxu1 %v3757_v59  ;;  %3138 = vmatpush3.msra.mxu0 %v3768_v62 }
 0x115   : >> { %3171 = vmatpush3.msra.mxu1 %v3757_v59  ;;  %3139 = vmatprep.subr.mxu0 %v3782_v29 }
 0x116   : >> { %3172 = vmatprep.subr.mxu1 %v3771_v63  ;;  %3140 = vmatpush3.msra.mxu0 %v3782_v29 }
 0x117   : >> { %3173 = vmatpush3.msra.mxu1 %v3771_v63  ;;  %3142 = vmatmul.mubr.f32.vlgmr.msra.gmra.mxu0 %v990_v43 }
 0x118   : >> { %3155 = vmatprep.subr.mxu0 %v3750_v57  ;;  %3175 = vmatmul.mubr.f32.vlgmr.msra.gmra.mxu1 %v989_v42 }
 0x119   : >> { %3156 = vmatpush3.msra.mxu0 %v3750_v57  ;;  %3163 = vmatprep.mubr.f32.mxu0 %v979_v46 }
 0x11a   : >> { %3157 = vmatprep.subr.mxu0 %v3764_v61  ;;  %3188 = vmatprep.mubr.f32.mxu1 %v3701_v36 }
 0x11b   : >> { %3158 = vmatpush3.msra.mxu0 %v3764_v61 }
 0x11c   : >> { %3159 = vmatprep.subr.mxu0 %v3778_v28 }
 0x11d   : >> { %3160 = vmatpush3.msra.mxu0 %v3778_v28 }
 0x11e   : >> { %3161 = vmatprep.subr.mxu0 %v3789_v32 }
 0x11f   : >> { %3162 = vmatpush3.msra.mxu0 %v3789_v32 }
 0x120   : >> { %3164 = vmatmul.mubr.f32.vlgmr.msra.gmra.mxu0 %v989_v42 }
 0x121   : >> { %3181 = vmatprep.mubr.f32.mxu0 %v3722_v52 }
 0x1c6   : >> { %v3132_v54 = vpop.f32.mrf.mxu1 }
 0x1c8   : >> { %v1086_v59 = vpop.f32.mrf.mxu1 }
 0x1ce   : >> { %v3154_v62 = vpop.f32.mrf.mxu1 }
 0x1cf   : >> { %v3121_v3 = vpop.f32.mrf.mxu0 }
 0x1d0   : >> { %v996_v56 = vadd.f32 %v3121_v3, %v4358_v22  ;;  %v1256_v60 = vpop.f32.mrf.mxu1  ;;  %v3851_v3 = vsub.f32 %v4359_v21, %v3839_v48 }
 0x1d1   : >> { %v985_v55 = vpop.f32.mrf.mxu0 }
 0x1d2   : >> { %v986_v57 = vadd.f32 %v4358_v22, %v985_v55  ;;  %v1093_v61 = vadd.f32 %v3132_v54, %v996_v56  ;;  %v3854_v54 = vand.u32 4294901760, %v4361_v19 }
 0x1d4   : >> { %v1087_v29 = vadd.f32 %v1086_v59, %v986_v57  ;;  %v3858_v57 = vsub.f32 %v4360_v20, %v3845_v1  ;;  %v3869_v59 = vsub.f32 %v4361_v19, %v3854_v54 }
 0x1d7   : >> { %v3143_v58 = vpop.f32.mrf.mxu0 }
 0x1d8   : >> { %v1180_v28 = vadd.f32 %v3143_v58, %v1093_v61  ;;  %v3176_v26 = vpop.f32.mrf.mxu1  ;;  %v3865_v58 = vand.u32 4294901760, %v3851_v3  ;;  %v3872_v61 = vand.u32 4294901760, %v4363_v17 }
 0x1d9   : >> { %v1172_v63 = vpop.f32.mrf.mxu0 }
 0x1da   : >> { %v1173_v51 = vadd.f32 %v1172_v63, %v1087_v29  ;;  %v1265_v32 = vadd.f32 %v3154_v62, %v1180_v28  ;;  %v1428_v35 = vpop.f32.mrf.mxu1  ;;  %v3875_v62 = vand.u32 4294901760, %v3858_v57  ;;  %v3882_v63 = vand.u32 4294901760, %v4364_v16 }
 0x1db   : >> { %v2051_v28 = vsub.f32 %v3851_v3, %v3865_v58  ;;  %v3890_v29 = vand.u32 4294901760, %v3869_v59 }
 0x1dc   : >> { %v1257_v30 = vadd.f32 %v1256_v60, %v1173_v51  ;;  %v3894_v51 = vsub.f32 %v4363_v17, %v3872_v61  ;;  %v3897_v60 = vand.u32 4294901760, %v4367_v15 }
 0x1e0   : >> { %v3165_v27 = vpop.f32.mrf.mxu0 }
 0x1e1   : >> { %v1354_v52 = vadd.f32 %v3165_v27, %v1265_v32  ;;  %v2052_v27 = vand.u32 4294901760, %v2051_v28 }
 0x1e2   : >> { %v1347_v31 = vpop.f32.mrf.mxu0 }
 0x1e3   : >> { %v1435_v33 = vadd.f32 %v3176_v26, %v1354_v52  ;;  %v1348_v34 = vadd.f32 %v1347_v31, %v1257_v30  ;;  %v3910_v26 = vsub.f32 %v4364_v16, %v3882_v63  ;;  %v2065_v52 = vsub.f32 %v3869_v59, %v3890_v29 }
 0x1e4   : >> { %v3919_v30 = vand.u32 4294901760, %v3894_v51  ;;  %v3923_v31 = vsub.f32 %v4367_v15, %v3897_v60 }
 0x1e5   : >> { %v1439_v38 = vmax.f32 %v1435_v33, 0.0  ;;  %v1429_v42 = vadd.f32 %v1428_v35, %v1348_v34  ;;  %v3932_v34 = vand.u32 4294901760, %v3910_v26  ;;  %v2066_v35 = vand.u32 4294901760, %v2065_v52 }
 0x1e7   : >> { %v3831_v39 = vand.u32 4294901760, %v1439_v38  ;;  %v1438_v43 = vmax.f32 %v1429_v42, 0.0 }
 0x1e9   : >> { %v1557_v46 = vsub.f32 %v1439_v38, %v3831_v39  ;;  %v3834_v47 = vand.u32 4294901760, %v1438_v43  ;;  %3177 = vmatprep.subr.mxu0 %v3831_v39  ;;  %v3940_v38 = vand.u32 4294901760, %v3923_v31 }
 0x1ea   : >> { %3178 = vmatpush3.msra.mxu0 %v3831_v39 }
 0x1eb   : >> { %v1564_v49 = vsub.f32 %v1438_v43, %v3834_v47  ;;  %3179 = vmatprep.subr.mxu0 %v3834_v47  ;;  %v1558_v50 = vand.u32 4294901760, %v1557_v46  ;;  %v2093_v43 = vsub.f32 %v3923_v31, %v3940_v38 }
 0x1ec   : >> { %3180 = vmatpush3.msra.mxu0 %v3834_v47 }
 0x1ed   : >> { %3191 = vmatprep.subr.mxu0 %v1557_v46  ;;  %3182 = vmatmul.mubr.f32.vlgmr.msra.gmra.mxu0 %v3724_v53  ;;  %v1559_v0 = vsub.f32 %v1557_v46, %v1558_v50  ;;  %v1565_v2 = vand.u32 4294901760, %v1564_v49  ;;  %v3861_v53 = vand.u32 4294901760, %v4362_v18 }
 0x1ee   : >> { %3192 = vmatpush3.msra.mxu0 %v1557_v46  ;;  %3195 = vmatprep.mubr.f32.mxu0 %v3706_v40 }
 0x1ef   : >> { %3193 = vmatprep.subr.mxu0 %v1564_v49  ;;  %v1560_v55 = vand.u32 4294901760, %v1559_v0  ;;  %v1566_v56 = vsub.f32 %v1564_v49, %v1565_v2  ;;  %v3965_v0 = vand.u32 4294901760, %v4369_v13 }
 0x1f0   : >> { %3194 = vmatpush3.msra.mxu0 %v1564_v49  ;;  %v3958_v49 = vand.u32 4294901760, %v4368_v14 }
 0x1f1   : >> { %3184 = vmatprep.subr.mxu1 %v1560_v55  ;;  %3205 = vmatprep.subr.mxu0 %v1558_v50  ;;  %v1567_v40 = vand.u32 4294901760, %v1566_v56  ;;  %v3977_v56 = vand.u32 4294901760, %v4370_v12 }
 0x1f2   : >> { %3185 = vmatpush3.msra.mxu1 %v1560_v55  ;;  %3196 = vmatmul.mubr.f32.vlgmr.msra.gmra.mxu0 %v3709_v41  ;;  %v3879_v41 = vsub.f32 %v4362_v18, %v3861_v53  ;;  %v3974_v55 = vsub.f32 %v4369_v13, %v3965_v0 }
 0x1f3   : >> { %3206 = vmatpush3.msra.mxu0 %v1558_v50  ;;  %3186 = vmatprep.subr.mxu1 %v1567_v40  ;;  %v3962_v50 = vsub.f32 %v4368_v14, %v3958_v49 }
 0x1f4   : >> { %3207 = vmatprep.subr.mxu0 %v1565_v2  ;;  %3187 = vmatpush3.msra.mxu1 %v1567_v40  ;;  %v3906_v32 = vand.u32 4294901760, %v3879_v41  ;;  %v3984_v28 = vand.u32 4294901760, %v3974_v55 }
 0x1f5   : >> { %3208 = vmatpush3.msra.mxu0 %v1565_v2  ;;  %3189 = vmatmul.mubr.f32.vlgmr.msra.gmra.mxu1 %v3703_v37  ;;  %v3970_v2 = vand.u32 4294901760, %v3962_v50 }
 0x1f6   : >> { %3198 = vmatprep.subr.mxu1 %v3831_v39  ;;  %3202 = vmatprep.mubr.f32.mxu1 %v3713_v44  ;;  %v2058_v44 = vsub.f32 %v3858_v57, %v3875_v62  ;;  %v2072_v33 = vsub.f32 %v3879_v41, %v3906_v32 }
 0x1f7   : >> { %3199 = vmatpush3.msra.mxu1 %v3831_v39  ;;  %3209 = vmatprep.mubr.f32.mxu0 %v3701_v36  ;;  %v2100_v40 = vsub.f32 %v3962_v50, %v3970_v2 }
 0x1f8   : >> { %3200 = vmatprep.subr.mxu1 %v3834_v47  ;;  %3210 = vmatmul.mubr.f32.vlgmr.msra.gmra.mxu0 %v3703_v37  ;;  %v2073_v42 = vand.u32 4294901760, %v2072_v33 }
 0x1f9   : >> { %3201 = vmatpush3.msra.mxu1 %v3834_v47  ;;  %3219 = vmatprep.subr.mxu0 %v3839_v48  ;;  %v2101_v52 = vand.u32 4294901760, %v2100_v40 }
 0x1fa   : >> { %3203 = vmatmul.mubr.f32.vlgmr.msra.gmra.mxu1 %v3716_v45  ;;  %3212 = vmatprep.subr.mxu1 %v3831_v39  ;;  %v2059_v45 = vand.u32 4294901760, %v2058_v44  ;;  %v3988_v44 = vsub.f32 %v4370_v12, %v3977_v56  ;;  %v4060_v12 = vand.u32 4294901760, %v4365_v6 }
 0x1fb   : >> { %3213 = vmatpush3.msra.mxu1 %v3831_v39  ;;  %3216 = vmatprep.mubr.f32.mxu1 %v3701_v36  ;;  %v2079_v36 = vsub.f32 %v3894_v51, %v3919_v30  ;;  %v2086_v39 = vsub.f32 %v3910_v26, %v3932_v34 }
 0x1fc   : >> { %3214 = vmatprep.subr.mxu1 %v3834_v47  ;;  %3220 = vmatpush3.msra.mxu0 %v3839_v48  ;;  %v3998_v33 = vand.u32 4294901760, %v3988_v44 }
 0x1fd   : >> { %3215 = vmatpush3.msra.mxu1 %v3834_v47  ;;  %3221 = vmatprep.subr.mxu0 %v3845_v1  ;;  %v2087_v46 = vand.u32 4294901760, %v2086_v39  ;;  %v2094_v47 = vand.u32 4294901760, %v2093_v43  ;;  %v4015_v43 = vand.u32 4294901760, %v4374_v9 }
 0x1fe   : >> { %3217 = vmatmul.mubr.f32.vlgmr.msra.gmra.mxu1 %v3703_v37  ;;  %3254 = vmatprep.subr.mxu1 %v2052_v27  ;;  %v2080_v37 = vand.u32 4294901760, %v2079_v36  ;;  %4381 = vst [vmem:[#allocation30_spill] sm:$0xff] %v3998_v33  ;;  %v4006_v36 = vand.u32 4294901760, %v4373_v10  ;;  %v2114_v39 = vsub.f32 %v3988_v44, %v3998_v33 }
 0x1ff   : >> { %3255 = vmatpush3.msra.mxu1 %v2052_v27  ;;  %3222 = vmatpush3.msra.mxu0 %v3845_v1  ;;  %v3991_v27 = vand.u32 4294901760, %v4372_v11 }
 0x200   : >> { %3256 = vmatprep.subr.mxu1 %v2059_v45  ;;  %3223 = vmatprep.subr.mxu0 %v3854_v54 }
 0x201   : >> { %3257 = vmatpush3.msra.mxu1 %v2059_v45  ;;  %3224 = vmatpush3.msra.mxu0 %v3854_v54  ;;  %v2107_v45 = vsub.f32 %v3974_v55, %v3984_v28 }
 0x202   : >> { %3258 = vmatprep.subr.mxu1 %v2066_v35  ;;  %3225 = vmatprep.subr.mxu0 %v3861_v53 }
 0x203   : >> { %3259 = vmatpush3.msra.mxu1 %v2066_v35  ;;  %3226 = vmatpush3.msra.mxu0 %v3861_v53  ;;  %v4002_v35 = vsub.f32 %v4372_v11, %v3991_v27 }
 0x204   : >> { %3260 = vmatprep.subr.mxu1 %v2073_v42  ;;  %3227 = vmatprep.subr.mxu0 %v3872_v61 }
 0x205   : >> { %3261 = vmatpush3.msra.mxu1 %v2073_v42  ;;  %3228 = vmatpush3.msra.mxu0 %v3872_v61  ;;  %v2108_v42 = vand.u32 4294901760, %v2107_v45  ;;  %v4026_v45 = vsub.f32 %v4374_v9, %v4015_v43  ;;  %v4041_v9 = vsub.f32 %v4371_v8, %v4029_v4 }
 0x206   : >> { %3262 = vmatprep.subr.mxu1 %v2080_v37  ;;  %3229 = vmatprep.subr.mxu0 %v3882_v63 }
 0x207   : >> { %3263 = vmatpush3.msra.mxu1 %v2080_v37  ;;  %3230 = vmatpush3.msra.mxu0 %v3882_v63  ;;  %v4012_v37 = vand.u32 4294901760, %v4002_v35  ;;  %v4037_v5 = vand.u32 4294901760, %v4026_v45  ;;  %v4053_v11 = vand.u32 4294901760, %v4041_v9 }
 0x208   : >> { %3264 = vmatprep.subr.mxu1 %v2087_v46  ;;  %3231 = vmatprep.subr.mxu0 %v3897_v60 }
 0x209   : >> { %3265 = vmatpush3.msra.mxu1 %v2087_v46  ;;  %3232 = vmatpush3.msra.mxu0 %v3897_v60  ;;  %4382 = vst [vmem:[#allocation31_spill] sm:$0xff] %v4012_v37  ;;  %v4019_v46 = vsub.f32 %v4373_v10, %v4006_v36  ;;  %v2121_v40 = vsub.f32 %v4002_v35, %v4012_v37  ;;  %4384 = vst [vmem:[#allocation33_spill] sm:$0xff] %v4037_v5  ;;  %v4044_v10 = vand.u32 4294901760, %v4366_v7 }
 0x20a   : >> { %3266 = vmatprep.subr.mxu1 %v2094_v47  ;;  %3233 = vmatprep.subr.mxu0 %v3958_v49  ;;  %4385 = vst [vmem:[#allocation34_spill] sm:$0xff] %v4053_v11  ;;  %v2142_v14 = vsub.f32 %v4041_v9, %v4053_v11 }
 0x20b   : >> { %3267 = vmatpush3.msra.mxu1 %v2094_v47  ;;  %3234 = vmatpush3.msra.mxu0 %v3958_v49  ;;  %v2115_v47 = vand.u32 4294901760, %v2114_v39  ;;  %v2122_v39 = vand.u32 4294901760, %v2121_v40  ;;  %v2135_v40 = vsub.f32 %v4026_v45, %v4037_v5  ;;  %v4057_v8 = vsub.f32 %v4366_v7, %v4044_v10 }
 0x20c   : >> { %3235 = vmatprep.subr.mxu0 %v3965_v0  ;;  %3268 = vmatprep.subr.mxu1 %v2101_v52  ;;  %v4071_v7 = vsub.f32 %v4365_v6, %v4060_v12 }
 0x20d   : >> { %3236 = vmatpush3.msra.mxu0 %v3965_v0  ;;  %3269 = vmatpush3.msra.mxu1 %v2101_v52  ;;  %v4033_v52 = vand.u32 4294901760, %v4019_v46  ;;  %v2136_v13 = vand.u32 4294901760, %v2135_v40  ;;  %v4067_v15 = vand.u32 4294901760, %v4057_v8 }
 0x20e   : >> { %3237 = vmatprep.subr.mxu0 %v3977_v56  ;;  %3270 = vmatprep.subr.mxu1 %v2108_v42  ;;  %v4078_v40 = vand.u32 4294901760, %v4071_v7 }
 0x20f   : >> { %3238 = vmatpush3.msra.mxu0 %v3977_v56  ;;  %3271 = vmatpush3.msra.mxu1 %v2108_v42  ;;  %4383 = vst [vmem:[#allocation32_spill] sm:$0xff] %v4033_v52  ;;  %v2128_v42 = vsub.f32 %v4019_v46, %v4033_v52  ;;  %4386 = vst [vmem:[#allocation35_spill] sm:$0xff] %v4067_v15 }
 0x210   : >> { %3239 = vmatprep.subr.mxu0 %v3991_v27  ;;  %3272 = vmatprep.subr.mxu1 %v2115_v47  ;;  %4387 = vst [vmem:[#allocation36_spill] sm:$0xff] %v4078_v40  ;;  %v2156_v16 = vsub.f32 %v4071_v7, %v4078_v40 }
 0x211   : >> { %3240 = vmatpush3.msra.mxu0 %v3991_v27  ;;  %3273 = vmatpush3.msra.mxu1 %v2115_v47  ;;  %v2129_v47 = vand.u32 4294901760, %v2128_v42  ;;  %v2149_v42 = vsub.f32 %v4057_v8, %v4067_v15 }
 0x212   : >> { %3241 = vmatprep.subr.mxu0 %v4006_v36  ;;  %3274 = vmatprep.subr.mxu1 %v2122_v39 }
 0x213   : >> { %3242 = vmatpush3.msra.mxu0 %v4006_v36  ;;  %3275 = vmatpush3.msra.mxu1 %v2122_v39  ;;  %v2143_v39 = vand.u32 4294901760, %v2142_v14  ;;  %v2150_v6 = vand.u32 4294901760, %v2149_v42  ;;  %v4085_v14 = vld [vmem:[#allocation3] sm:$0xff] }
 0x214   : >> { %3243 = vmatprep.subr.mxu0 %v4015_v43  ;;  %3276 = vmatprep.subr.mxu1 %v2129_v47  ;;  %4388 = vst [vmem:[#allocation37_spill] sm:$0xff] %v4085_v14 }
 0x215   : >> { %3244 = vmatpush3.msra.mxu0 %v4015_v43  ;;  %3277 = vmatpush3.msra.mxu1 %v2129_v47  ;;  %v2157_v47 = vand.u32 4294901760, %v2156_v16 }
 0x216   : >> { %3245 = vmatprep.subr.mxu0 %v4029_v4  ;;  %3278 = vmatprep.subr.mxu1 %v2136_v13 }
 0x217   : >> { %3246 = vmatpush3.msra.mxu0 %v4029_v4  ;;  %3279 = vmatpush3.msra.mxu1 %v2136_v13  ;;  %v4089_v13 = vld [vmem:[#allocation3 + $0x8] sm:$0xff] }
 0x218   : >> { %3247 = vmatprep.subr.mxu0 %v4044_v10  ;;  %3280 = vmatprep.subr.mxu1 %v2143_v39  ;;  %4389 = vst [vmem:[#allocation38_spill] sm:$0xff] %v4089_v13 }
 0x219   : >> { %3248 = vmatpush3.msra.mxu0 %v4044_v10  ;;  %3281 = vmatpush3.msra.mxu1 %v2143_v39 }
 0x21a   : >> { %3249 = vmatprep.subr.mxu0 %v4060_v12  ;;  %3282 = vmatprep.subr.mxu1 %v2150_v6 }
 0x21b   : >> { %3250 = vmatpush3.msra.mxu0 %v4060_v12  ;;  %3283 = vmatpush3.msra.mxu1 %v2150_v6 }
 0x21c   : >> { %3289 = vmatprep.subr.mxu0 %v3851_v3  ;;  %3284 = vmatprep.subr.mxu1 %v2157_v47 }
 0x21d   : >> { %3285 = vmatpush3.msra.mxu1 %v2157_v47  ;;  %2644 = vrot.lane.b32.xlu0 %v4085_v14, %s3488_s23 }
 0x21e   : >> { %3324 = vmatprep.subr.mxu1 %v3839_v48 }
 0x221   : >> { %2646 = vrot.lane.b32.xlu0 %v4089_v13, %s3488_s23 }
 0x2ad   : >> { %v3183_v42 = vpop.f32.mrf.mxu0 }
 0x2af   : >> { %v1513_v39 = vpop.f32.mrf.mxu0 }
 0x2b2   : >> { %v3197_v16 = vpop.f32.mrf.mxu0 }
 0x2b4   : >> { %v1686_v18 = vpop.f32.mrf.mxu0 }
 0x2b5   : >> { %v3190_v17 = vpop.f32.mrf.mxu1 }
 0x2b6   : >> { %v1611_v6 = vadd.f32 %v3190_v17, %v3183_v42 }
 0x2b7   : >> { %v1604_v47 = vpop.f32.mrf.mxu1 }
 0x2b8   : >> { %v1694_v19 = vadd.f32 %v3197_v16, %v1611_v6  ;;  %v1605_v20 = vadd.f32 %v1604_v47, %v1513_v39  ;;  %v3211_v25 = vpop.f32.mrf.mxu0 }
 0x2ba   : >> { %v1687_v21 = vadd.f32 %v1686_v18, %v1605_v20  ;;  %v3204_v22 = vpop.f32.mrf.mxu1  ;;  %v1853_v15 = vpop.f32.mrf.mxu0 }
 0x2bb   : >> { %v1777_v24 = vadd.f32 %v3204_v22, %v1694_v19  ;;  %v4393_v22 = vld [vmem:[#allocation33_spill] sm:$0xff] }
 0x2bc   : >> { %v1768_v23 = vpop.f32.mrf.mxu1 }
 0x2bd   : >> { %v1860_v14 = vadd.f32 %v3211_v25, %v1777_v24  ;;  %v1769_v40 = vadd.f32 %v1768_v23, %v1687_v21  ;;  %v4395_v23 = vld [vmem:[#allocation35_spill] sm:$0xff] }
 0x2be   : >> { %v3218_v11 = vpop.f32.mrf.mxu1 }
 0x2bf   : >> { %v1854_v5 = vadd.f32 %v1853_v15, %v1769_v40  ;;  %v1939_v13 = vadd.f32 %v3218_v11, %v1860_v14 }
 0x2c0   : >> { %v1932_v52 = vpop.f32.mrf.mxu1 }
 0x2c1   : >> { %v4093_v37 = vand.u32 4294901760, %v1939_v13  ;;  %v1933_v33 = vadd.f32 %v1932_v52, %v1854_v5  ;;  %v4401_v52 = vld [vmem:[#allocation38_spill] sm:$0xff] }
 0x2c3   : >> { %v4096_v17 = vsub.f32 %v1939_v13, %v4093_v37  ;;  %v4098_v42 = vand.u32 4294901760, %v1933_v33 }
 0x2c5   : >> { %v2039_v18 = vand.u32 4294901760, %v4096_v17  ;;  %v2028_v19 = vsub.f32 %v1933_v33, %v4098_v42  ;;  %3286 = vmatprep.mubr.f32.mxu1 %v4098_v42 }
 0x2c6   : >> { %3287 = vmatmul.mubr.f32.vlgmr.msra.gmra.mxu1 %v4093_v37 }
 0x2c7   : >> { %3325 = vmatpush3.msra.mxu1 %v3839_v48  ;;  %v2029_v11 = vand.u32 4294901760, %v2028_v19  ;;  %v2040_v5 = vsub.f32 %v4096_v17, %v2039_v18 }
 0x2c8   : >> { %3326 = vmatprep.subr.mxu1 %v3845_v1 }
 0x2c9   : >> { %3327 = vmatpush3.msra.mxu1 %v3845_v1  ;;  %3356 = vmatprep.mubr.f32.mxu1 %v2029_v11  ;;  %v2030_v15 = vsub.f32 %v2028_v19, %v2029_v11  ;;  %v2041_v21 = vand.u32 4294901760, %v2040_v5 }
 0x2ca   : >> { %3328 = vmatprep.subr.mxu1 %v3854_v54 }
 0x2cb   : >> { %3329 = vmatpush3.msra.mxu1 %v3854_v54  ;;  %v2031_v20 = vand.u32 4294901760, %v2030_v15 }
 0x2cc   : >> { %3330 = vmatprep.subr.mxu1 %v3861_v53 }
 0x2cd   : >> { %3331 = vmatpush3.msra.mxu1 %v3861_v53  ;;  %3251 = vmatprep.mubr.f32.mxu0 %v2031_v20 }
 0x2ce   : >> { %3332 = vmatprep.subr.mxu1 %v3872_v61  ;;  %3252 = vmatmul.mubr.f32.vlgmr.msra.gmra.mxu0 %v2041_v21 }
 0x2cf   : >> { %3290 = vmatpush3.msra.mxu0 %v3851_v3  ;;  %3333 = vmatpush3.msra.mxu1 %v3872_v61 }
 0x2d0   : >> { %3291 = vmatprep.subr.mxu0 %v3858_v57  ;;  %3321 = vmatprep.mubr.f32.mxu0 %v2028_v19 }
 0x2d1   : >> { %3334 = vmatprep.subr.mxu1 %v3882_v63  ;;  %3292 = vmatpush3.msra.mxu0 %v3858_v57 }
 0x2d2   : >> { %3335 = vmatpush3.msra.mxu1 %v3882_v63  ;;  %3293 = vmatprep.subr.mxu0 %v3869_v59 }
 0x2d3   : >> { %3336 = vmatprep.subr.mxu1 %v3897_v60  ;;  %3294 = vmatpush3.msra.mxu0 %v3869_v59 }
 0x2d4   : >> { %3337 = vmatpush3.msra.mxu1 %v3897_v60  ;;  %3295 = vmatprep.subr.mxu0 %v3879_v41 }
 0x2d5   : >> { %3338 = vmatprep.subr.mxu1 %v3958_v49  ;;  %3296 = vmatpush3.msra.mxu0 %v3879_v41 }
 0x2d6   : >> { %3339 = vmatpush3.msra.mxu1 %v3958_v49  ;;  %3297 = vmatprep.subr.mxu0 %v3894_v51 }
 0x2d7   : >> { %3340 = vmatprep.subr.mxu1 %v3965_v0  ;;  %3298 = vmatpush3.msra.mxu0 %v3894_v51 }
 0x2d8   : >> { %3341 = vmatpush3.msra.mxu1 %v3965_v0  ;;  %3299 = vmatprep.subr.mxu0 %v3910_v26 }
 0x2d9   : >> { %3342 = vmatprep.subr.mxu1 %v3977_v56  ;;  %3300 = vmatpush3.msra.mxu0 %v3910_v26 }
 0x2da   : >> { %3343 = vmatpush3.msra.mxu1 %v3977_v56  ;;  %3301 = vmatprep.subr.mxu0 %v3923_v31 }
 0x2db   : >> { %3344 = vmatprep.subr.mxu1 %v3991_v27  ;;  %3302 = vmatpush3.msra.mxu0 %v3923_v31 }
 0x2dc   : >> { %3345 = vmatpush3.msra.mxu1 %v3991_v27  ;;  %3303 = vmatprep.subr.mxu0 %v3962_v50 }
 0x2dd   : >> { %3346 = vmatprep.subr.mxu1 %v4006_v36  ;;  %3304 = vmatpush3.msra.mxu0 %v3962_v50  ;;  %v2632_v50 = vld [vmem:[%s2631_s18] sm:$0xff] }
 0x2de   : >> { %3347 = vmatpush3.msra.mxu1 %v4006_v36  ;;  %3305 = vmatprep.subr.mxu0 %v3974_v55 }
 0x2df   : >> { %3348 = vmatprep.subr.mxu1 %v4015_v43  ;;  %3306 = vmatpush3.msra.mxu0 %v3974_v55 }
 0x2e0   : >> { %3349 = vmatpush3.msra.mxu1 %v4015_v43  ;;  %3307 = vmatprep.subr.mxu0 %v3988_v44 }
 0x2e1   : >> { %3350 = vmatprep.subr.mxu1 %v4029_v4  ;;  %3308 = vmatpush3.msra.mxu0 %v3988_v44 }
 0x2e2   : >> { %3351 = vmatpush3.msra.mxu1 %v4029_v4  ;;  %3309 = vmatprep.subr.mxu0 %v4002_v35 }
 0x2e3   : >> { %3352 = vmatprep.subr.mxu1 %v4044_v10  ;;  %3310 = vmatpush3.msra.mxu0 %v4002_v35  ;;  %v2645_v35 = vpop.permute.xlu0 %2644 }
 0x2e4   : >> { %3353 = vmatpush3.msra.mxu1 %v4044_v10  ;;  %3311 = vmatprep.subr.mxu0 %v4019_v46 }
 0x2e5   : >> { %3354 = vmatprep.subr.mxu1 %v4060_v12  ;;  %3312 = vmatpush3.msra.mxu0 %v4019_v46  ;;  %v4400_v46 = vld [vmem:[#allocation29_spill] sm:$0xff] }
 0x2e6   : >> { %3355 = vmatpush3.msra.mxu1 %v4060_v12  ;;  %3313 = vmatprep.subr.mxu0 %v4026_v45 }
 0x2e7   : >> { %3357 = vmatmul.mubr.f32.vlgmr.msra.gmra.mxu1 %v2039_v18  ;;  %3394 = vmatprep.subr.mxu1 %v3839_v48 }
 0x2e8   : >> { %3314 = vmatpush3.msra.mxu0 %v4026_v45  ;;  %3395 = vmatpush3.msra.mxu1 %v3839_v48  ;;  %v4397_v48 = vld [vmem:[#allocation27_spill] sm:$0xff] }
 0x2e9   : >> { %3426 = vmatprep.mubr.f32.mxu1 %v4098_v42  ;;  %3315 = vmatprep.subr.mxu0 %v4041_v9 }
 0x2ea   : >> { %3396 = vmatprep.subr.mxu1 %v3845_v1  ;;  %3316 = vmatpush3.msra.mxu0 %v4041_v9  ;;  %v4392_v9 = vld [vmem:[#allocation32_spill] sm:$0xff] }
 0x2eb   : >> { %3397 = vmatpush3.msra.mxu1 %v3845_v1  ;;  %3317 = vmatprep.subr.mxu0 %v4057_v8 }
 0x2ec   : >> { %3398 = vmatprep.subr.mxu1 %v3854_v54  ;;  %3318 = vmatpush3.msra.mxu0 %v4057_v8  ;;  %v4391_v8 = vld [vmem:[#allocation31_spill] sm:$0xff] }
 0x2ed   : >> { %3399 = vmatpush3.msra.mxu1 %v3854_v54  ;;  %3319 = vmatprep.subr.mxu0 %v4071_v7 }
 0x2ee   : >> { %3400 = vmatprep.subr.mxu1 %v3861_v53  ;;  %3320 = vmatpush3.msra.mxu0 %v4071_v7  ;;  %v4390_v7 = vld [vmem:[#allocation30_spill] sm:$0xff] }
 0x2ef   : >> { %3401 = vmatpush3.msra.mxu1 %v3861_v53  ;;  %3322 = vmatmul.mubr.f32.vlgmr.msra.gmra.mxu0 %v4096_v17 }
 0x2f0   : >> { %3359 = vmatprep.subr.mxu0 %v3865_v58  ;;  %3402 = vmatprep.subr.mxu1 %v3872_v61 }
 0x2f1   : >> { %3360 = vmatpush3.msra.mxu0 %v3865_v58  ;;  %3391 = vmatprep.mubr.f32.mxu0 %v4098_v42 }
 0x2f2   : >> { %3403 = vmatpush3.msra.mxu1 %v3872_v61  ;;  %3361 = vmatprep.subr.mxu0 %v3875_v62 }
 0x2f3   : >> { %3404 = vmatprep.subr.mxu1 %v3882_v63  ;;  %3362 = vmatpush3.msra.mxu0 %v3875_v62 }
 0x2f4   : >> { %3405 = vmatpush3.msra.mxu1 %v3882_v63  ;;  %3363 = vmatprep.subr.mxu0 %v3890_v29 }
 0x2f5   : >> { %3406 = vmatprep.subr.mxu1 %v3897_v60  ;;  %3364 = vmatpush3.msra.mxu0 %v3890_v29 }
 0x2f6   : >> { %3407 = vmatpush3.msra.mxu1 %v3897_v60  ;;  %3365 = vmatprep.subr.mxu0 %v3906_v32 }
 0x2f7   : >> { %3408 = vmatprep.subr.mxu1 %v3958_v49  ;;  %3366 = vmatpush3.msra.mxu0 %v3906_v32 }
 0x2f8   : >> { %3409 = vmatpush3.msra.mxu1 %v3958_v49  ;;  %3367 = vmatprep.subr.mxu0 %v3919_v30  ;;  %v2633_v49 = vld [vmem:[%s2631_s18 + $0x8] sm:$0xff] }
 0x2f9   : >> { %3410 = vmatprep.subr.mxu1 %v3965_v0  ;;  %3368 = vmatpush3.msra.mxu0 %v3919_v30 }
 0x2fa   : >> { %3411 = vmatpush3.msra.mxu1 %v3965_v0  ;;  %3369 = vmatprep.subr.mxu0 %v3932_v34 }
 0x2fb   : >> { %3412 = vmatprep.subr.mxu1 %v3977_v56  ;;  %3370 = vmatpush3.msra.mxu0 %v3932_v34 }
 0x2fc   : >> { %3413 = vmatpush3.msra.mxu1 %v3977_v56  ;;  %3371 = vmatprep.subr.mxu0 %v3940_v38  ;;  %v4398_v56 = vld [vmem:[#allocation28_spill] sm:$0xff] }
 0x2fd   : >> { %3414 = vmatprep.subr.mxu1 %v3991_v27  ;;  %3372 = vmatpush3.msra.mxu0 %v3940_v38 }
 0x2fe   : >> { %3415 = vmatpush3.msra.mxu1 %v3991_v27  ;;  %3373 = vmatprep.subr.mxu0 %v3970_v2 }
 0x2ff   : >> { %3416 = vmatprep.subr.mxu1 %v4006_v36  ;;  %3374 = vmatpush3.msra.mxu0 %v3970_v2 }
 0x300   : >> { %3417 = vmatpush3.msra.mxu1 %v4006_v36  ;;  %3375 = vmatprep.subr.mxu0 %v3984_v28  ;;  %v4399_v36 = vld [vmem:[#allocation37_spill] sm:$0xff] }
 0x301   : >> { %3418 = vmatprep.subr.mxu1 %v4015_v43  ;;  %3376 = vmatpush3.msra.mxu0 %v3984_v28 }
 0x302   : >> { %3419 = vmatpush3.msra.mxu1 %v4015_v43  ;;  %3377 = vmatprep.subr.mxu0 %v4390_v7  ;;  %v2647_v43 = vpop.permute.xlu0 %2646 }
 0x303   : >> { %3420 = vmatprep.subr.mxu1 %v4029_v4  ;;  %3378 = vmatpush3.msra.mxu0 %v4390_v7  ;;  %v2651_v40 = vsel %vm374_vm0, %v4401_v52, %v2647_v43 }
 0x304   : >> { %3421 = vmatpush3.msra.mxu1 %v4029_v4  ;;  %3379 = vmatprep.subr.mxu0 %v4391_v8  ;;  %v4394_v4 = vld [vmem:[#allocation34_spill] sm:$0xff]  ;;  %v2657_v13 = vmul.f32 %v4400_v46, %v2651_v40 }
 0x305   : >> { %3422 = vmatprep.subr.mxu1 %v4044_v10  ;;  %3380 = vmatpush3.msra.mxu0 %v4391_v8 }
 0x306   : >> { %3423 = vmatpush3.msra.mxu1 %v4044_v10  ;;  %3381 = vmatprep.subr.mxu0 %v4392_v9  ;;  %v4396_v10 = vld [vmem:[#allocation36_spill] sm:$0xff] }
 0x307   : >> { %3424 = vmatprep.subr.mxu1 %v4060_v12  ;;  %3382 = vmatpush3.msra.mxu0 %v4392_v9 }
 0x308   : >> { %3425 = vmatpush3.msra.mxu1 %v4060_v12  ;;  %3383 = vmatprep.subr.mxu0 %v4393_v22 }
 0x309   : >> { %3427 = vmatmul.mubr.f32.vlgmr.msra.gmra.mxu1 %v4093_v37  ;;  %3384 = vmatpush3.msra.mxu0 %v4393_v22 }
 0x30a   : >> { %3385 = vmatprep.subr.mxu0 %v4394_v4 }
 0x30b   : >> { %3386 = vmatpush3.msra.mxu0 %v4394_v4 }
 0x30c   : >> { %3387 = vmatprep.subr.mxu0 %v4395_v23 }
 0x30d   : >> { %3388 = vmatpush3.msra.mxu0 %v4395_v23 }
 0x30e   : >> { %3389 = vmatprep.subr.mxu0 %v4396_v10 }
 0x30f   : >> { %3390 = vmatpush3.msra.mxu0 %v4396_v10 }
 0x310   : >> { %3392 = vmatmul.mubr.f32.vlgmr.msra.gmra.mxu0 %v4093_v37  ;;  %v2650_v37 = vsel %vm374_vm0, %v4399_v36, %v2645_v35 }
 0x311   : >> { %v2656_v45 = vmul.f32 %v4400_v46, %v2650_v37 }
 0x386   : >> { %v3288_v24 = vpop.f32.mrf.mxu1 }
 0x388   : >> { %v2194_v57 = vpop.f32.mrf.mxu1 }
 0x38e   : >> { %v3253_v12 = vpop.f32.mrf.mxu0 }
 0x38f   : >> { %v2044_v1 = vadd.f32 %v3253_v12, %v4397_v48 }
 0x390   : >> { %v2033_v25 = vpop.f32.mrf.mxu0 }
 0x391   : >> { %v2034_v54 = vadd.f32 %v4397_v48, %v2033_v25  ;;  %v2201_v53 = vadd.f32 %v3288_v24, %v2044_v1 }
 0x393   : >> { %v2195_v62 = vadd.f32 %v2194_v57, %v2034_v54 }
 0x3a7   : >> { %v3358_v58 = vpop.f32.mrf.mxu1 }
 0x3a9   : >> { %v2400_v63 = vpop.f32.mrf.mxu1 }
 0x3af   : >> { %v3323_v3 = vpop.f32.mrf.mxu0 }
 0x3b0   : >> { %v2312_v61 = vadd.f32 %v3323_v3, %v2201_v53 }
 0x3b1   : >> { %v2304_v59 = vpop.f32.mrf.mxu0 }
 0x3b2   : >> { %v2305_v41 = vadd.f32 %v2304_v59, %v2195_v62  ;;  %v2409_v29 = vadd.f32 %v3358_v58, %v2312_v61 }
 0x3b4   : >> { %v2401_v26 = vadd.f32 %v2400_v63, %v2305_v41 }
 0x3c9   : >> { %v3428_v51 = vpop.f32.mrf.mxu1 }
 0x3cb   : >> { %v2620_v38 = vpop.f32.mrf.mxu1 }
 0x3d0   : >> { %v3393_v60 = vpop.f32.mrf.mxu0 }
 0x3d1   : >> { %v2534_v32 = vadd.f32 %v3393_v60, %v2409_v29 }
 0x3d2   : >> { %v2527_v30 = vpop.f32.mrf.mxu0 }
 0x3d3   : >> { %v2627_v31 = vadd.f32 %v3428_v51, %v2534_v32  ;;  %v2528_v34 = vadd.f32 %v2527_v30, %v2401_v26 }
 0x3d5   : >> { %v2621_v0 = vadd.f32 %v2620_v38, %v2528_v34  ;;  %v2635_v2 = vadd.f32 %v2633_v49, %v2627_v31 }
 0x3d7   : >> { %v2634_v55 = vadd.f32 %v2632_v50, %v2621_v0  ;;  %v2641_v44 = vadd.f32 %v4398_v56, %v2635_v2 }
 0x3d9   : >> { %v2640_v28 = vadd.f32 %v4398_v56, %v2634_v55  ;;  %v2659_v16 = vadd.f32 %v2657_v13, %v2641_v44 }
 0x3db   : >> { %3448 = vtanh.f32 %v2640_v28  ;;  %v2658_v14 = vadd.f32 %v2656_v45, %v2640_v28  ;;  %v2868_v6 = vmul.f32 -1.442695, %v2659_v16 }
 0x3dc   : >> { %3450 = vtanh.f32 %v2641_v44 }
 0x3dd   : >> { %v2867_v39 = vmul.f32 -1.442695, %v2658_v14 }
 0x3df   : >> { %3452 = vpow2.f32 %v2867_v39 }
 0x3e0   : >> { %3454 = vpow2.f32 %v2868_v6 }
 0x3e8   : >> { %v3449_v27 = vpop.eup %3448 }
 0x3e9   : >> { %2678 = vrot.lane.b32.xlu1 %v3449_v27, %s3489_s19  ;;  %v3451_v33 = vpop.eup %3450 }
 0x3ec   : >> { %v3453_v47 = vpop.eup %3452 }
 0x3ed   : >> { %2680 = vrot.lane.b32.xlu1 %v3451_v33, %s3489_s19  ;;  %v2666_v17 = vadd.f32 1.0, %v3453_v47  ;;  %v3455_v42 = vpop.eup %3454 }
 0x3ee   : >> { %v2667_v18 = vadd.f32 1.0, %v3455_v42 }
 0x3ef   : >> { %3456 = vrcp.f32 %v2666_v17 }
 0x3f0   : >> { %3458 = vrcp.f32 %v2667_v18 }
 0x3fc   : >> { %v3457_v19 = vpop.eup %3456 }
 0x3fd   : >> { %v3459_v15 = vpop.eup %3458  ;;  %v2674_v7 = vmul.f32 %v3457_v19, %v2645_v35 }
 0x3fe   : >> { %v2675_v22 = vmul.f32 %v3459_v15, %v2647_v43 }
 0x45b   : >> { %v2679_v11 = vpop.permute.xlu1 %2678 }
 0x45c   : >> { %v2684_v5 = vmul.f32 %v3457_v19, %v2679_v11 }
 0x45e   : >> { %2688 = vrot.lane.b32.xlu0 %v2684_v5, %s3488_s23 }
 0x45f   : >> { %v2681_v20 = vpop.permute.xlu1 %2680 }
 0x460   : >> { %v2685_v21 = vmul.f32 %v3459_v15, %v2681_v20 }
 0x462   : >> { %2690 = vrot.lane.b32.xlu1 %v2685_v21, %s3488_s23 }
 0x4d0   : >> { %v2689_v8 = vpop.permute.xlu0 %2688 }
 0x4d1   : >> { %v2694_v9 = vadd.f32 %v2689_v8, %v2674_v7 }
 0x4d3   : >> { %2698 = vrot.lane.b32.xlu0 %v2694_v9, %s3488_s23  ;;  %3460 = vtanh.f32 %v2694_v9 }
 0x4d4   : >> { %v2691_v4 = vpop.permute.xlu1 %2690 }
 0x4d5   : >> { %v2695_v23 = vadd.f32 %v2691_v4, %v2675_v22 }
 0x4d7   : >> { %2700 = vrot.lane.b32.xlu1 %v2695_v23, %s3488_s23  ;;  %3462 = vtanh.f32 %v2695_v23 }
 0x4e0   : >> { %v3461_v1 = vpop.eup %3460 }
 0x4e4   : >> { %v3463_v3 = vpop.eup %3462 }
 0x545   : >> { %v2699_v10 = vpop.permute.xlu0 %2698 }
 0x546   : >> { %v2704_v12 = vmul.f32 %v4400_v46, %v2699_v10 }
 0x548   : >> { %2708 = vrot.lane.b32.xlu0 %v2704_v12, %s3488_s23 }
 0x549   : >> { %v2701_v24 = vpop.permute.xlu1 %2700 }
 0x54a   : >> { %v2705_v25 = vmul.f32 %v4400_v46, %v2701_v24 }
 0x54c   : >> { %2710 = vrot.lane.b32.xlu1 %v2705_v25, %s3488_s23  ;;  %2732 = vrot.lane.b32.xlu0 %v3461_v1, %s3489_s19 }
 0x550   : >> { %2734 = vrot.lane.b32.xlu1 %v3463_v3, %s3489_s19 }
 0x5ba   : >> { %v2709_v54 = vpop.permute.xlu0 %2708 }
 0x5bb   : >> { %v2714_v57 = vadd.f32 %v2709_v54, %v2640_v28 }
 0x5bd   : >> { %v2869_v53 = vmul.f32 -1.442695, %v2714_v57 }
 0x5be   : >> { %v2711_v58 = vpop.permute.xlu1 %2710  ;;  %v2733_v60 = vpop.permute.xlu0 %2732 }
 0x5bf   : >> { %3464 = vpow2.f32 %v2869_v53  ;;  %v2715_v59 = vadd.f32 %v2711_v58, %v2641_v44 }
 0x5c1   : >> { %v2870_v61 = vmul.f32 -1.442695, %v2715_v59 }
 0x5c2   : >> { %v2735_v30 = vpop.permute.xlu1 %2734 }
 0x5c3   : >> { %3466 = vpow2.f32 %v2870_v61 }
 0x5cc   : >> { %v3465_v62 = vpop.eup %3464 }
 0x5cd   : >> { %v2722_v41 = vadd.f32 1.0, %v3465_v62 }
 0x5cf   : >> { %3468 = vrcp.f32 %v2722_v41 }
 0x5d0   : >> { %v3467_v63 = vpop.eup %3466 }
 0x5d1   : >> { %v2723_v29 = vadd.f32 1.0, %v3467_v63 }
 0x5d3   : >> { %3470 = vrcp.f32 %v2723_v29 }
 0x5dc   : >> { %v3469_v51 = vpop.eup %3468 }
 0x5dd   : >> { %v2738_v32 = vmul.f32 %v3469_v51, %v2733_v60 }
 0x5df   : >> { %2742 = vrot.lane.b32.xlu0 %v2738_v32, %s3488_s23 }
 0x5e0   : >> { %v3471_v26 = vpop.eup %3470 }
 0x5e1   : >> { %v2739_v31 = vmul.f32 %v3471_v26, %v2735_v30 }
 0x5e3   : >> { %2744 = vrot.lane.b32.xlu1 %v2739_v31, %s3488_s23  ;;  %2750 = vrot.lane.b32.xlu0 %v2694_v9, %s3490_s20 }
 0x5e7   : >> { %2752 = vrot.lane.b32.xlu1 %v2695_v23, %s3490_s20 }
 0x651   : >> { %v2743_v34 = vpop.permute.xlu0 %2742 }
 0x652   : >> { %2748 = vst.msk [vmem:[#allocation2] sm:$0xff] %vm374_vm0, %v2743_v34  ;;  %2759 = vst.msk [vmem:[%s2758_s28] sm:$0xff] %vm374_vm0, %v2743_v34 }
 0x655   : >> { %v2745_v38 = vpop.permute.xlu1 %2744  ;;  %v2751_v49 = vpop.permute.xlu0 %2750 }
 0x656   : >> { %2749 = vst.msk [vmem:[#allocation2 + $0x8] sm:$0xff] %vm374_vm0, %v2745_v38  ;;  %2760 = vst.msk [vmem:[%s2758_s28 + $0x8] sm:$0xff] %vm374_vm0, %v2745_v38  ;;  %385 = sbr.rel (!%p383_p4) target bundleno = 27 (0x1b), region = 97 }
 0x657   : >> { %2756 = vst.msk [vmem:[#allocation3] sm:$0xff] %vm374_vm0, %v2751_v49 }
 0x659   : >> { %v2753_v50 = vpop.permute.xlu1 %2752 }
 0x65a   : >> { %2757 = vst.msk [vmem:[#allocation3 + $0x8] sm:$0xff] %vm374_vm0, %v2753_v50 }
 0x65b PF: > { %s18_s27 = sadd.s32 1, %s3482_s27  }
 0x65c   : > { %p15_p5 = scmp.ge.s32.totalorder %s18_s27, 4  }
 0x65e   :  { %17 = sbr.rel (!%p15_p5) target bundleno = 1 (0x1), region = 108 }

// kernel: gcn_lstm_core.6
= control target key start
LH: loop header
LB: loop body
LE: loop exit
PB: predicated region body
PF: predicated region fallthrough
CT: control target
= control target key end

     0   :  { %s3196_s18 = smov 0   ;;  %s3885_s0 = inlined_call_operand.vmem [shape: f32[16,16], index: 0, kind: input, shape index: {}]   ;;  %s3886_s1 = inlined_call_operand.vmem [shape: f32[2,8,16,32], index: 1, kind: input, shape index: {}]   ;;  %s3887_s2 = inlined_call_operand.vmem [shape: f32[32,128], index: 2, kind: input, shape index: {}]   ;;  %s3888_s3 = inlined_call_operand.vmem [shape: f32[128,128], index: 3, kind: input, shape index: {}]   ;;  %s3889_s4 = inlined_call_operand.vmem [shape: f32[2,128], index: 4, kind: input, shape index: {}]   ;;  %s3890_s5 = inlined_call_operand.vmem [shape: f32[2,8,16,128], index: 5, kind: output, shape index: {}]  }
   0x1 LB: > { %s2566_s19 = sadd.s32 4294967295, %s3160_s18   ;;  %p2570_p0 = scmp.ge.s32.totalorder %s3160_s18, 1  ;;  %s3160_s18 = sphi %s3196_s18, %s15_s18  }
   0x2   : > { %p187_p1 = scmp.lt.s32.totalorder %s3160_s18, 3 }
   0x4   : > { %p188_p2 = pnand %p2570_p0, %p187_p1 }
   0x5   : > { %p215_p3 = scmp.lt.s32.totalorder (!%p188_p2), %s2566_s19, 1  ;;  %s3334_s28 = smov (!%p188_p2), 0  }
   0x6   : > { %191 = sbr.rel (%p188_p2) target bundleno = 981 (0x3d5), region = 40 }
   0xb   : > { %v3207_v0 = vld [vmem:[%s3885_s0] sm:$0xff]  ;;  %v3212_v1 = vld [vmem:[%s3885_s0 + $0x8] sm:$0xff]  ;;  %v3227_v4 = vld [vmem:[%s3887_s2 + $0x10] sm:$0xff]  ;;  %s3990_s19 = smov (!%p215_p3, %s2566_s19), 1 }
   0xc   : > { %3927 = vst [vmem:[#allocation2_spill] sm:$0xff] %v3207_v0  ;;  %3928 = vst [vmem:[#allocation3_spill] sm:$0xff] %v3212_v1  ;;  %v3217_v2 = vld [vmem:[%s3887_s2] sm:$0xff]  ;;  %v3222_v3 = vld [vmem:[%s3887_s2 + $0x8] sm:$0xff]  ;;  %s2580_s21 = sshll.u32 %s3990_s19, 7 }
   0xd   : > { %3929 = vst [vmem:[#allocation4_spill] sm:$0xff] %v3217_v2  ;;  %3930 = vst [vmem:[#allocation5_spill] sm:$0xff] %v3222_v3  ;;  %v3232_v5 = vld [vmem:[%s3887_s2 + $0x18] sm:$0xff]  ;;  %v3237_v6 = vld [vmem:[%s3888_s3] sm:$0xff]  ;;  %s3282_s30 = scalar_lea.vmem %s3886_s1, %s2580_s21  ;;  %s3287_s7 = scalar_lea.vmem %s3890_s5, %s2580_s21 }
   0xe   : > { %3931 = vst [vmem:[#allocation6_spill] sm:$0xff] %v3227_v4  ;;  %3932 = vst [vmem:[#allocation7_spill] sm:$0xff] %v3232_v5  ;;  %v3242_v7 = vld [vmem:[%s3888_s3 + $0x8] sm:$0xff]  ;;  %v3247_v8 = vld [vmem:[%s3888_s3 + $0x10] sm:$0xff] }
   0xf   : > { %3933 = vst [vmem:[#allocation8_spill] sm:$0xff] %v3237_v6  ;;  %3934 = vst [vmem:[#allocation9_spill] sm:$0xff] %v3242_v7  ;;  %v3252_v9 = vld [vmem:[%s3888_s3 + $0x18] sm:$0xff]  ;;  %v3257_v10 = vld [vmem:[%s3888_s3 + $0x20] sm:$0xff] }
  0x10   : > { %3935 = vst [vmem:[#allocation10_spill] sm:$0xff] %v3247_v8  ;;  %3936 = vst [vmem:[#allocation11_spill] sm:$0xff] %v3252_v9  ;;  %v3262_v11 = vld [vmem:[%s3888_s3 + $0x28] sm:$0xff]  ;;  %v3267_v12 = vld [vmem:[%s3888_s3 + $0x30] sm:$0xff] }
  0x11   : > { %3937 = vst [vmem:[#allocation12_spill] sm:$0xff] %v3257_v10  ;;  %3938 = vst [vmem:[#allocation13_spill] sm:$0xff] %v3262_v11  ;;  %v3272_v13 = vld [vmem:[%s3888_s3 + $0x38] sm:$0xff]  ;;  %v3277_v14 = vld [vmem:[%s3888_s3 + $0x40] sm:$0xff] }
  0x12   : > { %3939 = vst [vmem:[#allocation14_spill] sm:$0xff] %v3267_v12  ;;  %3940 = vst [vmem:[#allocation15_spill] sm:$0xff] %v3272_v13  ;;  %v3292_v15 = vld [vmem:[%s3888_s3 + $0x48] sm:$0xff]  ;;  %v3297_v16 = vld [vmem:[%s3888_s3 + $0x50] sm:$0xff] }
  0x13   : > { %3941 = vst [vmem:[#allocation16_spill] sm:$0xff] %v3277_v14  ;;  %3942 = vst [vmem:[#allocation17_spill] sm:$0xff] %v3292_v15  ;;  %v3302_v17 = vld [vmem:[%s3888_s3 + $0x58] sm:$0xff]  ;;  %v3307_v18 = vld [vmem:[%s3888_s3 + $0x60] sm:$0xff] }
  0x14   : > { %3943 = vst [vmem:[#allocation18_spill] sm:$0xff] %v3297_v16  ;;  %3944 = vst [vmem:[#allocation19_spill] sm:$0xff] %v3302_v17  ;;  %v3312_v19 = vld [vmem:[%s3888_s3 + $0x68] sm:$0xff]  ;;  %v3317_v20 = vld [vmem:[%s3888_s3 + $0x70] sm:$0xff] }
  0x15   : > { %3945 = vst [vmem:[#allocation20_spill] sm:$0xff] %v3307_v18  ;;  %3946 = vst [vmem:[#allocation21_spill] sm:$0xff] %v3312_v19  ;;  %v3322_v21 = vld [vmem:[%s3888_s3 + $0x78] sm:$0xff]  ;;  %v3327_v22 = vld [vmem:[%s3889_s4] ss:$0 sm:$0xff] }
  0x16   : > { %3947 = vst [vmem:[#allocation22_spill] sm:$0xff] %v3317_v20  ;;  %3948 = vst [vmem:[#allocation23_spill] sm:$0xff] %v3322_v21  ;;  %v3332_v23 = vld [vmem:[%s3889_s4 + $0x1] ss:$0 sm:$0xff] }
  0x17   : > { %3949 = vst [vmem:[#allocation24_spill] sm:$0xff] %v3327_v22  ;;  %3950 = vst [vmem:[#allocation25_spill] sm:$0xff] %v3332_v23 }
  0x18 LB: >> { %v3960_v6 = vld [vmem:[#allocation8_spill] sm:$0xff]  ;;  %v3961_v7 = vld [vmem:[#allocation9_spill] sm:$0xff]  ;;  %v3966_v8 = vld [vmem:[#allocation10_spill] sm:$0xff]  ;;  %vm259_vm0 = vcmask 130048   ;;  %s2575_s29 = sshll.u32 %s3164_s28, 4  ;;  %vm772_vm1 = vcmask 261120   ;;  %s3164_s28 = sphi %s3334_s28, %s254_s28  }
  0x19   : >> { %v3962_v13 = vld [vmem:[#allocation15_spill] sm:$0xff]  ;;  %v3963_v12 = vld [vmem:[#allocation14_spill] sm:$0xff]  ;;  %v3964_v11 = vld [vmem:[#allocation13_spill] sm:$0xff]  ;;  %s256_s19 = scalar_lea.vmem %s3282_s30, %s2575_s29  ;;  %s2499_s6 = scalar_lea.vmem %s3287_s7, %s2575_s29 }
  0x1a   : >> { %v3958_v15 = vld [vmem:[#allocation17_spill] sm:$0xff]  ;;  %v3959_v14 = vld [vmem:[#allocation16_spill] sm:$0xff]  ;;  %v3967_v9 = vld [vmem:[#allocation11_spill] sm:$0xff]  ;;  %s254_s28 = sadd.s32 1, %s3164_s28  }
  0x1b   : >> { %v3956_v17 = vld [vmem:[#allocation19_spill] sm:$0xff]  ;;  %v3957_v16 = vld [vmem:[#allocation18_spill] sm:$0xff]  ;;  %v3965_v10 = vld [vmem:[#allocation12_spill] sm:$0xff]  ;;  %p251_p4 = scmp.ge.s32.totalorder %s254_s28, 8  }
  0x1c   : >> { %v3954_v19 = vld [vmem:[#allocation21_spill] sm:$0xff]  ;;  %v3955_v18 = vld [vmem:[#allocation20_spill] sm:$0xff]  ;;  %v3968_v5 = vld [vmem:[#allocation7_spill] sm:$0xff] }
  0x1d   : >> { %v3952_v21 = vld [vmem:[#allocation23_spill] sm:$0xff]  ;;  %v3953_v20 = vld [vmem:[#allocation22_spill] sm:$0xff]  ;;  %v3970_v3 = vld [vmem:[#allocation5_spill] sm:$0xff]  ;;  %v3382_v48 = vand.u32 4294901760, %v3968_v5 }
  0x1e   : >> { %v3951_v22 = vld [vmem:[#allocation24_spill] sm:$0xff]  ;;  %v3969_v4 = vld [vmem:[#allocation6_spill] sm:$0xff]  ;;  %v3973_v1 = vld [vmem:[#allocation3_spill] sm:$0xff]  ;;  %v3401_v53 = vand.u32 4294901760, %v3970_v3 }
  0x1f   : >> { %v3971_v2 = vld [vmem:[#allocation4_spill] sm:$0xff]  ;;  %v3972_v0 = vld [vmem:[#allocation2_spill] sm:$0xff]  ;;  %v264_v25 = vsel %vm259_vm0, %v3973_v1, 0  ;;  %v258_v28 = vld [vmem:[%s256_s19 + $0x8] sm:$0xff]  ;;  %v3386_v49 = vsub.f32 %v3968_v5, %v3382_v48  ;;  %v3389_v50 = vand.u32 4294901760, %v3969_v4  ;;  %v3686_v5 = vand.u32 4294901760, %v3961_v7 }
  0x20   : >> { %v261_v24 = vsel %vm259_vm0, %v3972_v0, 0  ;;  %v3344_v27 = vand.u32 4294901760, %v264_v25  ;;  %v257_v29 = vld [vmem:[%s256_s19] sm:$0xff]  ;;  %v295_v32 = vand.u32 4294901760, %v258_v28  ;;  %v3412_v56 = vsub.f32 %v3970_v3, %v3401_v53 }
  0x21   : >> { %v3342_v26 = vand.u32 4294901760, %v261_v24  ;;  %v298_v33 = vand.u32 4294901760, %v257_v29  ;;  %v3394_v51 = vand.u32 4294901760, %v3386_v49  ;;  %v3398_v52 = vsub.f32 %v3969_v4, %v3389_v50 }
  0x22   : >> { %v3353_v31 = vsub.f32 %v264_v25, %v3344_v27  ;;  %2774 = vmatprep.subr.mxu0 %v295_v32  ;;  %v383_v36 = vsub.f32 %v258_v28, %v295_v32  ;;  %v3415_v57 = vand.u32 4294901760, %v3971_v2  ;;  %v3422_v60 = vand.u32 4294901760, %v3412_v56 }
  0x23   : >> { %v3350_v30 = vsub.f32 %v261_v24, %v3342_v26  ;;  %2785 = vmatprep.mubr.f32.mxu1 %v3342_v26  ;;  %v390_v37 = vsub.f32 %v257_v29, %v298_v33  ;;  %2775 = vmatpush3.msra.mxu0 %v295_v32  ;;  %v896_v54 = vsub.f32 %v3386_v49, %v3394_v51  ;;  %v3408_v55 = vand.u32 4294901760, %v3398_v52 }
  0x24   : >> { %v3360_v35 = vand.u32 4294901760, %v3353_v31  ;;  %2776 = vmatprep.subr.mxu0 %v298_v33  ;;  %v384_v40 = vand.u32 4294901760, %v383_v36  ;;  %v3426_v61 = vsub.f32 %v3971_v2, %v3415_v57  ;;  %v910_v63 = vsub.f32 %v3412_v56, %v3422_v60 }
  0x25   : >> { %v3357_v34 = vand.u32 4294901760, %v3350_v30  ;;  %v391_v41 = vand.u32 4294901760, %v390_v37  ;;  %2777 = vmatpush3.msra.mxu0 %v298_v33  ;;  %v897_v58 = vand.u32 4294901760, %v896_v54  ;;  %v903_v59 = vsub.f32 %v3398_v52, %v3408_v55 }
  0x26   : >> { %v346_v39 = vsub.f32 %v3353_v31, %v3360_v35  ;;  %v385_v44 = vsub.f32 %v383_v36, %v384_v40  ;;  %2788 = vmatprep.subr.mxu0 %v383_v36  ;;  %v3433_v24 = vand.u32 4294901760, %v3426_v61  ;;  %v911_v25 = vand.u32 4294901760, %v910_v63 }
  0x27   : >> { %v336_v38 = vsub.f32 %v3350_v30, %v3357_v34  ;;  %v392_v45 = vsub.f32 %v390_v37, %v391_v41  ;;  %v904_v62 = vand.u32 4294901760, %v903_v59 }
  0x28   : >> { %v3368_v43 = vand.u32 4294901760, %v346_v39  ;;  %v386_v46 = vand.u32 4294901760, %v385_v44  ;;  %v917_v28 = vsub.f32 %v3426_v61, %v3433_v24 }
  0x29   : >> { %v3366_v42 = vand.u32 4294901760, %v336_v38  ;;  %v393_v47 = vand.u32 4294901760, %v392_v45 }
  0x2a   : >> { %2781 = vmatprep.subr.mxu1 %v386_v46  ;;  %v918_v29 = vand.u32 4294901760, %v917_v28 }
  0x2b   : >> { %2778 = vmatprep.mubr.f32.mxu0 %v3366_v42  ;;  %2782 = vmatpush3.msra.mxu1 %v386_v46 }
  0x2c   : >> { %2779 = vmatmul.mubr.f32.vlgmr.msra.gmra.mxu0 %v3368_v43  ;;  %2783 = vmatprep.subr.mxu1 %v393_v47 }
  0x2d   : >> { %2789 = vmatpush3.msra.mxu0 %v383_v36  ;;  %2792 = vmatprep.mubr.f32.mxu0 %v3350_v30 }
  0x2e   : >> { %2790 = vmatprep.subr.mxu0 %v390_v37  ;;  %2784 = vmatpush3.msra.mxu1 %v393_v47 }
  0x2f   : >> { %2791 = vmatpush3.msra.mxu0 %v390_v37  ;;  %2786 = vmatmul.mubr.f32.vlgmr.msra.gmra.mxu1 %v3344_v27 }
  0x30   : >> { %2793 = vmatmul.mubr.f32.vlgmr.msra.gmra.mxu0 %v3353_v31  ;;  %2802 = vmatprep.subr.mxu0 %v384_v40 }
  0x31   : >> { %2795 = vmatprep.subr.mxu1 %v295_v32  ;;  %2803 = vmatpush3.msra.mxu0 %v384_v40 }
  0x32   : >> { %2796 = vmatpush3.msra.mxu1 %v295_v32  ;;  %2804 = vmatprep.subr.mxu0 %v391_v41 }
  0x33   : >> { %2797 = vmatprep.subr.mxu1 %v298_v33  ;;  %2799 = vmatprep.mubr.f32.mxu1 %v3357_v34 }
  0x34   : >> { %2798 = vmatpush3.msra.mxu1 %v298_v33  ;;  %2805 = vmatpush3.msra.mxu0 %v391_v41 }
  0x35   : >> { %2806 = vmatprep.mubr.f32.mxu0 %v3342_v26  ;;  %2800 = vmatmul.mubr.f32.vlgmr.msra.gmra.mxu1 %v3360_v35 }
  0x36   : >> { %2807 = vmatmul.mubr.f32.vlgmr.msra.gmra.mxu0 %v3344_v27  ;;  %2809 = vmatprep.subr.mxu1 %v295_v32 }
  0x37   : >> { %2813 = vmatprep.mubr.f32.mxu1 %v3342_v26  ;;  %2810 = vmatpush3.msra.mxu1 %v295_v32 }
  0x38   : >> { %2811 = vmatprep.subr.mxu1 %v298_v33  ;;  %2816 = vmatprep.subr.mxu0 %v3382_v48 }
  0x39   : >> { %2812 = vmatpush3.msra.mxu1 %v298_v33  ;;  %2817 = vmatpush3.msra.mxu0 %v3382_v48 }
  0x3a   : >> { %2814 = vmatmul.mubr.f32.vlgmr.msra.gmra.mxu1 %v3344_v27  ;;  %2818 = vmatprep.subr.mxu0 %v3389_v50 }
  0x3b   : >> { %2819 = vmatpush3.msra.mxu0 %v3389_v50  ;;  %2827 = vmatprep.subr.mxu1 %v897_v58 }
  0x3c   : >> { %2820 = vmatprep.subr.mxu0 %v3401_v53  ;;  %2828 = vmatpush3.msra.mxu1 %v897_v58 }
  0x3d   : >> { %2821 = vmatpush3.msra.mxu0 %v3401_v53  ;;  %2829 = vmatprep.subr.mxu1 %v904_v62 }
  0x3e   : >> { %2822 = vmatprep.subr.mxu0 %v3415_v57  ;;  %2830 = vmatpush3.msra.mxu1 %v904_v62 }
  0x3f   : >> { %2823 = vmatpush3.msra.mxu0 %v3415_v57  ;;  %2831 = vmatprep.subr.mxu1 %v911_v25 }
  0x40   : >> { %2838 = vmatprep.subr.mxu0 %v3386_v49  ;;  %2832 = vmatpush3.msra.mxu1 %v911_v25 }
  0x41   : >> { %2833 = vmatprep.subr.mxu1 %v918_v29 }
  0x42   : >> { %2834 = vmatpush3.msra.mxu1 %v918_v29 }
  0x43   : >> { %2849 = vmatprep.subr.mxu1 %v3382_v48 }
  0xec   : >> { %v2780_v32 = vpop.f32.mrf.mxu0 }
  0xee   : >> { %v339_v33 = vpop.f32.mrf.mxu0 }
  0xef   : >> { %v2787_v37 = vpop.f32.mrf.mxu1 }
  0xf0   : >> { %v2794_v36 = vpop.f32.mrf.mxu0  ;;  %v437_v38 = vadd.f32 %v2787_v37, %v2780_v32 }
  0xf1   : >> { %v430_v40 = vpop.f32.mrf.mxu1 }
  0xf2   : >> { %v512_v39 = vpop.f32.mrf.mxu0  ;;  %v520_v41 = vadd.f32 %v2794_v36, %v437_v38  ;;  %v431_v44 = vadd.f32 %v430_v40, %v339_v33 }
  0xf4   : >> { %v513_v45 = vadd.f32 %v512_v39, %v431_v44 }
  0xf5   : >> { %v2801_v46 = vpop.f32.mrf.mxu1 }
  0xf6   : >> { %v2808_v47 = vpop.f32.mrf.mxu0  ;;  %v603_v54 = vadd.f32 %v2801_v46, %v520_v41 }
  0xf7   : >> { %v594_v58 = vpop.f32.mrf.mxu1 }
  0xf8   : >> { %v686_v59 = vadd.f32 %v2808_v47, %v603_v54  ;;  %v595_v62 = vadd.f32 %v594_v58, %v513_v45  ;;  %v679_v63 = vpop.f32.mrf.mxu0 }
  0xfa   : >> { %v680_v25 = vadd.f32 %v679_v63, %v595_v62  ;;  %v2815_v28 = vpop.f32.mrf.mxu1 }
  0xfb   : >> { %v765_v29 = vadd.f32 %v2815_v28, %v686_v59 }
  0xfc   : >> { %v758_v0 = vpop.f32.mrf.mxu1 }
  0xfd   : >> { %v777_v1 = vsel %vm772_vm1, %v765_v29, 0  ;;  %v759_v2 = vadd.f32 %v758_v0, %v680_v25 }
  0xfe   : >> { %v858_v32 = vand.u32 4294901760, %v777_v1 }
  0xff   : >> { %v774_v37 = vsel %vm772_vm1, %v759_v2, 0 }
 0x100   : >> { %v859_v3 = vsub.f32 %v777_v1, %v858_v32  ;;  %v848_v36 = vand.u32 4294901760, %v774_v37 }
 0x102   : >> { %v849_v33 = vsub.f32 %v774_v37, %v848_v36  ;;  %2835 = vmatprep.mubr.f32.mxu1 %v848_v36  ;;  %v860_v38 = vand.u32 4294901760, %v859_v3 }
 0x103   : >> { %2836 = vmatmul.mubr.f32.vlgmr.msra.gmra.mxu1 %v858_v32 }
 0x104   : >> { %2850 = vmatpush3.msra.mxu1 %v3382_v48  ;;  %v850_v39 = vand.u32 4294901760, %v849_v33  ;;  %v861_v41 = vsub.f32 %v859_v3, %v860_v38 }
 0x105   : >> { %2851 = vmatprep.subr.mxu1 %v3389_v50 }
 0x106   : >> { %2852 = vmatpush3.msra.mxu1 %v3389_v50  ;;  %2857 = vmatprep.mubr.f32.mxu1 %v850_v39  ;;  %v851_v40 = vsub.f32 %v849_v33, %v850_v39  ;;  %v862_v1 = vand.u32 4294901760, %v861_v41  ;;  %v3487_v39 = vand.u32 4294901760, %v3953_v20 }
 0x107   : >> { %2853 = vmatprep.subr.mxu1 %v3401_v53 }
 0x108   : >> { %2854 = vmatpush3.msra.mxu1 %v3401_v53  ;;  %v852_v0 = vand.u32 4294901760, %v851_v40 }
 0x109   : >> { %2855 = vmatprep.subr.mxu1 %v3415_v57 }
 0x10a   : >> { %2856 = vmatpush3.msra.mxu1 %v3415_v57  ;;  %2824 = vmatprep.mubr.f32.mxu0 %v852_v0 }
 0x10b   : >> { %2858 = vmatmul.mubr.f32.vlgmr.msra.gmra.mxu1 %v860_v38  ;;  %2871 = vmatprep.subr.mxu1 %v3382_v48 }
 0x10c   : >> { %2825 = vmatmul.mubr.f32.vlgmr.msra.gmra.mxu0 %v862_v1  ;;  %2872 = vmatpush3.msra.mxu1 %v3382_v48  ;;  %v3496_v1 = vand.u32 4294901760, %v3954_v19 }
 0x10d   : >> { %2839 = vmatpush3.msra.mxu0 %v3386_v49  ;;  %2879 = vmatprep.mubr.f32.mxu1 %v848_v36 }
 0x10e   : >> { %2840 = vmatprep.subr.mxu0 %v3398_v52  ;;  %2846 = vmatprep.mubr.f32.mxu0 %v849_v33 }
 0x10f   : >> { %2873 = vmatprep.subr.mxu1 %v3389_v50  ;;  %2841 = vmatpush3.msra.mxu0 %v3398_v52 }
 0x110   : >> { %2874 = vmatpush3.msra.mxu1 %v3389_v50  ;;  %2842 = vmatprep.subr.mxu0 %v3412_v56 }
 0x111   : >> { %2875 = vmatprep.subr.mxu1 %v3401_v53  ;;  %2843 = vmatpush3.msra.mxu0 %v3412_v56 }
 0x112   : >> { %2876 = vmatpush3.msra.mxu1 %v3401_v53  ;;  %2844 = vmatprep.subr.mxu0 %v3426_v61 }
 0x113   : >> { %2877 = vmatprep.subr.mxu1 %v3415_v57  ;;  %2845 = vmatpush3.msra.mxu0 %v3426_v61 }
 0x114   : >> { %2878 = vmatpush3.msra.mxu1 %v3415_v57  ;;  %2847 = vmatmul.mubr.f32.vlgmr.msra.gmra.mxu0 %v859_v3 }
 0x115   : >> { %2860 = vmatprep.subr.mxu0 %v3394_v51  ;;  %2880 = vmatmul.mubr.f32.vlgmr.msra.gmra.mxu1 %v858_v32 }
 0x116   : >> { %2861 = vmatpush3.msra.mxu0 %v3394_v51  ;;  %2868 = vmatprep.mubr.f32.mxu0 %v848_v36  ;;  %v3481_v36 = vand.u32 4294901760, %v3952_v21 }
 0x117   : >> { %2862 = vmatprep.subr.mxu0 %v3408_v55  ;;  %2893 = vmatprep.mubr.f32.mxu1 %v3342_v26 }
 0x118   : >> { %2863 = vmatpush3.msra.mxu0 %v3408_v55  ;;  %v3493_v0 = vsub.f32 %v3952_v21, %v3481_v36 }
 0x119   : >> { %2864 = vmatprep.subr.mxu0 %v3422_v60 }
 0x11a   : >> { %2865 = vmatpush3.msra.mxu0 %v3422_v60 }
 0x11b   : >> { %2866 = vmatprep.subr.mxu0 %v3433_v24 }
 0x11c   : >> { %2867 = vmatpush3.msra.mxu0 %v3433_v24 }
 0x11d   : >> { %2869 = vmatmul.mubr.f32.vlgmr.msra.gmra.mxu0 %v858_v32 }
 0x11e   : >> { %2886 = vmatprep.mubr.f32.mxu0 %v3366_v42 }
 0x1c3   : >> { %v2837_v3 = vpop.f32.mrf.mxu1 }
 0x1c5   : >> { %v955_v52 = vpop.f32.mrf.mxu1 }
 0x1cb   : >> { %v2859_v55 = vpop.f32.mrf.mxu1 }
 0x1cc   : >> { %v2826_v2 = vpop.f32.mrf.mxu0 }
 0x1cd   : >> { %v865_v49 = vadd.f32 %v2826_v2, %v3951_v22  ;;  %v1125_v44 = vpop.f32.mrf.mxu1 }
 0x1ce   : >> { %v854_v48 = vpop.f32.mrf.mxu0 }
 0x1cf   : >> { %v855_v50 = vadd.f32 %v3951_v22, %v854_v48  ;;  %v962_v53 = vadd.f32 %v2837_v3, %v865_v49  ;;  %v3500_v48 = vsub.f32 %v3953_v20, %v3487_v39  ;;  %v3507_v49 = vand.u32 4294901760, %v3493_v0 }
 0x1d1   : >> { %v956_v60 = vadd.f32 %v955_v52, %v855_v50  ;;  %v3511_v50 = vsub.f32 %v3954_v19, %v3496_v1  ;;  %v3517_v52 = vand.u32 4294901760, %v3500_v48 }
 0x1d4   : >> { %v2848_v51 = vpop.f32.mrf.mxu0 }
 0x1d5   : >> { %v1049_v57 = vadd.f32 %v2848_v51, %v962_v53  ;;  %v2881_v45 = vpop.f32.mrf.mxu1  ;;  %v3514_v51 = vand.u32 4294901760, %v3956_v17  ;;  %v3524_v53 = vand.u32 4294901760, %v3957_v16 }
 0x1d6   : >> { %v1041_v56 = vpop.f32.mrf.mxu0 }
 0x1d7   : >> { %v1042_v61 = vadd.f32 %v1041_v56, %v956_v60  ;;  %v1134_v24 = vadd.f32 %v2859_v55, %v1049_v57  ;;  %v1297_v62 = vpop.f32.mrf.mxu1  ;;  %v1920_v55 = vsub.f32 %v3493_v0, %v3507_v49  ;;  %v3532_v56 = vand.u32 4294901760, %v3511_v50 }
 0x1d8   : >> { %v3536_v57 = vsub.f32 %v3956_v17, %v3514_v51  ;;  %v3539_v60 = vand.u32 4294901760, %v3958_v15 }
 0x1d9   : >> { %v1126_v47 = vadd.f32 %v1125_v44, %v1042_v61  ;;  %v3552_v44 = vsub.f32 %v3957_v16, %v3524_v53 }
 0x1dd   : >> { %v2870_v46 = vpop.f32.mrf.mxu0 }
 0x1de   : >> { %v1223_v42 = vadd.f32 %v2870_v46, %v1134_v24  ;;  %v1921_v24 = vand.u32 4294901760, %v1920_v55  ;;  %v3561_v46 = vand.u32 4294901760, %v3536_v57  ;;  %v3633_v55 = vand.u32 4294901760, %v3964_v11 }
 0x1df   : >> { %v1216_v54 = vpop.f32.mrf.mxu0 }
 0x1e0   : >> { %v1304_v58 = vadd.f32 %v2881_v45, %v1223_v42  ;;  %v1217_v59 = vadd.f32 %v1216_v54, %v1126_v47  ;;  %v1934_v45 = vsub.f32 %v3511_v50, %v3532_v56  ;;  %v3565_v42 = vsub.f32 %v3958_v15, %v3539_v60 }
 0x1e1   : >> { %v3574_v54 = vand.u32 4294901760, %v3552_v44 }
 0x1e2   : >> { %v1308_v63 = vmax.f32 %v1304_v58, 0.0  ;;  %v1298_v25 = vadd.f32 %v1297_v62, %v1217_v59  ;;  %v1935_v58 = vand.u32 4294901760, %v1934_v45  ;;  %v3582_v59 = vand.u32 4294901760, %v3565_v42 }
 0x1e4   : >> { %v3473_v28 = vand.u32 4294901760, %v1308_v63  ;;  %v1307_v29 = vmax.f32 %v1298_v25, 0.0  ;;  %v1962_v25 = vsub.f32 %v3565_v42, %v3582_v59 }
 0x1e6   : >> { %v1426_v32 = vsub.f32 %v1308_v63, %v3473_v28  ;;  %v3476_v37 = vand.u32 4294901760, %v1307_v29  ;;  %2882 = vmatprep.subr.mxu0 %v3473_v28  ;;  %v1955_v63 = vsub.f32 %v3552_v44, %v3574_v54 }
 0x1e7   : >> { %2883 = vmatpush3.msra.mxu0 %v3473_v28 }
 0x1e8   : >> { %v1433_v33 = vsub.f32 %v1307_v29, %v3476_v37  ;;  %2884 = vmatprep.subr.mxu0 %v3476_v37  ;;  %v1427_v38 = vand.u32 4294901760, %v1426_v32  ;;  %v1963_v29 = vand.u32 4294901760, %v1962_v25 }
 0x1e9   : >> { %2885 = vmatpush3.msra.mxu0 %v3476_v37 }
 0x1ea   : >> { %2896 = vmatprep.subr.mxu0 %v1426_v32  ;;  %2887 = vmatmul.mubr.f32.vlgmr.msra.gmra.mxu0 %v3368_v43  ;;  %v1428_v40 = vsub.f32 %v1426_v32, %v1427_v38  ;;  %v1434_v41 = vand.u32 4294901760, %v1433_v33  ;;  %v3503_v43 = vand.u32 4294901760, %v3955_v18 }
 0x1eb   : >> { %2897 = vmatpush3.msra.mxu0 %v1426_v32  ;;  %2900 = vmatprep.mubr.f32.mxu0 %v3350_v30  ;;  %v3600_v32 = vand.u32 4294901760, %v3959_v14 }
 0x1ec   : >> { %2898 = vmatprep.subr.mxu0 %v1433_v33  ;;  %v1429_v2 = vand.u32 4294901760, %v1428_v40  ;;  %v1435_v3 = vsub.f32 %v1433_v33, %v1434_v41 }
 0x1ed   : >> { %2899 = vmatpush3.msra.mxu0 %v1433_v33  ;;  %v3607_v33 = vand.u32 4294901760, %v3962_v13 }
 0x1ee   : >> { %2889 = vmatprep.subr.mxu1 %v1429_v2  ;;  %2910 = vmatprep.subr.mxu0 %v1427_v38  ;;  %v1436_v30 = vand.u32 4294901760, %v1435_v3 }
 0x1ef   : >> { %2890 = vmatpush3.msra.mxu1 %v1429_v2  ;;  %2901 = vmatmul.mubr.f32.vlgmr.msra.gmra.mxu0 %v3353_v31  ;;  %v3521_v31 = vsub.f32 %v3955_v18, %v3503_v43  ;;  %v3616_v40 = vsub.f32 %v3962_v13, %v3607_v33 }
 0x1f0   : >> { %2911 = vmatpush3.msra.mxu0 %v1427_v38  ;;  %2891 = vmatprep.subr.mxu1 %v1436_v30 }
 0x1f1   : >> { %2912 = vmatprep.subr.mxu0 %v1434_v41  ;;  %2892 = vmatpush3.msra.mxu1 %v1436_v30  ;;  %v3548_v61 = vand.u32 4294901760, %v3521_v31  ;;  %v3626_v3 = vand.u32 4294901760, %v3616_v40 }
 0x1f2   : >> { %2913 = vmatpush3.msra.mxu0 %v1434_v41  ;;  %2894 = vmatmul.mubr.f32.vlgmr.msra.gmra.mxu1 %v3344_v27  ;;  %v3619_v41 = vand.u32 4294901760, %v3963_v12 }
 0x1f3   : >> { %2903 = vmatprep.subr.mxu1 %v3473_v28  ;;  %2907 = vmatprep.mubr.f32.mxu1 %v3357_v34  ;;  %v1927_v34 = vsub.f32 %v3500_v48, %v3517_v52  ;;  %v1941_v47 = vsub.f32 %v3521_v31, %v3548_v61 }
 0x1f4   : >> { %2904 = vmatpush3.msra.mxu1 %v3473_v28  ;;  %2914 = vmatprep.mubr.f32.mxu0 %v3342_v26  ;;  %v3630_v30 = vsub.f32 %v3963_v12, %v3619_v41 }
 0x1f5   : >> { %2905 = vmatprep.subr.mxu1 %v3476_v37  ;;  %2915 = vmatmul.mubr.f32.vlgmr.msra.gmra.mxu0 %v3344_v27  ;;  %v1942_v62 = vand.u32 4294901760, %v1941_v47  ;;  %v3648_v47 = vand.u32 4294901760, %v3965_v10 }
 0x1f6   : >> { %2906 = vmatpush3.msra.mxu1 %v3476_v37  ;;  %2924 = vmatprep.subr.mxu0 %v3481_v36  ;;  %v3640_v45 = vand.u32 4294901760, %v3630_v30 }
 0x1f7   : >> { %2908 = vmatmul.mubr.f32.vlgmr.msra.gmra.mxu1 %v3360_v35  ;;  %2917 = vmatprep.subr.mxu1 %v3473_v28  ;;  %v1928_v35 = vand.u32 4294901760, %v1927_v34 }
 0x1f8   : >> { %2918 = vmatpush3.msra.mxu1 %v3473_v28  ;;  %2921 = vmatprep.mubr.f32.mxu1 %v3342_v26  ;;  %v1948_v26 = vsub.f32 %v3536_v57, %v3561_v46  ;;  %v1956_v28 = vand.u32 4294901760, %v1955_v63  ;;  %3974 = vst [vmem:[#allocation26_spill] sm:$0xff] %v3640_v45  ;;  %v3657_v63 = vand.u32 4294901760, %v3967_v9 }
 0x1f9   : >> { %2919 = vmatprep.subr.mxu1 %v3476_v37  ;;  %2925 = vmatpush3.msra.mxu0 %v3481_v36 }
 0x1fa   : >> { %2920 = vmatpush3.msra.mxu1 %v3476_v37  ;;  %2926 = vmatprep.subr.mxu0 %v3487_v39  ;;  %v3604_v37 = vsub.f32 %v3959_v14, %v3600_v32 }
 0x1fb   : >> { %2922 = vmatmul.mubr.f32.vlgmr.msra.gmra.mxu1 %v3344_v27  ;;  %2959 = vmatprep.subr.mxu1 %v1921_v24  ;;  %v1949_v27 = vand.u32 4294901760, %v1948_v26  ;;  %v1983_v26 = vsub.f32 %v3630_v30, %v3640_v45 }
 0x1fc   : >> { %2960 = vmatpush3.msra.mxu1 %v1921_v24  ;;  %2927 = vmatpush3.msra.mxu0 %v3487_v39  ;;  %v3612_v38 = vand.u32 4294901760, %v3604_v37  ;;  %v1976_v24 = vsub.f32 %v3616_v40, %v3626_v3 }
 0x1fd   : >> { %2961 = vmatprep.subr.mxu1 %v1928_v35  ;;  %2928 = vmatprep.subr.mxu0 %v3496_v1  ;;  %v1984_v25 = vand.u32 4294901760, %v1983_v26 }
 0x1fe   : >> { %2962 = vmatpush3.msra.mxu1 %v1928_v35  ;;  %2929 = vmatpush3.msra.mxu0 %v3496_v1  ;;  %v1969_v2 = vsub.f32 %v3604_v37, %v3612_v38  ;;  %v3644_v35 = vsub.f32 %v3964_v11, %v3633_v55 }
 0x1ff   : >> { %2963 = vmatprep.subr.mxu1 %v1935_v58  ;;  %2930 = vmatprep.subr.mxu0 %v3503_v43 }
 0x200   : >> { %2964 = vmatpush3.msra.mxu1 %v1935_v58  ;;  %2931 = vmatpush3.msra.mxu0 %v3503_v43  ;;  %v1970_v34 = vand.u32 4294901760, %v1969_v2  ;;  %v1977_v58 = vand.u32 4294901760, %v1976_v24  ;;  %v3671_v2 = vand.u32 4294901760, %v3966_v8 }
 0x201   : >> { %2965 = vmatprep.subr.mxu1 %v1942_v62  ;;  %2932 = vmatprep.subr.mxu0 %v3514_v51 }
 0x202   : >> { %2966 = vmatpush3.msra.mxu1 %v1942_v62  ;;  %2933 = vmatpush3.msra.mxu0 %v3514_v51  ;;  %v3654_v62 = vand.u32 4294901760, %v3644_v35  ;;  %v3683_v4 = vsub.f32 %v3966_v8, %v3671_v2  ;;  %v3699_v8 = vsub.f32 %v3961_v7, %v3686_v5 }
 0x203   : >> { %2967 = vmatprep.subr.mxu1 %v1949_v27  ;;  %2934 = vmatprep.subr.mxu0 %v3524_v53 }
 0x204   : >> { %2968 = vmatpush3.msra.mxu1 %v1949_v27  ;;  %2935 = vmatpush3.msra.mxu0 %v3524_v53  ;;  %3975 = vst [vmem:[#allocation27_spill] sm:$0xff] %v3654_v62  ;;  %v3661_v27 = vsub.f32 %v3965_v10, %v3648_v47  ;;  %v3702_v10 = vand.u32 4294901760, %v3960_v6  ;;  %v3709_v13 = vand.u32 4294901760, %v3699_v8 }
 0x205   : >> { %2969 = vmatprep.subr.mxu1 %v1956_v28  ;;  %2936 = vmatprep.subr.mxu0 %v3539_v60 }
 0x206   : >> { %2970 = vmatpush3.msra.mxu1 %v1956_v28  ;;  %2937 = vmatpush3.msra.mxu0 %v3539_v60  ;;  %v1990_v28 = vsub.f32 %v3644_v35, %v3654_v62  ;;  %3979 = vst [vmem:[#allocation31_spill] sm:$0xff] %v3709_v13  ;;  %v3713_v7 = vsub.f32 %v3960_v6, %v3702_v10 }
 0x207   : >> { %2971 = vmatprep.subr.mxu1 %v1963_v29  ;;  %2938 = vmatprep.subr.mxu0 %v3600_v32 }
 0x208   : >> { %2972 = vmatpush3.msra.mxu1 %v1963_v29  ;;  %2939 = vmatpush3.msra.mxu0 %v3600_v32  ;;  %v3668_v29 = vsub.f32 %v3967_v9, %v3657_v63  ;;  %v1991_v24 = vand.u32 4294901760, %v1990_v28  ;;  %v3695_v9 = vand.u32 4294901760, %v3683_v4 }
 0x209   : >> { %2940 = vmatprep.subr.mxu0 %v3607_v33  ;;  %2973 = vmatprep.subr.mxu1 %v1970_v34 }
 0x20a   : >> { %2941 = vmatpush3.msra.mxu0 %v3607_v33  ;;  %2974 = vmatpush3.msra.mxu1 %v1970_v34  ;;  %v3675_v34 = vand.u32 4294901760, %v3661_v27  ;;  %v3679_v26 = vand.u32 4294901760, %v3668_v29  ;;  %3978 = vst [vmem:[#allocation30_spill] sm:$0xff] %v3695_v9  ;;  %v2011_v12 = vsub.f32 %v3683_v4, %v3695_v9 }
 0x20b   : >> { %2942 = vmatprep.subr.mxu0 %v3619_v41  ;;  %2975 = vmatprep.subr.mxu1 %v1977_v58 }
 0x20c   : >> { %2943 = vmatpush3.msra.mxu0 %v3619_v41  ;;  %2976 = vmatpush3.msra.mxu1 %v1977_v58  ;;  %3976 = vst [vmem:[#allocation28_spill] sm:$0xff] %v3675_v34  ;;  %3977 = vst [vmem:[#allocation29_spill] sm:$0xff] %v3679_v26  ;;  %v1997_v58 = vsub.f32 %v3661_v27, %v3675_v34  ;;  %v2004_v28 = vsub.f32 %v3668_v29, %v3679_v26 }
 0x20d   : >> { %2944 = vmatprep.subr.mxu0 %v3633_v55  ;;  %2977 = vmatprep.subr.mxu1 %v1984_v25 }
 0x20e   : >> { %2945 = vmatpush3.msra.mxu0 %v3633_v55  ;;  %2978 = vmatpush3.msra.mxu1 %v1984_v25  ;;  %v1998_v25 = vand.u32 4294901760, %v1997_v58  ;;  %v2005_v11 = vand.u32 4294901760, %v2004_v28  ;;  %v2018_v58 = vsub.f32 %v3699_v8, %v3709_v13  ;;  %v3720_v28 = vand.u32 4294901760, %v3713_v7 }
 0x20f   : >> { %2946 = vmatprep.subr.mxu0 %v3648_v47  ;;  %2979 = vmatprep.subr.mxu1 %v1991_v24 }
 0x210   : >> { %2947 = vmatpush3.msra.mxu0 %v3648_v47  ;;  %2980 = vmatpush3.msra.mxu1 %v1991_v24  ;;  %v2012_v24 = vand.u32 4294901760, %v2011_v12  ;;  %3980 = vst [vmem:[#allocation32_spill] sm:$0xff] %v3720_v28  ;;  %v2019_v6 = vand.u32 4294901760, %v2018_v58  ;;  %v2025_v14 = vsub.f32 %v3713_v7, %v3720_v28 }
 0x211   : >> { %2948 = vmatprep.subr.mxu0 %v3657_v63  ;;  %2981 = vmatprep.subr.mxu1 %v1998_v25 }
 0x212   : >> { %2949 = vmatpush3.msra.mxu0 %v3657_v63  ;;  %2982 = vmatpush3.msra.mxu1 %v1998_v25  ;;  %v2026_v25 = vand.u32 4294901760, %v2025_v14 }
 0x213   : >> { %2950 = vmatprep.subr.mxu0 %v3671_v2  ;;  %2983 = vmatprep.subr.mxu1 %v2005_v11 }
 0x214   : >> { %2951 = vmatpush3.msra.mxu0 %v3671_v2  ;;  %2984 = vmatpush3.msra.mxu1 %v2005_v11 }
 0x215   : >> { %2952 = vmatprep.subr.mxu0 %v3686_v5  ;;  %2985 = vmatprep.subr.mxu1 %v2012_v24 }
 0x216   : >> { %2953 = vmatpush3.msra.mxu0 %v3686_v5  ;;  %2986 = vmatpush3.msra.mxu1 %v2012_v24 }
 0x217   : >> { %2954 = vmatprep.subr.mxu0 %v3702_v10  ;;  %2987 = vmatprep.subr.mxu1 %v2019_v6 }
 0x218   : >> { %2955 = vmatpush3.msra.mxu0 %v3702_v10  ;;  %2988 = vmatpush3.msra.mxu1 %v2019_v6 }
 0x219   : >> { %2994 = vmatprep.subr.mxu0 %v3493_v0  ;;  %2989 = vmatprep.subr.mxu1 %v2026_v25 }
 0x21a   : >> { %2990 = vmatpush3.msra.mxu1 %v2026_v25 }
 0x21b   : >> { %3029 = vmatprep.subr.mxu1 %v3481_v36 }
 0x2aa   : >> { %v2888_v12 = vpop.f32.mrf.mxu0 }
 0x2ac   : >> { %v1382_v15 = vpop.f32.mrf.mxu0 }
 0x2af   : >> { %v2902_v16 = vpop.f32.mrf.mxu0 }
 0x2b1   : >> { %v1555_v19 = vpop.f32.mrf.mxu0 }
 0x2b2   : >> { %v2895_v17 = vpop.f32.mrf.mxu1 }
 0x2b3   : >> { %v1480_v18 = vadd.f32 %v2895_v17, %v2888_v12 }
 0x2b4   : >> { %v1473_v11 = vpop.f32.mrf.mxu1 }
 0x2b5   : >> { %v1563_v58 = vadd.f32 %v2902_v16, %v1480_v18  ;;  %v1474_v20 = vadd.f32 %v1473_v11, %v1382_v15  ;;  %v2916_v23 = vpop.f32.mrf.mxu0 }
 0x2b7   : >> { %v1556_v21 = vadd.f32 %v1555_v19, %v1474_v20  ;;  %v2909_v22 = vpop.f32.mrf.mxu1  ;;  %v1722_v13 = vpop.f32.mrf.mxu0 }
 0x2b8   : >> { %v1646_v24 = vadd.f32 %v2909_v22, %v1563_v58  ;;  %v3984_v22 = vld [vmem:[#allocation29_spill] sm:$0xff] }
 0x2b9   : >> { %v1637_v14 = vpop.f32.mrf.mxu1 }
 0x2ba   : >> { %v1729_v28 = vadd.f32 %v2916_v23, %v1646_v24  ;;  %v1638_v6 = vadd.f32 %v1637_v14, %v1556_v21  ;;  %v3985_v23 = vld [vmem:[#allocation30_spill] sm:$0xff] }
 0x2bb   : >> { %v2923_v25 = vpop.f32.mrf.mxu1 }
 0x2bc   : >> { %v1723_v9 = vadd.f32 %v1722_v13, %v1638_v6  ;;  %v1808_v26 = vadd.f32 %v2923_v25, %v1729_v28 }
 0x2bd   : >> { %v1801_v34 = vpop.f32.mrf.mxu1 }
 0x2be   : >> { %v3727_v62 = vand.u32 4294901760, %v1808_v26  ;;  %v1802_v45 = vadd.f32 %v1801_v34, %v1723_v9 }
 0x2c0   : >> { %v3730_v17 = vsub.f32 %v1808_v26, %v3727_v62  ;;  %v3732_v16 = vand.u32 4294901760, %v1802_v45 }
 0x2c2   : >> { %v1908_v15 = vand.u32 4294901760, %v3730_v17  ;;  %v1897_v18 = vsub.f32 %v1802_v45, %v3732_v16  ;;  %2991 = vmatprep.mubr.f32.mxu1 %v3732_v16 }
 0x2c3   : >> { %2992 = vmatmul.mubr.f32.vlgmr.msra.gmra.mxu1 %v3727_v62 }
 0x2c4   : >> { %3030 = vmatpush3.msra.mxu1 %v3481_v36  ;;  %v1898_v13 = vand.u32 4294901760, %v1897_v18  ;;  %v1909_v9 = vsub.f32 %v3730_v17, %v1908_v15 }
 0x2c5   : >> { %3031 = vmatprep.subr.mxu1 %v3487_v39 }
 0x2c6   : >> { %3032 = vmatpush3.msra.mxu1 %v3487_v39  ;;  %3061 = vmatprep.mubr.f32.mxu1 %v1898_v13  ;;  %v1899_v19 = vsub.f32 %v1897_v18, %v1898_v13  ;;  %v1910_v21 = vand.u32 4294901760, %v1909_v9 }
 0x2c7   : >> { %3033 = vmatprep.subr.mxu1 %v3496_v1 }
 0x2c8   : >> { %3034 = vmatpush3.msra.mxu1 %v3496_v1  ;;  %v1900_v20 = vand.u32 4294901760, %v1899_v19 }
 0x2c9   : >> { %3035 = vmatprep.subr.mxu1 %v3503_v43 }
 0x2ca   : >> { %3036 = vmatpush3.msra.mxu1 %v3503_v43  ;;  %2956 = vmatprep.mubr.f32.mxu0 %v1900_v20 }
 0x2cb   : >> { %3037 = vmatprep.subr.mxu1 %v3514_v51  ;;  %2957 = vmatmul.mubr.f32.vlgmr.msra.gmra.mxu0 %v1910_v21 }
 0x2cc   : >> { %2995 = vmatpush3.msra.mxu0 %v3493_v0  ;;  %3038 = vmatpush3.msra.mxu1 %v3514_v51 }
 0x2cd   : >> { %2996 = vmatprep.subr.mxu0 %v3500_v48  ;;  %3026 = vmatprep.mubr.f32.mxu0 %v1897_v18 }
 0x2ce   : >> { %3039 = vmatprep.subr.mxu1 %v3524_v53  ;;  %2997 = vmatpush3.msra.mxu0 %v3500_v48 }
 0x2cf   : >> { %3040 = vmatpush3.msra.mxu1 %v3524_v53  ;;  %2998 = vmatprep.subr.mxu0 %v3511_v50 }
 0x2d0   : >> { %3041 = vmatprep.subr.mxu1 %v3539_v60  ;;  %2999 = vmatpush3.msra.mxu0 %v3511_v50 }
 0x2d1   : >> { %3042 = vmatpush3.msra.mxu1 %v3539_v60  ;;  %3000 = vmatprep.subr.mxu0 %v3521_v31 }
 0x2d2   : >> { %3043 = vmatprep.subr.mxu1 %v3600_v32  ;;  %3001 = vmatpush3.msra.mxu0 %v3521_v31 }
 0x2d3   : >> { %3044 = vmatpush3.msra.mxu1 %v3600_v32  ;;  %3002 = vmatprep.subr.mxu0 %v3536_v57 }
 0x2d4   : >> { %3045 = vmatprep.subr.mxu1 %v3607_v33  ;;  %3003 = vmatpush3.msra.mxu0 %v3536_v57 }
 0x2d5   : >> { %3046 = vmatpush3.msra.mxu1 %v3607_v33  ;;  %3004 = vmatprep.subr.mxu0 %v3552_v44 }
 0x2d6   : >> { %3047 = vmatprep.subr.mxu1 %v3619_v41  ;;  %3005 = vmatpush3.msra.mxu0 %v3552_v44 }
 0x2d7   : >> { %3048 = vmatpush3.msra.mxu1 %v3619_v41  ;;  %3006 = vmatprep.subr.mxu0 %v3565_v42 }
 0x2d8   : >> { %3049 = vmatprep.subr.mxu1 %v3633_v55  ;;  %3007 = vmatpush3.msra.mxu0 %v3565_v42 }
 0x2d9   : >> { %3050 = vmatpush3.msra.mxu1 %v3633_v55  ;;  %3008 = vmatprep.subr.mxu0 %v3604_v37 }
 0x2da   : >> { %3051 = vmatprep.subr.mxu1 %v3648_v47  ;;  %3009 = vmatpush3.msra.mxu0 %v3604_v37 }
 0x2db   : >> { %3052 = vmatpush3.msra.mxu1 %v3648_v47  ;;  %3010 = vmatprep.subr.mxu0 %v3616_v40 }
 0x2dc   : >> { %3053 = vmatprep.subr.mxu1 %v3657_v63  ;;  %3011 = vmatpush3.msra.mxu0 %v3616_v40 }
 0x2dd   : >> { %3054 = vmatpush3.msra.mxu1 %v3657_v63  ;;  %3012 = vmatprep.subr.mxu0 %v3630_v30 }
 0x2de   : >> { %3055 = vmatprep.subr.mxu1 %v3671_v2  ;;  %3013 = vmatpush3.msra.mxu0 %v3630_v30 }
 0x2df   : >> { %3056 = vmatpush3.msra.mxu1 %v3671_v2  ;;  %3014 = vmatprep.subr.mxu0 %v3644_v35 }
 0x2e0   : >> { %3057 = vmatprep.subr.mxu1 %v3686_v5  ;;  %3015 = vmatpush3.msra.mxu0 %v3644_v35 }
 0x2e1   : >> { %3058 = vmatpush3.msra.mxu1 %v3686_v5  ;;  %3016 = vmatprep.subr.mxu0 %v3661_v27 }
 0x2e2   : >> { %3059 = vmatprep.subr.mxu1 %v3702_v10  ;;  %3017 = vmatpush3.msra.mxu0 %v3661_v27 }
 0x2e3   : >> { %3060 = vmatpush3.msra.mxu1 %v3702_v10  ;;  %3018 = vmatprep.subr.mxu0 %v3668_v29 }
 0x2e4   : >> { %3062 = vmatmul.mubr.f32.vlgmr.msra.gmra.mxu1 %v1908_v15  ;;  %3099 = vmatprep.subr.mxu1 %v3481_v36 }
 0x2e5   : >> { %3019 = vmatpush3.msra.mxu0 %v3668_v29  ;;  %3100 = vmatpush3.msra.mxu1 %v3481_v36  ;;  %v3986_v36 = vld [vmem:[#allocation31_spill] sm:$0xff] }
 0x2e6   : >> { %3131 = vmatprep.mubr.f32.mxu1 %v3732_v16  ;;  %3020 = vmatprep.subr.mxu0 %v3683_v4 }
 0x2e7   : >> { %3101 = vmatprep.subr.mxu1 %v3487_v39  ;;  %3021 = vmatpush3.msra.mxu0 %v3683_v4  ;;  %v3981_v4 = vld [vmem:[#allocation26_spill] sm:$0xff] }
 0x2e8   : >> { %3102 = vmatpush3.msra.mxu1 %v3487_v39  ;;  %3022 = vmatprep.subr.mxu0 %v3699_v8 }
 0x2e9   : >> { %3103 = vmatprep.subr.mxu1 %v3496_v1  ;;  %3023 = vmatpush3.msra.mxu0 %v3699_v8  ;;  %v3983_v8 = vld [vmem:[#allocation28_spill] sm:$0xff] }
 0x2ea   : >> { %3104 = vmatpush3.msra.mxu1 %v3496_v1  ;;  %3024 = vmatprep.subr.mxu0 %v3713_v7  ;;  %v3988_v1 = vld [vmem:[#allocation25_spill] sm:$0xff] }
 0x2eb   : >> { %3105 = vmatprep.subr.mxu1 %v3503_v43  ;;  %3025 = vmatpush3.msra.mxu0 %v3713_v7  ;;  %v3982_v7 = vld [vmem:[#allocation27_spill] sm:$0xff] }
 0x2ec   : >> { %3106 = vmatpush3.msra.mxu1 %v3503_v43  ;;  %3027 = vmatmul.mubr.f32.vlgmr.msra.gmra.mxu0 %v3730_v17 }
 0x2ed   : >> { %3064 = vmatprep.subr.mxu0 %v3507_v49  ;;  %3107 = vmatprep.subr.mxu1 %v3514_v51 }
 0x2ee   : >> { %3065 = vmatpush3.msra.mxu0 %v3507_v49  ;;  %3096 = vmatprep.mubr.f32.mxu0 %v3732_v16 }
 0x2ef   : >> { %3108 = vmatpush3.msra.mxu1 %v3514_v51  ;;  %3066 = vmatprep.subr.mxu0 %v3517_v52 }
 0x2f0   : >> { %3109 = vmatprep.subr.mxu1 %v3524_v53  ;;  %3067 = vmatpush3.msra.mxu0 %v3517_v52 }
 0x2f1   : >> { %3110 = vmatpush3.msra.mxu1 %v3524_v53  ;;  %3068 = vmatprep.subr.mxu0 %v3532_v56 }
 0x2f2   : >> { %3111 = vmatprep.subr.mxu1 %v3539_v60  ;;  %3069 = vmatpush3.msra.mxu0 %v3532_v56 }
 0x2f3   : >> { %3112 = vmatpush3.msra.mxu1 %v3539_v60  ;;  %3070 = vmatprep.subr.mxu0 %v3548_v61 }
 0x2f4   : >> { %3113 = vmatprep.subr.mxu1 %v3600_v32  ;;  %3071 = vmatpush3.msra.mxu0 %v3548_v61 }
 0x2f5   : >> { %3114 = vmatpush3.msra.mxu1 %v3600_v32  ;;  %3072 = vmatprep.subr.mxu0 %v3561_v46 }
 0x2f6   : >> { %3115 = vmatprep.subr.mxu1 %v3607_v33  ;;  %3073 = vmatpush3.msra.mxu0 %v3561_v46 }
 0x2f7   : >> { %3116 = vmatpush3.msra.mxu1 %v3607_v33  ;;  %3074 = vmatprep.subr.mxu0 %v3574_v54 }
 0x2f8   : >> { %3117 = vmatprep.subr.mxu1 %v3619_v41  ;;  %3075 = vmatpush3.msra.mxu0 %v3574_v54 }
 0x2f9   : >> { %3118 = vmatpush3.msra.mxu1 %v3619_v41  ;;  %3076 = vmatprep.subr.mxu0 %v3582_v59 }
 0x2fa   : >> { %3119 = vmatprep.subr.mxu1 %v3633_v55  ;;  %3077 = vmatpush3.msra.mxu0 %v3582_v59 }
 0x2fb   : >> { %3120 = vmatpush3.msra.mxu1 %v3633_v55  ;;  %3078 = vmatprep.subr.mxu0 %v3612_v38 }
 0x2fc   : >> { %3121 = vmatprep.subr.mxu1 %v3648_v47  ;;  %3079 = vmatpush3.msra.mxu0 %v3612_v38 }
 0x2fd   : >> { %3122 = vmatpush3.msra.mxu1 %v3648_v47  ;;  %3080 = vmatprep.subr.mxu0 %v3626_v3 }
 0x2fe   : >> { %3123 = vmatprep.subr.mxu1 %v3657_v63  ;;  %3081 = vmatpush3.msra.mxu0 %v3626_v3 }
 0x2ff   : >> { %3124 = vmatpush3.msra.mxu1 %v3657_v63  ;;  %3082 = vmatprep.subr.mxu0 %v3981_v4 }
 0x300   : >> { %3125 = vmatprep.subr.mxu1 %v3671_v2  ;;  %3083 = vmatpush3.msra.mxu0 %v3981_v4 }
 0x301   : >> { %3126 = vmatpush3.msra.mxu1 %v3671_v2  ;;  %3084 = vmatprep.subr.mxu0 %v3982_v7 }
 0x302   : >> { %3127 = vmatprep.subr.mxu1 %v3686_v5  ;;  %3085 = vmatpush3.msra.mxu0 %v3982_v7 }
 0x303   : >> { %3128 = vmatpush3.msra.mxu1 %v3686_v5  ;;  %3086 = vmatprep.subr.mxu0 %v3983_v8  ;;  %v3987_v5 = vld [vmem:[#allocation32_spill] sm:$0xff] }
 0x304   : >> { %3129 = vmatprep.subr.mxu1 %v3702_v10  ;;  %3087 = vmatpush3.msra.mxu0 %v3983_v8 }
 0x305   : >> { %3130 = vmatpush3.msra.mxu1 %v3702_v10  ;;  %3088 = vmatprep.subr.mxu0 %v3984_v22 }
 0x306   : >> { %3132 = vmatmul.mubr.f32.vlgmr.msra.gmra.mxu1 %v3727_v62  ;;  %3089 = vmatpush3.msra.mxu0 %v3984_v22 }
 0x307   : >> { %3090 = vmatprep.subr.mxu0 %v3985_v23 }
 0x308   : >> { %3091 = vmatpush3.msra.mxu0 %v3985_v23 }
 0x309   : >> { %3092 = vmatprep.subr.mxu0 %v3986_v36 }
 0x30a   : >> { %3093 = vmatpush3.msra.mxu0 %v3986_v36 }
 0x30b   : >> { %3094 = vmatprep.subr.mxu0 %v3987_v5 }
 0x30c   : >> { %3095 = vmatpush3.msra.mxu0 %v3987_v5 }
 0x30d   : >> { %3097 = vmatmul.mubr.f32.vlgmr.msra.gmra.mxu0 %v3727_v62 }
 0x383   : >> { %v2993_v39 = vpop.f32.mrf.mxu1 }
 0x385   : >> { %v2063_v50 = vpop.f32.mrf.mxu1 }
 0x38b   : >> { %v2958_v10 = vpop.f32.mrf.mxu0 }
 0x38c   : >> { %v1913_v48 = vadd.f32 %v2958_v10, %v3988_v1 }
 0x38d   : >> { %v1902_v0 = vpop.f32.mrf.mxu0 }
 0x38e   : >> { %v1903_v49 = vadd.f32 %v3988_v1, %v1902_v0  ;;  %v2070_v51 = vadd.f32 %v2993_v39, %v1913_v48 }
 0x390   : >> { %v2064_v56 = vadd.f32 %v2063_v50, %v1903_v49 }
 0x3a4   : >> { %v3063_v52 = vpop.f32.mrf.mxu1 }
 0x3a6   : >> { %v2269_v60 = vpop.f32.mrf.mxu1 }
 0x3ac   : >> { %v3028_v43 = vpop.f32.mrf.mxu0 }
 0x3ad   : >> { %v2181_v53 = vadd.f32 %v3028_v43, %v2070_v51 }
 0x3ae   : >> { %v2173_v31 = vpop.f32.mrf.mxu0 }
 0x3af   : >> { %v2174_v57 = vadd.f32 %v2173_v31, %v2064_v56  ;;  %v2278_v61 = vadd.f32 %v3063_v52, %v2181_v53 }
 0x3b1   : >> { %v2270_v54 = vadd.f32 %v2269_v60, %v2174_v57 }
 0x3c6   : >> { %v3133_v44 = vpop.f32.mrf.mxu1 }
 0x3c8   : >> { %v2489_v33 = vpop.f32.mrf.mxu1 }
 0x3cd   : >> { %v3098_v46 = vpop.f32.mrf.mxu0 }
 0x3ce   : >> { %v2403_v42 = vadd.f32 %v3098_v46, %v2278_v61 }
 0x3cf   : >> { %v2396_v59 = vpop.f32.mrf.mxu0 }
 0x3d0   : >> { %v2496_v32 = vadd.f32 %v3133_v44, %v2403_v42  ;;  %v2397_v37 = vadd.f32 %v2396_v59, %v2270_v54  ;;  %253 = sbr.rel (!%p251_p4) target bundleno = 24 (0x18), region = 79 }
 0x3d2   : >> { %2501 = vst [vmem:[%s2499_s6 + $0x8] sm:$0xff] %v2496_v32  ;;  %v2490_v38 = vadd.f32 %v2489_v33, %v2397_v37 }
 0x3d4   : >> { %2500 = vst [vmem:[%s2499_s6] sm:$0xff] %v2490_v38 }
 0x3d5 PF: > { %s15_s18 = sadd.s32 1, %s3160_s18  }
 0x3d6   : > { %p12_p5 = scmp.ge.s32.totalorder %s15_s18, 4  }
 0x3d8   :  { %14 = sbr.rel (!%p12_p5) target bundleno = 1 (0x1), region = 90 }

// kernel: gcn_lstm_core.7
= control target key start
LH: loop header
LB: loop body
LE: loop exit
PB: predicated region body
PF: predicated region fallthrough
CT: control target
= control target key end

     0   :  { %s4673_s0 = inlined_call_operand.vmem [shape: f32[16,16], index: 0, kind: input, shape index: {}]   ;;  %s4674_s1 = inlined_call_operand.vmem [shape: f32[2,8,16,128], index: 1, kind: input, shape index: {}]   ;;  %s4675_s2 = inlined_call_operand.vmem [shape: f32[2,16,32], index: 2, kind: input, shape index: {}]   ;;  %s4676_s3 = inlined_call_operand.vmem [shape: f32[2,16,32], index: 3, kind: input, shape index: {}]   ;;  %s4677_s4 = inlined_call_operand.vmem [shape: f32[32,128], index: 4, kind: input, shape index: {}]   ;;  %s4678_s5 = inlined_call_operand.vmem [shape: f32[128,128], index: 5, kind: input, shape index: {}]   ;;  %s4679_s6 = inlined_call_operand.vmem [shape: f32[2,128], index: 6, kind: input, shape index: {}]   ;;  %s4680_s7 = inlined_call_operand.vmem [shape: f32[2,128], index: 7, kind: input, shape index: {}]   ;;  %s4681_s8 = inlined_call_operand.hbm [shape: f32[2,8,16,32], index: 8, kind: output, shape index: {0}]   ;;  %s4682_s9 = inlined_call_operand.hbm [shape: f32[2,8,16,32], index: 9, kind: output, shape index: {1}]  }
   0x1   :  { %4723 = sst [smem:[#allocation46_spill]] %s4673_s0 }
   0x2   :  { %4724 = sst [smem:[#allocation47_spill]] %s4677_s4 }
   0x3   :  { %15 = vsyncpa [#allocation5], 0 }
   0x4   :  { %17 = vsyncpa [#allocation5 + $0x1], 0 }
   0x5   :  { %18 = vsyncpa [#allocation7], 0 }
   0x6   :  { %20 = vsyncpa [#allocation7 + $0x1], 0  ;;  %s3788_s30 = smov 0   ;;  %s3790_s10 = smov 0  }
   0x7   :  { %s3792_s11 = smov 0   ;;  %s3794_s12 = smov 0  }
   0x8 LB: > { %s3809_s13 = sadd.s32 4294967295, %s3725_s12   ;;  %s2964_s14 = sadd.s32 4294967294, %s3725_s12   ;;  %s3725_s12 = sphi %s3794_s12, %s4806_s12   ;;  %s3721_s11 = sphi %s3792_s11, %s4805_s11   ;;  %s3717_s10 = sphi %s3790_s10, %s4804_s10   ;;  %s3713_s30 = sphi %s3788_s30, %s4803_s30  }
   0x9   : > { %s3813_s15 = sadd.s32 1, %s3725_s12   ;;  %s216_s16 = sadd.s32 1, %s3721_s11 }
   0xa   : > { %s213_s17 = ssub.s32 %s3725_s12, %s3813_s15  ;;  %p226_p0 = scmp.ne.s32.totalorder %s3721_s11, %s3717_s10 }
   0xb   : > { %p214_p1 = scmp.eq.s32.totalorder %s213_s17, 0  ;;  %p227_p2 = scmp.eq.s32.totalorder %s3809_s13, 1 }
   0xc   : > { %p232_p3 = scmp.ne.s32.totalorder %s3717_s10, %s3713_s30  ;;  %p233_p4 = scmp.eq.s32.totalorder %s2964_s14, 1 }
   0xd   : > { %s3824_s18 = scalar_select %p214_p1, %s3721_s11, %s216_s16  }
   0xe   : > { %p3826_p5 = por %p227_p2, %p226_p0  ;;  %p3830_p6 = por %p233_p4, %p232_p3 }
   0xf   : > { %4725 = sst [smem:[#allocation10_spill]] %s3824_s18  ;;  %p2967_p7 = scmp.ge.s32.totalorder %s3725_s12, 1 }
  0x10   : > { %p316_p8 = scmp.lt.s32.totalorder %s3725_s12, 3 }
  0x12   : > { %p317_p9 = pnand %p2967_p7, %p316_p8 }
  0x14   : > { %320 = sbr.rel (%p317_p9) target bundleno = 1677 (0x68d), region = 52 }
  0x19   : > { %s3837_s21 = sand.u32 1, %s3717_s10   ;;  %p367_p10 = scmp.lt.s32.totalorder %s3809_s13, 1  ;;  %v3874_v6 = vld [vmem:[%s4678_s5] sm:$0xff]  ;;  %v3879_v7 = vld [vmem:[%s4678_s5 + $0x8] sm:$0xff]  ;;  %v3884_v8 = vld [vmem:[%s4678_s5 + $0x10] sm:$0xff]  ;;  %vm410_vm0 = vcmask 261120  }
  0x1a   : > { %s4728_s0 = sld [smem:[#allocation46_spill]]  ;;  %4736 = vst [vmem:[#allocation17_spill] sm:$0xff] %v3874_v6  ;;  %4737 = vst [vmem:[#allocation18_spill] sm:$0xff] %v3879_v7  ;;  %v3890_v9 = vld [vmem:[%s4678_s5 + $0x18] sm:$0xff]  ;;  %v3895_v10 = vld [vmem:[%s4678_s5 + $0x20] sm:$0xff] }
  0x1b   : > { %s4731_s4 = sld [smem:[#allocation47_spill]]  ;;  %4738 = vst [vmem:[#allocation19_spill] sm:$0xff] %v3884_v8  ;;  %4739 = vst [vmem:[#allocation20_spill] sm:$0xff] %v3890_v9  ;;  %v3900_v11 = vld [vmem:[%s4678_s5 + $0x28] sm:$0xff]  ;;  %v3905_v12 = vld [vmem:[%s4678_s5 + $0x30] sm:$0xff] }
  0x1c   : > { %s368_s16 = scalar_select %p367_p10, %s3809_s13, 1  ;;  %4740 = vst [vmem:[#allocation21_spill] sm:$0xff] %v3895_v10  ;;  %4741 = vst [vmem:[#allocation22_spill] sm:$0xff] %v3900_v11  ;;  %v3910_v13 = vld [vmem:[%s4678_s5 + $0x38] sm:$0xff]  ;;  %v3915_v14 = vld [vmem:[%s4678_s5 + $0x40] sm:$0xff] }
  0x1d   : > { %4742 = vst [vmem:[#allocation23_spill] sm:$0xff] %v3905_v12  ;;  %4743 = vst [vmem:[#allocation24_spill] sm:$0xff] %v3910_v13  ;;  %v3920_v15 = vld [vmem:[%s4678_s5 + $0x48] sm:$0xff]  ;;  %v3925_v16 = vld [vmem:[%s4678_s5 + $0x50] sm:$0xff] }
  0x1e   : > { %4744 = vst [vmem:[#allocation25_spill] sm:$0xff] %v3915_v14  ;;  %s2993_s23 = sshll.u32 %s368_s16, 7  ;;  %s2994_s24 = sshll.u32 %s368_s16, 4  ;;  %4745 = vst [vmem:[#allocation26_spill] sm:$0xff] %v3920_v15  ;;  %v3930_v17 = vld [vmem:[%s4678_s5 + $0x58] sm:$0xff]  ;;  %v3943_v18 = vld [vmem:[%s4678_s5 + $0x60] sm:$0xff] }
  0x1f   : > { %4746 = vst [vmem:[#allocation27_spill] sm:$0xff] %v3925_v16  ;;  %4747 = vst [vmem:[#allocation28_spill] sm:$0xff] %v3930_v17  ;;  %s376_s25 = scalar_lea.vmem %s4675_s2, %s2994_s24  ;;  %v3948_v19 = vld [vmem:[%s4678_s5 + $0x68] sm:$0xff]  ;;  %v3953_v20 = vld [vmem:[%s4678_s5 + $0x70] sm:$0xff]  ;;  %s381_s29 = scalar_lea.vmem %s4676_s3, %s2994_s24 }
  0x20   : > { %v3843_v0 = vld [vmem:[%s4728_s0] sm:$0xff]  ;;  %v3848_v1 = vld [vmem:[%s4728_s0 + $0x8] sm:$0xff]  ;;  %s3935_s0 = scalar_lea.vmem %s4674_s1, %s2993_s23  ;;  %4748 = vst [vmem:[#allocation29_spill] sm:$0xff] %v3943_v18  ;;  %4749 = vst [vmem:[#allocation30_spill] sm:$0xff] %v3948_v19  ;;  %s4756_s24 = sshll.u32 %s3837_s21, 7 }
  0x21   : > { %4729 = vst [vmem:[#allocation11_spill] sm:$0xff] %v3843_v0  ;;  %4730 = vst [vmem:[#allocation12_spill] sm:$0xff] %v3848_v1  ;;  %v3853_v2 = vld [vmem:[%s4731_s4] sm:$0xff]  ;;  %v3859_v3 = vld [vmem:[%s4731_s4 + $0x8] sm:$0xff]  ;;  %s3989_s18 = scalar_lea.vmem [#allocation4], %s4756_s24  ;;  %s4757_s17 = smov %s4756_s24 }
  0x22   : > { %4732 = vst [vmem:[#allocation13_spill] sm:$0xff] %v3853_v2  ;;  %4733 = vst [vmem:[#allocation14_spill] sm:$0xff] %v3859_v3  ;;  %v3864_v4 = vld [vmem:[%s4731_s4 + $0x10] sm:$0xff]  ;;  %v3869_v5 = vld [vmem:[%s4731_s4 + $0x18] sm:$0xff]  ;;  %s3993_s22 = scalar_lea.vmem [#allocation6], %s4757_s17  ;;  %s3995_s16 = smov 0  }
  0x23   : > { %4734 = vst [vmem:[#allocation15_spill] sm:$0xff] %v3864_v4  ;;  %4735 = vst [vmem:[#allocation16_spill] sm:$0xff] %v3869_v5  ;;  %v3958_v21 = vld [vmem:[%s4678_s5 + $0x78] sm:$0xff]  ;;  %v3963_v22 = vld [vmem:[%s4679_s6] ss:$0 sm:$0xff] }
  0x24   : > { %4750 = vst [vmem:[#allocation31_spill] sm:$0xff] %v3953_v20  ;;  %4751 = vst [vmem:[#allocation32_spill] sm:$0xff] %v3958_v21  ;;  %v3968_v23 = vld [vmem:[%s4679_s6 + $0x1] ss:$0 sm:$0xff]  ;;  %v3976_v24 = vld [vmem:[%s4680_s7] ss:$0 sm:$0xff] }
  0x25   : > { %4752 = vst [vmem:[#allocation33_spill] sm:$0xff] %v3963_v22  ;;  %4753 = vst [vmem:[#allocation34_spill] sm:$0xff] %v3968_v23  ;;  %v3981_v25 = vld [vmem:[%s4680_s7 + $0x1] ss:$0 sm:$0xff]  ;;  %v409_v27 = vld [vmem:[%s376_s25 + $0x8] sm:$0xff] }
  0x26   : > { %4754 = vst [vmem:[#allocation35_spill] sm:$0xff] %v3976_v24  ;;  %4755 = vst [vmem:[#allocation36_spill] sm:$0xff] %v3981_v25  ;;  %v408_v26 = vld [vmem:[%s376_s25] sm:$0xff]  ;;  %v414_v29 = vld [vmem:[%s381_s29 + $0x8] sm:$0xff] }
  0x27   : > { %411 = vst.msk [vmem:[#allocation2] sm:$0xff] %vm410_vm0, %v408_v26  ;;  %v413_v28 = vld [vmem:[%s381_s29] sm:$0xff]  ;;  %412 = vst.msk [vmem:[#allocation2 + $0x8] sm:$0xff] %vm410_vm0, %v409_v27 }
  0x28   : > { %415 = vst.msk [vmem:[#allocation3] sm:$0xff] %vm410_vm0, %v413_v28  ;;  %416 = vst.msk [vmem:[#allocation3 + $0x8] sm:$0xff] %vm410_vm0, %v414_v29 }
  0x29 LB: >> { %v4761_v19 = vld [vmem:[#allocation30_spill] sm:$0xff]  ;;  %v4762_v18 = vld [vmem:[#allocation29_spill] sm:$0xff]  ;;  %v4763_v17 = vld [vmem:[#allocation28_spill] sm:$0xff]  ;;  %vm427_vm1 = vcmask 130048   ;;  %s3731_s25 = smov 32   ;;  %s4544_s26 = sshll.u32 %s3729_s16, 4  ;;  %s3729_s16 = sphi %s3995_s16, %s422_s16  }
  0x2a   : >> { %v4764_v16 = vld [vmem:[#allocation27_spill] sm:$0xff]  ;;  %v4765_v6 = vld [vmem:[#allocation17_spill] sm:$0xff]  ;;  %v4766_v7 = vld [vmem:[#allocation18_spill] sm:$0xff]  ;;  %s2667_s27 = scalar_lea.vmem %s3935_s0, %s4544_s26  ;;  %s3732_s29 = smov 64  }
  0x2b   : >> { %v4759_v21 = vld [vmem:[#allocation32_spill] sm:$0xff]  ;;  %v4760_v20 = vld [vmem:[#allocation31_spill] sm:$0xff]  ;;  %v4767_v15 = vld [vmem:[#allocation26_spill] sm:$0xff]  ;;  %s3733_s28 = smov 96   ;;  %s2794_s14 = scalar_lea.vmem %s3989_s18, %s4544_s26 [#allocation4] }
  0x2c   : >> { %v4758_v22 = vld [vmem:[#allocation33_spill] sm:$0xff]  ;;  %v4769_v13 = vld [vmem:[#allocation24_spill] sm:$0xff]  ;;  %v4770_v12 = vld [vmem:[#allocation23_spill] sm:$0xff]  ;;  %s2797_s23 = scalar_lea.vmem %s3993_s22, %s4544_s26 [#allocation6]  ;;  %s422_s16 = sadd.s32 1, %s3729_s16  }
  0x2d   : >> { %v4768_v14 = vld [vmem:[#allocation25_spill] sm:$0xff]  ;;  %v4771_v8 = vld [vmem:[#allocation19_spill] sm:$0xff]  ;;  %v4772_v11 = vld [vmem:[#allocation22_spill] sm:$0xff]  ;;  %p419_p11 = scmp.ge.s32.totalorder %s422_s16, 8  }
  0x2e   : >> { %v4773_v10 = vld [vmem:[#allocation21_spill] sm:$0xff]  ;;  %v4774_v9 = vld [vmem:[#allocation20_spill] sm:$0xff]  ;;  %v4776_v4 = vld [vmem:[#allocation15_spill] sm:$0xff]  ;;  %s2996_s4 = sshll.u32 (%p419_p11), %s3809_s13, 11  ;;  %s2819_s26 = sshll.u32 (%p419_p11), %s3989_s18, 4  ;;  %s4594_s26 = int_to_ptr.vmem [resolvable:$true] %s2819_s26 }
  0x2f   : >> { %v4775_v5 = vld [vmem:[#allocation16_spill] sm:$0xff]  ;;  %v4777_v3 = vld [vmem:[#allocation14_spill] sm:$0xff]  ;;  %v4778_v2 = vld [vmem:[#allocation13_spill] sm:$0xff]  ;;  %v4046_v56 = vand.u32 4294901760, %v4776_v4  ;;  %s2801_s16 = scalar_lea.sflag (%p419_p11), [#allocation5], %s3837_s21  ;;  %s3734_s0 = smov (%p419_p11), [#allocation4]  }
  0x30   : >> { %v424_v30 = vld [vmem:[#allocation2 + $0x8] sm:$0xff]  ;;  %v423_v31 = vld [vmem:[#allocation2] sm:$0xff]  ;;  %v4039_v54 = vand.u32 4294901760, %v4775_v5  ;;  %v4058_v59 = vand.u32 4294901760, %v4777_v3  ;;  %v4072_v63 = vand.u32 4294901760, %v4778_v2 }
  0x31   : >> { %v463_v32 = vand.u32 4294901760, %v424_v30  ;;  %v466_v33 = vand.u32 4294901760, %v423_v31  ;;  %v4779_v0 = vld [vmem:[#allocation11_spill] sm:$0xff]  ;;  %v4780_v1 = vld [vmem:[#allocation12_spill] sm:$0xff]  ;;  %v4055_v58 = vsub.f32 %v4776_v4, %v4046_v56  ;;  %v4330_v4 = vand.u32 4294901760, %v4771_v8 }
  0x32   : >> { %v429_v34 = vsel %vm427_vm1, %v4779_v0, 0  ;;  %v432_v35 = vsel %vm427_vm1, %v4780_v1, 0  ;;  %v4043_v55 = vsub.f32 %v4775_v5, %v4039_v54  ;;  %v4069_v62 = vsub.f32 %v4777_v3, %v4058_v59 }
  0x33   : >> { %v4002_v36 = vand.u32 4294901760, %v429_v34  ;;  %v4004_v37 = vand.u32 4294901760, %v432_v35  ;;  %3190 = vmatprep.subr.mxu0 %v463_v32  ;;  %v551_v38 = vsub.f32 %v424_v30, %v463_v32  ;;  %v558_v39 = vsub.f32 %v423_v31, %v466_v33 }
  0x34   : >> { %3191 = vmatpush3.msra.mxu0 %v463_v32  ;;  %v4051_v57 = vand.u32 4294901760, %v4043_v55  ;;  %v4065_v61 = vand.u32 4294901760, %v4055_v58  ;;  %v4079_v28 = vand.u32 4294901760, %v4069_v62  ;;  %v4083_v29 = vsub.f32 %v4778_v2, %v4072_v63 }
  0x35   : >> { %v4007_v40 = vsub.f32 %v429_v34, %v4002_v36  ;;  %v4010_v41 = vsub.f32 %v432_v35, %v4004_v37  ;;  %3201 = vmatprep.mubr.f32.mxu1 %v4002_v36  ;;  %3192 = vmatprep.subr.mxu0 %v466_v33  ;;  %v552_v42 = vand.u32 4294901760, %v551_v38  ;;  %v559_v43 = vand.u32 4294901760, %v558_v39 }
  0x36   : >> { %3193 = vmatpush3.msra.mxu0 %v466_v33  ;;  %v1063_v60 = vsub.f32 %v4043_v55, %v4051_v57  ;;  %v1070_v27 = vsub.f32 %v4055_v58, %v4065_v61  ;;  %v1077_v31 = vsub.f32 %v4069_v62, %v4079_v28 }
  0x37   : >> { %v4014_v44 = vand.u32 4294901760, %v4007_v40  ;;  %v4017_v45 = vand.u32 4294901760, %v4010_v41  ;;  %v553_v46 = vsub.f32 %v551_v38, %v552_v42  ;;  %v560_v47 = vsub.f32 %v558_v39, %v559_v43  ;;  %3204 = vmatprep.subr.mxu0 %v551_v38 }
  0x38   : >> { %v1064_v26 = vand.u32 4294901760, %v1063_v60  ;;  %v1071_v30 = vand.u32 4294901760, %v1070_v27 }
  0x39   : >> { %v504_v48 = vsub.f32 %v4007_v40, %v4014_v44  ;;  %v514_v49 = vsub.f32 %v4010_v41, %v4017_v45  ;;  %v554_v50 = vand.u32 4294901760, %v553_v46  ;;  %v561_v51 = vand.u32 4294901760, %v560_v47 }
  0x3b   : >> { %v4023_v52 = vand.u32 4294901760, %v504_v48  ;;  %v4025_v53 = vand.u32 4294901760, %v514_v49  ;;  %3197 = vmatprep.subr.mxu1 %v554_v50 }
  0x3c   : >> { %3198 = vmatpush3.msra.mxu1 %v554_v50 }
  0x3d   : >> { %3194 = vmatprep.mubr.f32.mxu0 %v4023_v52  ;;  %3199 = vmatprep.subr.mxu1 %v561_v51 }
  0x3e   : >> { %3195 = vmatmul.mubr.f32.vlgmr.msra.gmra.mxu0 %v4025_v53  ;;  %3200 = vmatpush3.msra.mxu1 %v561_v51 }
  0x3f   : >> { %3205 = vmatpush3.msra.mxu0 %v551_v38  ;;  %3202 = vmatmul.mubr.f32.vlgmr.msra.gmra.mxu1 %v4004_v37 }
  0x40   : >> { %3206 = vmatprep.subr.mxu0 %v558_v39  ;;  %3211 = vmatprep.subr.mxu1 %v463_v32 }
  0x41   : >> { %3207 = vmatpush3.msra.mxu0 %v558_v39  ;;  %3208 = vmatprep.mubr.f32.mxu0 %v4007_v40 }
  0x42   : >> { %3212 = vmatpush3.msra.mxu1 %v463_v32  ;;  %3209 = vmatmul.mubr.f32.vlgmr.msra.gmra.mxu0 %v4010_v41 }
  0x43   : >> { %3213 = vmatprep.subr.mxu1 %v466_v33  ;;  %3218 = vmatprep.subr.mxu0 %v552_v42 }
  0x44   : >> { %3214 = vmatpush3.msra.mxu1 %v466_v33  ;;  %3215 = vmatprep.mubr.f32.mxu1 %v4014_v44 }
  0x45   : >> { %3219 = vmatpush3.msra.mxu0 %v552_v42  ;;  %3216 = vmatmul.mubr.f32.vlgmr.msra.gmra.mxu1 %v4017_v45 }
  0x46   : >> { %3220 = vmatprep.subr.mxu0 %v559_v43  ;;  %3225 = vmatprep.subr.mxu1 %v463_v32 }
  0x47   : >> { %3221 = vmatpush3.msra.mxu0 %v559_v43  ;;  %3222 = vmatprep.mubr.f32.mxu0 %v4002_v36 }
  0x48   : >> { %3226 = vmatpush3.msra.mxu1 %v463_v32  ;;  %3223 = vmatmul.mubr.f32.vlgmr.msra.gmra.mxu0 %v4004_v37  ;;  %v4090_v32 = vand.u32 4294901760, %v4083_v29 }
  0x49   : >> { %3227 = vmatprep.subr.mxu1 %v466_v33  ;;  %3229 = vmatprep.mubr.f32.mxu1 %v4002_v36 }
  0x4a   : >> { %3228 = vmatpush3.msra.mxu1 %v466_v33  ;;  %3232 = vmatprep.subr.mxu0 %v4039_v54  ;;  %v1078_v33 = vand.u32 4294901760, %v1077_v31  ;;  %v1084_v34 = vsub.f32 %v4083_v29, %v4090_v32 }
  0x4b   : >> { %3230 = vmatmul.mubr.f32.vlgmr.msra.gmra.mxu1 %v4004_v37  ;;  %3233 = vmatpush3.msra.mxu0 %v4039_v54 }
  0x4c   : >> { %3234 = vmatprep.subr.mxu0 %v4046_v56  ;;  %3243 = vmatprep.subr.mxu1 %v1064_v26  ;;  %v1085_v35 = vand.u32 4294901760, %v1084_v34 }
  0x4d   : >> { %3235 = vmatpush3.msra.mxu0 %v4046_v56  ;;  %3244 = vmatpush3.msra.mxu1 %v1064_v26 }
  0x4e   : >> { %3236 = vmatprep.subr.mxu0 %v4058_v59  ;;  %3245 = vmatprep.subr.mxu1 %v1071_v30 }
  0x4f   : >> { %3237 = vmatpush3.msra.mxu0 %v4058_v59  ;;  %3246 = vmatpush3.msra.mxu1 %v1071_v30 }
  0x50   : >> { %3238 = vmatprep.subr.mxu0 %v4072_v63  ;;  %3247 = vmatprep.subr.mxu1 %v1078_v33 }
  0x51   : >> { %3239 = vmatpush3.msra.mxu0 %v4072_v63  ;;  %3248 = vmatpush3.msra.mxu1 %v1078_v33 }
  0x52   : >> { %3254 = vmatprep.subr.mxu0 %v4043_v55  ;;  %3249 = vmatprep.subr.mxu1 %v1085_v35 }
  0x53   : >> { %3250 = vmatpush3.msra.mxu1 %v1085_v35 }
  0x54   : >> { %3265 = vmatprep.subr.mxu1 %v4039_v54 }
  0xfe   : >> { %v3196_v38 = vpop.f32.mrf.mxu0 }
  0xff   : >> { %v3203_v42 = vpop.f32.mrf.mxu1 }
 0x100   : >> { %v507_v39 = vpop.f32.mrf.mxu0  ;;  %v605_v43 = vadd.f32 %v3203_v42, %v3196_v38 }
 0x101   : >> { %v598_v46 = vpop.f32.mrf.mxu1 }
 0x102   : >> { %v599_v47 = vadd.f32 %v598_v46, %v507_v39  ;;  %v3210_v48 = vpop.f32.mrf.mxu0 }
 0x103   : >> { %v688_v49 = vadd.f32 %v3210_v48, %v605_v43 }
 0x104   : >> { %v680_v50 = vpop.f32.mrf.mxu0 }
 0x105   : >> { %v681_v51 = vadd.f32 %v680_v50, %v599_v47  ;;  %v3217_v60 = vpop.f32.mrf.mxu1 }
 0x106   : >> { %v771_v26 = vadd.f32 %v3217_v60, %v688_v49 }
 0x107   : >> { %v762_v27 = vpop.f32.mrf.mxu1 }
 0x108   : >> { %v763_v30 = vadd.f32 %v762_v27, %v681_v51  ;;  %v3224_v31 = vpop.f32.mrf.mxu0 }
 0x109   : >> { %v854_v33 = vadd.f32 %v3224_v31, %v771_v26 }
 0x10a   : >> { %v847_v34 = vpop.f32.mrf.mxu0 }
 0x10b   : >> { %v3231_v35 = vpop.f32.mrf.mxu1  ;;  %v848_v0 = vadd.f32 %v847_v34, %v763_v30 }
 0x10c   : >> { %v933_v1 = vadd.f32 %v3231_v35, %v854_v33 }
 0x10d   : >> { %v926_v2 = vpop.f32.mrf.mxu1 }
 0x10e   : >> { %v944_v3 = vsel %vm410_vm0, %v933_v1, 0  ;;  %v927_v38 = vadd.f32 %v926_v2, %v848_v0 }
 0x10f   : >> { %v1025_v42 = vand.u32 4294901760, %v944_v3 }
 0x110   : >> { %v941_v39 = vsel %vm410_vm0, %v927_v38, 0 }
 0x111   : >> { %v1026_v43 = vsub.f32 %v944_v3, %v1025_v42  ;;  %v1015_v46 = vand.u32 4294901760, %v941_v39 }
 0x113   : >> { %v1027_v47 = vand.u32 4294901760, %v1026_v43  ;;  %v1016_v48 = vsub.f32 %v941_v39, %v1015_v46  ;;  %3251 = vmatprep.mubr.f32.mxu1 %v1015_v46 }
 0x114   : >> { %3252 = vmatmul.mubr.f32.vlgmr.msra.gmra.mxu1 %v1025_v42 }
 0x115   : >> { %3266 = vmatpush3.msra.mxu1 %v4039_v54  ;;  %v1017_v49 = vand.u32 4294901760, %v1016_v48  ;;  %v1028_v50 = vsub.f32 %v1026_v43, %v1027_v47 }
 0x116   : >> { %3267 = vmatprep.subr.mxu1 %v4046_v56 }
 0x117   : >> { %3268 = vmatpush3.msra.mxu1 %v4046_v56  ;;  %3273 = vmatprep.mubr.f32.mxu1 %v1017_v49  ;;  %v1018_v1 = vsub.f32 %v1016_v48, %v1017_v49  ;;  %v1029_v2 = vand.u32 4294901760, %v1028_v50 }
 0x118   : >> { %3269 = vmatprep.subr.mxu1 %v4058_v59 }
 0x119   : >> { %3270 = vmatpush3.msra.mxu1 %v4058_v59  ;;  %v1019_v0 = vand.u32 4294901760, %v1018_v1  ;;  %v4146_v1 = vand.u32 4294901760, %v4760_v20 }
 0x11a   : >> { %3271 = vmatprep.subr.mxu1 %v4072_v63 }
 0x11b   : >> { %3272 = vmatpush3.msra.mxu1 %v4072_v63  ;;  %3240 = vmatprep.mubr.f32.mxu0 %v1019_v0 }
 0x11c   : >> { %3274 = vmatmul.mubr.f32.vlgmr.msra.gmra.mxu1 %v1027_v47  ;;  %3287 = vmatprep.subr.mxu1 %v4039_v54 }
 0x11d   : >> { %3241 = vmatmul.mubr.f32.vlgmr.msra.gmra.mxu0 %v1029_v2  ;;  %3288 = vmatpush3.msra.mxu1 %v4039_v54 }
 0x11e   : >> { %3255 = vmatpush3.msra.mxu0 %v4043_v55  ;;  %3295 = vmatprep.mubr.f32.mxu1 %v1015_v46 }
 0x11f   : >> { %3256 = vmatprep.subr.mxu0 %v4055_v58  ;;  %3262 = vmatprep.mubr.f32.mxu0 %v1016_v48  ;;  %v4140_v48 = vand.u32 4294901760, %v4759_v21 }
 0x120   : >> { %3289 = vmatprep.subr.mxu1 %v4046_v56  ;;  %3257 = vmatpush3.msra.mxu0 %v4055_v58 }
 0x121   : >> { %3290 = vmatpush3.msra.mxu1 %v4046_v56  ;;  %3258 = vmatprep.subr.mxu0 %v4069_v62 }
 0x122   : >> { %3291 = vmatprep.subr.mxu1 %v4058_v59  ;;  %3259 = vmatpush3.msra.mxu0 %v4069_v62 }
 0x123   : >> { %3292 = vmatpush3.msra.mxu1 %v4058_v59  ;;  %3260 = vmatprep.subr.mxu0 %v4083_v29 }
 0x124   : >> { %3293 = vmatprep.subr.mxu1 %v4072_v63  ;;  %3261 = vmatpush3.msra.mxu0 %v4083_v29 }
 0x125   : >> { %3294 = vmatpush3.msra.mxu1 %v4072_v63  ;;  %3263 = vmatmul.mubr.f32.vlgmr.msra.gmra.mxu0 %v1026_v43 }
 0x126   : >> { %3276 = vmatprep.subr.mxu0 %v4051_v57  ;;  %3296 = vmatmul.mubr.f32.vlgmr.msra.gmra.mxu1 %v1025_v42 }
 0x127   : >> { %3277 = vmatpush3.msra.mxu0 %v4051_v57  ;;  %3284 = vmatprep.mubr.f32.mxu0 %v1015_v46 }
 0x128   : >> { %3278 = vmatprep.subr.mxu0 %v4065_v61  ;;  %3309 = vmatprep.mubr.f32.mxu1 %v4002_v36 }
 0x129   : >> { %3279 = vmatpush3.msra.mxu0 %v4065_v61 }
 0x12a   : >> { %3280 = vmatprep.subr.mxu0 %v4079_v28 }
 0x12b   : >> { %3281 = vmatpush3.msra.mxu0 %v4079_v28 }
 0x12c   : >> { %3282 = vmatprep.subr.mxu0 %v4090_v32 }
 0x12d   : >> { %3283 = vmatpush3.msra.mxu0 %v4090_v32 }
 0x12e   : >> { %3285 = vmatmul.mubr.f32.vlgmr.msra.gmra.mxu0 %v1025_v42 }
 0x12f   : >> { %3302 = vmatprep.mubr.f32.mxu0 %v4023_v52 }
 0x1d4   : >> { %v3253_v54 = vpop.f32.mrf.mxu1 }
 0x1d6   : >> { %v1122_v59 = vpop.f32.mrf.mxu1 }
 0x1dc   : >> { %v3275_v62 = vpop.f32.mrf.mxu1 }
 0x1dd   : >> { %v3242_v3 = vpop.f32.mrf.mxu0 }
 0x1de   : >> { %v1032_v56 = vadd.f32 %v3242_v3, %v4758_v22  ;;  %v1292_v60 = vpop.f32.mrf.mxu1  ;;  %v4152_v3 = vsub.f32 %v4759_v21, %v4140_v48 }
 0x1df   : >> { %v1021_v55 = vpop.f32.mrf.mxu0 }
 0x1e0   : >> { %v1022_v57 = vadd.f32 %v4758_v22, %v1021_v55  ;;  %v1129_v61 = vadd.f32 %v3253_v54, %v1032_v56  ;;  %v4155_v54 = vand.u32 4294901760, %v4761_v19 }
 0x1e2   : >> { %v1123_v29 = vadd.f32 %v1122_v59, %v1022_v57  ;;  %v4159_v57 = vsub.f32 %v4760_v20, %v4146_v1  ;;  %v4170_v59 = vsub.f32 %v4761_v19, %v4155_v54 }
 0x1e5   : >> { %v3264_v58 = vpop.f32.mrf.mxu0 }
 0x1e6   : >> { %v1216_v28 = vadd.f32 %v3264_v58, %v1129_v61  ;;  %v3297_v26 = vpop.f32.mrf.mxu1  ;;  %v4166_v58 = vand.u32 4294901760, %v4152_v3  ;;  %v4173_v61 = vand.u32 4294901760, %v4763_v17 }
 0x1e7   : >> { %v1208_v63 = vpop.f32.mrf.mxu0 }
 0x1e8   : >> { %v1209_v51 = vadd.f32 %v1208_v63, %v1123_v29  ;;  %v1301_v32 = vadd.f32 %v3275_v62, %v1216_v28  ;;  %v1464_v35 = vpop.f32.mrf.mxu1  ;;  %v4176_v62 = vand.u32 4294901760, %v4159_v57  ;;  %v4183_v63 = vand.u32 4294901760, %v4764_v16 }
 0x1e9   : >> { %v2087_v28 = vsub.f32 %v4152_v3, %v4166_v58  ;;  %v4191_v29 = vand.u32 4294901760, %v4170_v59 }
 0x1ea   : >> { %v1293_v30 = vadd.f32 %v1292_v60, %v1209_v51  ;;  %v4195_v51 = vsub.f32 %v4763_v17, %v4173_v61  ;;  %v4198_v60 = vand.u32 4294901760, %v4767_v15 }
 0x1ee   : >> { %v3286_v27 = vpop.f32.mrf.mxu0 }
 0x1ef   : >> { %v1390_v52 = vadd.f32 %v3286_v27, %v1301_v32  ;;  %v2088_v27 = vand.u32 4294901760, %v2087_v28 }
 0x1f0   : >> { %v1383_v31 = vpop.f32.mrf.mxu0 }
 0x1f1   : >> { %v1471_v33 = vadd.f32 %v3297_v26, %v1390_v52  ;;  %v1384_v34 = vadd.f32 %v1383_v31, %v1293_v30  ;;  %v4211_v26 = vsub.f32 %v4764_v16, %v4183_v63  ;;  %v2101_v52 = vsub.f32 %v4170_v59, %v4191_v29 }
 0x1f2   : >> { %v4220_v30 = vand.u32 4294901760, %v4195_v51  ;;  %v4224_v31 = vsub.f32 %v4767_v15, %v4198_v60 }
 0x1f3   : >> { %v1475_v38 = vmax.f32 %v1471_v33, 0.0  ;;  %v1465_v42 = vadd.f32 %v1464_v35, %v1384_v34  ;;  %v4233_v34 = vand.u32 4294901760, %v4211_v26  ;;  %v2102_v35 = vand.u32 4294901760, %v2101_v52 }
 0x1f5   : >> { %v4132_v39 = vand.u32 4294901760, %v1475_v38  ;;  %v1474_v43 = vmax.f32 %v1465_v42, 0.0 }
 0x1f7   : >> { %v1593_v46 = vsub.f32 %v1475_v38, %v4132_v39  ;;  %v4135_v47 = vand.u32 4294901760, %v1474_v43  ;;  %3298 = vmatprep.subr.mxu0 %v4132_v39  ;;  %v4241_v38 = vand.u32 4294901760, %v4224_v31 }
 0x1f8   : >> { %3299 = vmatpush3.msra.mxu0 %v4132_v39 }
 0x1f9   : >> { %v1600_v49 = vsub.f32 %v1474_v43, %v4135_v47  ;;  %3300 = vmatprep.subr.mxu0 %v4135_v47  ;;  %v1594_v50 = vand.u32 4294901760, %v1593_v46  ;;  %v2129_v43 = vsub.f32 %v4224_v31, %v4241_v38 }
 0x1fa   : >> { %3301 = vmatpush3.msra.mxu0 %v4135_v47 }
 0x1fb   : >> { %3312 = vmatprep.subr.mxu0 %v1593_v46  ;;  %3303 = vmatmul.mubr.f32.vlgmr.msra.gmra.mxu0 %v4025_v53  ;;  %v1595_v0 = vsub.f32 %v1593_v46, %v1594_v50  ;;  %v1601_v2 = vand.u32 4294901760, %v1600_v49  ;;  %v4162_v53 = vand.u32 4294901760, %v4762_v18 }
 0x1fc   : >> { %3313 = vmatpush3.msra.mxu0 %v1593_v46  ;;  %3316 = vmatprep.mubr.f32.mxu0 %v4007_v40 }
 0x1fd   : >> { %3314 = vmatprep.subr.mxu0 %v1600_v49  ;;  %v1596_v55 = vand.u32 4294901760, %v1595_v0  ;;  %v1602_v56 = vsub.f32 %v1600_v49, %v1601_v2  ;;  %v4266_v0 = vand.u32 4294901760, %v4769_v13 }
 0x1fe   : >> { %3315 = vmatpush3.msra.mxu0 %v1600_v49  ;;  %v4259_v49 = vand.u32 4294901760, %v4768_v14 }
 0x1ff   : >> { %3305 = vmatprep.subr.mxu1 %v1596_v55  ;;  %3326 = vmatprep.subr.mxu0 %v1594_v50  ;;  %v1603_v40 = vand.u32 4294901760, %v1602_v56  ;;  %v4278_v56 = vand.u32 4294901760, %v4770_v12 }
 0x200   : >> { %3306 = vmatpush3.msra.mxu1 %v1596_v55  ;;  %3317 = vmatmul.mubr.f32.vlgmr.msra.gmra.mxu0 %v4010_v41  ;;  %v4180_v41 = vsub.f32 %v4762_v18, %v4162_v53  ;;  %v4275_v55 = vsub.f32 %v4769_v13, %v4266_v0 }
 0x201   : >> { %3327 = vmatpush3.msra.mxu0 %v1594_v50  ;;  %3307 = vmatprep.subr.mxu1 %v1603_v40  ;;  %v4263_v50 = vsub.f32 %v4768_v14, %v4259_v49 }
 0x202   : >> { %3328 = vmatprep.subr.mxu0 %v1601_v2  ;;  %3308 = vmatpush3.msra.mxu1 %v1603_v40  ;;  %v4207_v32 = vand.u32 4294901760, %v4180_v41  ;;  %v4285_v28 = vand.u32 4294901760, %v4275_v55 }
 0x203   : >> { %3329 = vmatpush3.msra.mxu0 %v1601_v2  ;;  %3310 = vmatmul.mubr.f32.vlgmr.msra.gmra.mxu1 %v4004_v37  ;;  %v4271_v2 = vand.u32 4294901760, %v4263_v50 }
 0x204   : >> { %3319 = vmatprep.subr.mxu1 %v4132_v39  ;;  %3323 = vmatprep.mubr.f32.mxu1 %v4014_v44  ;;  %v2094_v44 = vsub.f32 %v4159_v57, %v4176_v62  ;;  %v2108_v33 = vsub.f32 %v4180_v41, %v4207_v32 }
 0x205   : >> { %3320 = vmatpush3.msra.mxu1 %v4132_v39  ;;  %3330 = vmatprep.mubr.f32.mxu0 %v4002_v36  ;;  %v2136_v40 = vsub.f32 %v4263_v50, %v4271_v2 }
 0x206   : >> { %3321 = vmatprep.subr.mxu1 %v4135_v47  ;;  %3331 = vmatmul.mubr.f32.vlgmr.msra.gmra.mxu0 %v4004_v37  ;;  %v2109_v42 = vand.u32 4294901760, %v2108_v33 }
 0x207   : >> { %3322 = vmatpush3.msra.mxu1 %v4135_v47  ;;  %3340 = vmatprep.subr.mxu0 %v4140_v48  ;;  %v2137_v52 = vand.u32 4294901760, %v2136_v40 }
 0x208   : >> { %3324 = vmatmul.mubr.f32.vlgmr.msra.gmra.mxu1 %v4017_v45  ;;  %3333 = vmatprep.subr.mxu1 %v4132_v39  ;;  %v2095_v45 = vand.u32 4294901760, %v2094_v44  ;;  %v4289_v44 = vsub.f32 %v4770_v12, %v4278_v56  ;;  %v4361_v12 = vand.u32 4294901760, %v4765_v6 }
 0x209   : >> { %3334 = vmatpush3.msra.mxu1 %v4132_v39  ;;  %3337 = vmatprep.mubr.f32.mxu1 %v4002_v36  ;;  %v2115_v36 = vsub.f32 %v4195_v51, %v4220_v30  ;;  %v2122_v39 = vsub.f32 %v4211_v26, %v4233_v34 }
 0x20a   : >> { %3335 = vmatprep.subr.mxu1 %v4135_v47  ;;  %3341 = vmatpush3.msra.mxu0 %v4140_v48  ;;  %v4299_v33 = vand.u32 4294901760, %v4289_v44 }
 0x20b   : >> { %3336 = vmatpush3.msra.mxu1 %v4135_v47  ;;  %3342 = vmatprep.subr.mxu0 %v4146_v1  ;;  %v2123_v46 = vand.u32 4294901760, %v2122_v39  ;;  %v2130_v47 = vand.u32 4294901760, %v2129_v43  ;;  %v4316_v43 = vand.u32 4294901760, %v4774_v9 }
 0x20c   : >> { %3338 = vmatmul.mubr.f32.vlgmr.msra.gmra.mxu1 %v4004_v37  ;;  %3375 = vmatprep.subr.mxu1 %v2088_v27  ;;  %v2116_v37 = vand.u32 4294901760, %v2115_v36  ;;  %4781 = vst [vmem:[#allocation37_spill] sm:$0xff] %v4299_v33  ;;  %v4307_v36 = vand.u32 4294901760, %v4773_v10  ;;  %v2150_v39 = vsub.f32 %v4289_v44, %v4299_v33 }
 0x20d   : >> { %3376 = vmatpush3.msra.mxu1 %v2088_v27  ;;  %3343 = vmatpush3.msra.mxu0 %v4146_v1  ;;  %v4292_v27 = vand.u32 4294901760, %v4772_v11 }
 0x20e   : >> { %3377 = vmatprep.subr.mxu1 %v2095_v45  ;;  %3344 = vmatprep.subr.mxu0 %v4155_v54 }
 0x20f   : >> { %3378 = vmatpush3.msra.mxu1 %v2095_v45  ;;  %3345 = vmatpush3.msra.mxu0 %v4155_v54  ;;  %v2143_v45 = vsub.f32 %v4275_v55, %v4285_v28 }
 0x210   : >> { %3379 = vmatprep.subr.mxu1 %v2102_v35  ;;  %3346 = vmatprep.subr.mxu0 %v4162_v53 }
 0x211   : >> { %3380 = vmatpush3.msra.mxu1 %v2102_v35  ;;  %3347 = vmatpush3.msra.mxu0 %v4162_v53  ;;  %v4303_v35 = vsub.f32 %v4772_v11, %v4292_v27 }
 0x212   : >> { %3381 = vmatprep.subr.mxu1 %v2109_v42  ;;  %3348 = vmatprep.subr.mxu0 %v4173_v61 }
 0x213   : >> { %3382 = vmatpush3.msra.mxu1 %v2109_v42  ;;  %3349 = vmatpush3.msra.mxu0 %v4173_v61  ;;  %v2144_v42 = vand.u32 4294901760, %v2143_v45  ;;  %v4327_v45 = vsub.f32 %v4774_v9, %v4316_v43  ;;  %v4342_v9 = vsub.f32 %v4771_v8, %v4330_v4 }
 0x214   : >> { %3383 = vmatprep.subr.mxu1 %v2116_v37  ;;  %3350 = vmatprep.subr.mxu0 %v4183_v63 }
 0x215   : >> { %3384 = vmatpush3.msra.mxu1 %v2116_v37  ;;  %3351 = vmatpush3.msra.mxu0 %v4183_v63  ;;  %v4313_v37 = vand.u32 4294901760, %v4303_v35  ;;  %v4338_v5 = vand.u32 4294901760, %v4327_v45  ;;  %v4354_v11 = vand.u32 4294901760, %v4342_v9 }
 0x216   : >> { %3385 = vmatprep.subr.mxu1 %v2123_v46  ;;  %3352 = vmatprep.subr.mxu0 %v4198_v60 }
 0x217   : >> { %3386 = vmatpush3.msra.mxu1 %v2123_v46  ;;  %3353 = vmatpush3.msra.mxu0 %v4198_v60  ;;  %4782 = vst [vmem:[#allocation38_spill] sm:$0xff] %v4313_v37  ;;  %v4320_v46 = vsub.f32 %v4773_v10, %v4307_v36  ;;  %v2157_v40 = vsub.f32 %v4303_v35, %v4313_v37  ;;  %4784 = vst [vmem:[#allocation40_spill] sm:$0xff] %v4338_v5  ;;  %v4345_v10 = vand.u32 4294901760, %v4766_v7 }
 0x218   : >> { %3387 = vmatprep.subr.mxu1 %v2130_v47  ;;  %3354 = vmatprep.subr.mxu0 %v4259_v49  ;;  %4785 = vst [vmem:[#allocation41_spill] sm:$0xff] %v4354_v11  ;;  %v2178_v14 = vsub.f32 %v4342_v9, %v4354_v11 }
 0x219   : >> { %3388 = vmatpush3.msra.mxu1 %v2130_v47  ;;  %3355 = vmatpush3.msra.mxu0 %v4259_v49  ;;  %v2151_v47 = vand.u32 4294901760, %v2150_v39  ;;  %v2158_v39 = vand.u32 4294901760, %v2157_v40  ;;  %v2171_v40 = vsub.f32 %v4327_v45, %v4338_v5  ;;  %v4358_v8 = vsub.f32 %v4766_v7, %v4345_v10 }
 0x21a   : >> { %3356 = vmatprep.subr.mxu0 %v4266_v0  ;;  %3389 = vmatprep.subr.mxu1 %v2137_v52  ;;  %v4372_v7 = vsub.f32 %v4765_v6, %v4361_v12 }
 0x21b   : >> { %3357 = vmatpush3.msra.mxu0 %v4266_v0  ;;  %3390 = vmatpush3.msra.mxu1 %v2137_v52  ;;  %v4334_v52 = vand.u32 4294901760, %v4320_v46  ;;  %v2172_v13 = vand.u32 4294901760, %v2171_v40  ;;  %v4368_v15 = vand.u32 4294901760, %v4358_v8 }
 0x21c   : >> { %3358 = vmatprep.subr.mxu0 %v4278_v56  ;;  %3391 = vmatprep.subr.mxu1 %v2144_v42  ;;  %v4379_v40 = vand.u32 4294901760, %v4372_v7 }
 0x21d   : >> { %3359 = vmatpush3.msra.mxu0 %v4278_v56  ;;  %3392 = vmatpush3.msra.mxu1 %v2144_v42  ;;  %4783 = vst [vmem:[#allocation39_spill] sm:$0xff] %v4334_v52  ;;  %v2164_v42 = vsub.f32 %v4320_v46, %v4334_v52  ;;  %4786 = vst [vmem:[#allocation42_spill] sm:$0xff] %v4368_v15 }
 0x21e   : >> { %3360 = vmatprep.subr.mxu0 %v4292_v27  ;;  %3393 = vmatprep.subr.mxu1 %v2151_v47  ;;  %4787 = vst [vmem:[#allocation43_spill] sm:$0xff] %v4379_v40  ;;  %v2192_v16 = vsub.f32 %v4372_v7, %v4379_v40 }
 0x21f   : >> { %3361 = vmatpush3.msra.mxu0 %v4292_v27  ;;  %3394 = vmatpush3.msra.mxu1 %v2151_v47  ;;  %v2165_v47 = vand.u32 4294901760, %v2164_v42  ;;  %v2185_v42 = vsub.f32 %v4358_v8, %v4368_v15 }
 0x220   : >> { %3362 = vmatprep.subr.mxu0 %v4307_v36  ;;  %3395 = vmatprep.subr.mxu1 %v2158_v39 }
 0x221   : >> { %3363 = vmatpush3.msra.mxu0 %v4307_v36  ;;  %3396 = vmatpush3.msra.mxu1 %v2158_v39  ;;  %v2179_v39 = vand.u32 4294901760, %v2178_v14  ;;  %v2186_v6 = vand.u32 4294901760, %v2185_v42  ;;  %v4386_v14 = vld [vmem:[#allocation3] sm:$0xff] }
 0x222   : >> { %3364 = vmatprep.subr.mxu0 %v4316_v43  ;;  %3397 = vmatprep.subr.mxu1 %v2165_v47  ;;  %4788 = vst [vmem:[#allocation44_spill] sm:$0xff] %v4386_v14 }
 0x223   : >> { %3365 = vmatpush3.msra.mxu0 %v4316_v43  ;;  %3398 = vmatpush3.msra.mxu1 %v2165_v47  ;;  %v2193_v47 = vand.u32 4294901760, %v2192_v16 }
 0x224   : >> { %3366 = vmatprep.subr.mxu0 %v4330_v4  ;;  %3399 = vmatprep.subr.mxu1 %v2172_v13 }
 0x225   : >> { %3367 = vmatpush3.msra.mxu0 %v4330_v4  ;;  %3400 = vmatpush3.msra.mxu1 %v2172_v13  ;;  %v4390_v13 = vld [vmem:[#allocation3 + $0x8] sm:$0xff] }
 0x226   : >> { %3368 = vmatprep.subr.mxu0 %v4345_v10  ;;  %3401 = vmatprep.subr.mxu1 %v2179_v39  ;;  %4789 = vst [vmem:[#allocation45_spill] sm:$0xff] %v4390_v13 }
 0x227   : >> { %3369 = vmatpush3.msra.mxu0 %v4345_v10  ;;  %3402 = vmatpush3.msra.mxu1 %v2179_v39 }
 0x228   : >> { %3370 = vmatprep.subr.mxu0 %v4361_v12  ;;  %3403 = vmatprep.subr.mxu1 %v2186_v6 }
 0x229   : >> { %3371 = vmatpush3.msra.mxu0 %v4361_v12  ;;  %3404 = vmatpush3.msra.mxu1 %v2186_v6 }
 0x22a   : >> { %3410 = vmatprep.subr.mxu0 %v4152_v3  ;;  %3405 = vmatprep.subr.mxu1 %v2193_v47 }
 0x22b   : >> { %3406 = vmatpush3.msra.mxu1 %v2193_v47  ;;  %2680 = vrot.lane.b32.xlu0 %v4386_v14, %s3731_s25 }
 0x22c   : >> { %3445 = vmatprep.subr.mxu1 %v4140_v48 }
 0x22f   : >> { %2682 = vrot.lane.b32.xlu0 %v4390_v13, %s3731_s25 }
 0x2bb   : >> { %v3304_v42 = vpop.f32.mrf.mxu0 }
 0x2bd   : >> { %v1549_v39 = vpop.f32.mrf.mxu0 }
 0x2c0   : >> { %v3318_v16 = vpop.f32.mrf.mxu0 }
 0x2c2   : >> { %v1722_v18 = vpop.f32.mrf.mxu0 }
 0x2c3   : >> { %v3311_v17 = vpop.f32.mrf.mxu1 }
 0x2c4   : >> { %v1647_v6 = vadd.f32 %v3311_v17, %v3304_v42 }
 0x2c5   : >> { %v1640_v47 = vpop.f32.mrf.mxu1 }
 0x2c6   : >> { %v1730_v19 = vadd.f32 %v3318_v16, %v1647_v6  ;;  %v1641_v20 = vadd.f32 %v1640_v47, %v1549_v39  ;;  %v3332_v25 = vpop.f32.mrf.mxu0 }
 0x2c8   : >> { %v1723_v21 = vadd.f32 %v1722_v18, %v1641_v20  ;;  %v3325_v22 = vpop.f32.mrf.mxu1  ;;  %v1889_v15 = vpop.f32.mrf.mxu0 }
 0x2c9   : >> { %v1813_v24 = vadd.f32 %v3325_v22, %v1730_v19  ;;  %v4793_v22 = vld [vmem:[#allocation40_spill] sm:$0xff] }
 0x2ca   : >> { %v1804_v23 = vpop.f32.mrf.mxu1 }
 0x2cb   : >> { %v1896_v14 = vadd.f32 %v3332_v25, %v1813_v24  ;;  %v1805_v40 = vadd.f32 %v1804_v23, %v1723_v21  ;;  %v4795_v23 = vld [vmem:[#allocation42_spill] sm:$0xff] }
 0x2cc   : >> { %v3339_v11 = vpop.f32.mrf.mxu1 }
 0x2cd   : >> { %v1890_v5 = vadd.f32 %v1889_v15, %v1805_v40  ;;  %v1975_v13 = vadd.f32 %v3339_v11, %v1896_v14 }
 0x2ce   : >> { %v1968_v52 = vpop.f32.mrf.mxu1 }
 0x2cf   : >> { %v4394_v37 = vand.u32 4294901760, %v1975_v13  ;;  %v1969_v33 = vadd.f32 %v1968_v52, %v1890_v5  ;;  %v4801_v52 = vld [vmem:[#allocation45_spill] sm:$0xff] }
 0x2d1   : >> { %v4397_v17 = vsub.f32 %v1975_v13, %v4394_v37  ;;  %v4399_v42 = vand.u32 4294901760, %v1969_v33 }
 0x2d3   : >> { %v2075_v18 = vand.u32 4294901760, %v4397_v17  ;;  %v2064_v19 = vsub.f32 %v1969_v33, %v4399_v42  ;;  %3407 = vmatprep.mubr.f32.mxu1 %v4399_v42 }
 0x2d4   : >> { %3408 = vmatmul.mubr.f32.vlgmr.msra.gmra.mxu1 %v4394_v37 }
 0x2d5   : >> { %3446 = vmatpush3.msra.mxu1 %v4140_v48  ;;  %v2065_v11 = vand.u32 4294901760, %v2064_v19  ;;  %v2076_v5 = vsub.f32 %v4397_v17, %v2075_v18 }
 0x2d6   : >> { %3447 = vmatprep.subr.mxu1 %v4146_v1 }
 0x2d7   : >> { %3448 = vmatpush3.msra.mxu1 %v4146_v1  ;;  %3477 = vmatprep.mubr.f32.mxu1 %v2065_v11  ;;  %v2066_v15 = vsub.f32 %v2064_v19, %v2065_v11  ;;  %v2077_v21 = vand.u32 4294901760, %v2076_v5 }
 0x2d8   : >> { %3449 = vmatprep.subr.mxu1 %v4155_v54 }
 0x2d9   : >> { %3450 = vmatpush3.msra.mxu1 %v4155_v54  ;;  %v2067_v20 = vand.u32 4294901760, %v2066_v15 }
 0x2da   : >> { %3451 = vmatprep.subr.mxu1 %v4162_v53 }
 0x2db   : >> { %3452 = vmatpush3.msra.mxu1 %v4162_v53  ;;  %3372 = vmatprep.mubr.f32.mxu0 %v2067_v20 }
 0x2dc   : >> { %3453 = vmatprep.subr.mxu1 %v4173_v61  ;;  %3373 = vmatmul.mubr.f32.vlgmr.msra.gmra.mxu0 %v2077_v21 }
 0x2dd   : >> { %3411 = vmatpush3.msra.mxu0 %v4152_v3  ;;  %3454 = vmatpush3.msra.mxu1 %v4173_v61 }
 0x2de   : >> { %3412 = vmatprep.subr.mxu0 %v4159_v57  ;;  %3442 = vmatprep.mubr.f32.mxu0 %v2064_v19 }
 0x2df   : >> { %3455 = vmatprep.subr.mxu1 %v4183_v63  ;;  %3413 = vmatpush3.msra.mxu0 %v4159_v57 }
 0x2e0   : >> { %3456 = vmatpush3.msra.mxu1 %v4183_v63  ;;  %3414 = vmatprep.subr.mxu0 %v4170_v59 }
 0x2e1   : >> { %3457 = vmatprep.subr.mxu1 %v4198_v60  ;;  %3415 = vmatpush3.msra.mxu0 %v4170_v59 }
 0x2e2   : >> { %3458 = vmatpush3.msra.mxu1 %v4198_v60  ;;  %3416 = vmatprep.subr.mxu0 %v4180_v41 }
 0x2e3   : >> { %3459 = vmatprep.subr.mxu1 %v4259_v49  ;;  %3417 = vmatpush3.msra.mxu0 %v4180_v41 }
 0x2e4   : >> { %3460 = vmatpush3.msra.mxu1 %v4259_v49  ;;  %3418 = vmatprep.subr.mxu0 %v4195_v51 }
 0x2e5   : >> { %3461 = vmatprep.subr.mxu1 %v4266_v0  ;;  %3419 = vmatpush3.msra.mxu0 %v4195_v51 }
 0x2e6   : >> { %3462 = vmatpush3.msra.mxu1 %v4266_v0  ;;  %3420 = vmatprep.subr.mxu0 %v4211_v26 }
 0x2e7   : >> { %3463 = vmatprep.subr.mxu1 %v4278_v56  ;;  %3421 = vmatpush3.msra.mxu0 %v4211_v26 }
 0x2e8   : >> { %3464 = vmatpush3.msra.mxu1 %v4278_v56  ;;  %3422 = vmatprep.subr.mxu0 %v4224_v31 }
 0x2e9   : >> { %3465 = vmatprep.subr.mxu1 %v4292_v27  ;;  %3423 = vmatpush3.msra.mxu0 %v4224_v31 }
 0x2ea   : >> { %3466 = vmatpush3.msra.mxu1 %v4292_v27  ;;  %3424 = vmatprep.subr.mxu0 %v4263_v50 }
 0x2eb   : >> { %3467 = vmatprep.subr.mxu1 %v4307_v36  ;;  %3425 = vmatpush3.msra.mxu0 %v4263_v50  ;;  %v2668_v50 = vld [vmem:[%s2667_s27] sm:$0xff] }
 0x2ec   : >> { %3468 = vmatpush3.msra.mxu1 %v4307_v36  ;;  %3426 = vmatprep.subr.mxu0 %v4275_v55 }
 0x2ed   : >> { %3469 = vmatprep.subr.mxu1 %v4316_v43  ;;  %3427 = vmatpush3.msra.mxu0 %v4275_v55 }
 0x2ee   : >> { %3470 = vmatpush3.msra.mxu1 %v4316_v43  ;;  %3428 = vmatprep.subr.mxu0 %v4289_v44 }
 0x2ef   : >> { %3471 = vmatprep.subr.mxu1 %v4330_v4  ;;  %3429 = vmatpush3.msra.mxu0 %v4289_v44 }
 0x2f0   : >> { %3472 = vmatpush3.msra.mxu1 %v4330_v4  ;;  %3430 = vmatprep.subr.mxu0 %v4303_v35 }
 0x2f1   : >> { %3473 = vmatprep.subr.mxu1 %v4345_v10  ;;  %3431 = vmatpush3.msra.mxu0 %v4303_v35  ;;  %v2681_v35 = vpop.permute.xlu0 %2680 }
 0x2f2   : >> { %3474 = vmatpush3.msra.mxu1 %v4345_v10  ;;  %3432 = vmatprep.subr.mxu0 %v4320_v46 }
 0x2f3   : >> { %3475 = vmatprep.subr.mxu1 %v4361_v12  ;;  %3433 = vmatpush3.msra.mxu0 %v4320_v46  ;;  %v4800_v46 = vld [vmem:[#allocation36_spill] sm:$0xff] }
 0x2f4   : >> { %3476 = vmatpush3.msra.mxu1 %v4361_v12  ;;  %3434 = vmatprep.subr.mxu0 %v4327_v45 }
 0x2f5   : >> { %3478 = vmatmul.mubr.f32.vlgmr.msra.gmra.mxu1 %v2075_v18  ;;  %3515 = vmatprep.subr.mxu1 %v4140_v48 }
 0x2f6   : >> { %3435 = vmatpush3.msra.mxu0 %v4327_v45  ;;  %3516 = vmatpush3.msra.mxu1 %v4140_v48  ;;  %v4797_v48 = vld [vmem:[#allocation34_spill] sm:$0xff] }
 0x2f7   : >> { %3547 = vmatprep.mubr.f32.mxu1 %v4399_v42  ;;  %3436 = vmatprep.subr.mxu0 %v4342_v9 }
 0x2f8   : >> { %3517 = vmatprep.subr.mxu1 %v4146_v1  ;;  %3437 = vmatpush3.msra.mxu0 %v4342_v9  ;;  %v4792_v9 = vld [vmem:[#allocation39_spill] sm:$0xff] }
 0x2f9   : >> { %3518 = vmatpush3.msra.mxu1 %v4146_v1  ;;  %3438 = vmatprep.subr.mxu0 %v4358_v8 }
 0x2fa   : >> { %3519 = vmatprep.subr.mxu1 %v4155_v54  ;;  %3439 = vmatpush3.msra.mxu0 %v4358_v8  ;;  %v4791_v8 = vld [vmem:[#allocation38_spill] sm:$0xff] }
 0x2fb   : >> { %3520 = vmatpush3.msra.mxu1 %v4155_v54  ;;  %3440 = vmatprep.subr.mxu0 %v4372_v7 }
 0x2fc   : >> { %3521 = vmatprep.subr.mxu1 %v4162_v53  ;;  %3441 = vmatpush3.msra.mxu0 %v4372_v7  ;;  %v4790_v7 = vld [vmem:[#allocation37_spill] sm:$0xff] }
 0x2fd   : >> { %3522 = vmatpush3.msra.mxu1 %v4162_v53  ;;  %3443 = vmatmul.mubr.f32.vlgmr.msra.gmra.mxu0 %v4397_v17 }
 0x2fe   : >> { %3480 = vmatprep.subr.mxu0 %v4166_v58  ;;  %3523 = vmatprep.subr.mxu1 %v4173_v61 }
 0x2ff   : >> { %3481 = vmatpush3.msra.mxu0 %v4166_v58  ;;  %3512 = vmatprep.mubr.f32.mxu0 %v4399_v42 }
 0x300   : >> { %3524 = vmatpush3.msra.mxu1 %v4173_v61  ;;  %3482 = vmatprep.subr.mxu0 %v4176_v62 }
 0x301   : >> { %3525 = vmatprep.subr.mxu1 %v4183_v63  ;;  %3483 = vmatpush3.msra.mxu0 %v4176_v62 }
 0x302   : >> { %3526 = vmatpush3.msra.mxu1 %v4183_v63  ;;  %3484 = vmatprep.subr.mxu0 %v4191_v29 }
 0x303   : >> { %3527 = vmatprep.subr.mxu1 %v4198_v60  ;;  %3485 = vmatpush3.msra.mxu0 %v4191_v29 }
 0x304   : >> { %3528 = vmatpush3.msra.mxu1 %v4198_v60  ;;  %3486 = vmatprep.subr.mxu0 %v4207_v32 }
 0x305   : >> { %3529 = vmatprep.subr.mxu1 %v4259_v49  ;;  %3487 = vmatpush3.msra.mxu0 %v4207_v32 }
 0x306   : >> { %3530 = vmatpush3.msra.mxu1 %v4259_v49  ;;  %3488 = vmatprep.subr.mxu0 %v4220_v30  ;;  %v2669_v49 = vld [vmem:[%s2667_s27 + $0x8] sm:$0xff]  ;;  %s3631_s27 = scalar_lea.vmem (%p419_p11), %s4594_s26, 2048 }
 0x307   : >> { %3531 = vmatprep.subr.mxu1 %v4266_v0  ;;  %3489 = vmatpush3.msra.mxu0 %v4220_v30  ;;  %p3632_p12 = scmp.ne.s32.totalorder (%p419_p11), %s4594_s26, %s3631_s27 }
 0x308   : >> { %3532 = vmatpush3.msra.mxu1 %v4266_v0  ;;  %3490 = vmatprep.subr.mxu0 %v4233_v34 }
 0x309   : >> { %3533 = vmatprep.subr.mxu1 %v4278_v56  ;;  %3491 = vmatpush3.msra.mxu0 %v4233_v34  ;;  %p3633_p13 = pnand (%p419_p11), %p3632_p12, %p3826_p5 }
 0x30a   : >> { %3534 = vmatpush3.msra.mxu1 %v4278_v56  ;;  %3492 = vmatprep.subr.mxu0 %v4241_v38  ;;  %v4798_v56 = vld [vmem:[#allocation35_spill] sm:$0xff] }
 0x30b   : >> { %3535 = vmatprep.subr.mxu1 %v4292_v27  ;;  %3493 = vmatpush3.msra.mxu0 %v4241_v38  ;;  %p3634_p0 = pneg (%p419_p11), %p3633_p13 }
 0x30c   : >> { %3536 = vmatpush3.msra.mxu1 %v4292_v27  ;;  %3494 = vmatprep.subr.mxu0 %v4271_v2 }
 0x30d   : >> { %3537 = vmatprep.subr.mxu1 %v4307_v36  ;;  %3495 = vmatpush3.msra.mxu0 %v4271_v2 }
 0x30e   : >> { %3538 = vmatpush3.msra.mxu1 %v4307_v36  ;;  %3496 = vmatprep.subr.mxu0 %v4285_v28  ;;  %v4799_v36 = vld [vmem:[#allocation44_spill] sm:$0xff] }
 0x30f   : >> { %3539 = vmatprep.subr.mxu1 %v4316_v43  ;;  %3497 = vmatpush3.msra.mxu0 %v4285_v28 }
 0x310   : >> { %3540 = vmatpush3.msra.mxu1 %v4316_v43  ;;  %3498 = vmatprep.subr.mxu0 %v4790_v7  ;;  %v2683_v43 = vpop.permute.xlu0 %2682 }
 0x311   : >> { %3541 = vmatprep.subr.mxu1 %v4330_v4  ;;  %3499 = vmatpush3.msra.mxu0 %v4790_v7  ;;  %v2687_v40 = vsel %vm410_vm0, %v4801_v52, %v2683_v43 }
 0x312   : >> { %3542 = vmatpush3.msra.mxu1 %v4330_v4  ;;  %3500 = vmatprep.subr.mxu0 %v4791_v8  ;;  %v4794_v4 = vld [vmem:[#allocation41_spill] sm:$0xff]  ;;  %v2693_v13 = vmul.f32 %v4800_v46, %v2687_v40 }
 0x313   : >> { %3543 = vmatprep.subr.mxu1 %v4345_v10  ;;  %3501 = vmatpush3.msra.mxu0 %v4791_v8 }
 0x314   : >> { %3544 = vmatpush3.msra.mxu1 %v4345_v10  ;;  %3502 = vmatprep.subr.mxu0 %v4792_v9  ;;  %v4796_v10 = vld [vmem:[#allocation43_spill] sm:$0xff] }
 0x315   : >> { %3545 = vmatprep.subr.mxu1 %v4361_v12  ;;  %3503 = vmatpush3.msra.mxu0 %v4792_v9 }
 0x316   : >> { %3546 = vmatpush3.msra.mxu1 %v4361_v12  ;;  %3504 = vmatprep.subr.mxu0 %v4793_v22 }
 0x317   : >> { %3548 = vmatmul.mubr.f32.vlgmr.msra.gmra.mxu1 %v4394_v37  ;;  %3505 = vmatpush3.msra.mxu0 %v4793_v22 }
 0x318   : >> { %3506 = vmatprep.subr.mxu0 %v4794_v4 }
 0x319   : >> { %3507 = vmatpush3.msra.mxu0 %v4794_v4 }
 0x31a   : >> { %3508 = vmatprep.subr.mxu0 %v4795_v23 }
 0x31b   : >> { %3509 = vmatpush3.msra.mxu0 %v4795_v23 }
 0x31c   : >> { %3510 = vmatprep.subr.mxu0 %v4796_v10 }
 0x31d   : >> { %3511 = vmatpush3.msra.mxu0 %v4796_v10 }
 0x31e   : >> { %3513 = vmatmul.mubr.f32.vlgmr.msra.gmra.mxu0 %v4394_v37  ;;  %v2686_v37 = vsel %vm410_vm0, %v4799_v36, %v2681_v35 }
 0x31f   : >> { %v2692_v45 = vmul.f32 %v4800_v46, %v2686_v37 }
 0x394   : >> { %v3409_v24 = vpop.f32.mrf.mxu1 }
 0x396   : >> { %v2230_v57 = vpop.f32.mrf.mxu1 }
 0x39c   : >> { %v3374_v12 = vpop.f32.mrf.mxu0 }
 0x39d   : >> { %v2080_v1 = vadd.f32 %v3374_v12, %v4797_v48 }
 0x39e   : >> { %v2069_v25 = vpop.f32.mrf.mxu0 }
 0x39f   : >> { %v2070_v54 = vadd.f32 %v4797_v48, %v2069_v25  ;;  %v2237_v53 = vadd.f32 %v3409_v24, %v2080_v1 }
 0x3a1   : >> { %v2231_v62 = vadd.f32 %v2230_v57, %v2070_v54 }
 0x3b5   : >> { %v3479_v58 = vpop.f32.mrf.mxu1 }
 0x3b7   : >> { %v2436_v63 = vpop.f32.mrf.mxu1 }
 0x3bd   : >> { %v3444_v3 = vpop.f32.mrf.mxu0 }
 0x3be   : >> { %v2348_v61 = vadd.f32 %v3444_v3, %v2237_v53 }
 0x3bf   : >> { %v2340_v59 = vpop.f32.mrf.mxu0 }
 0x3c0   : >> { %v2341_v41 = vadd.f32 %v2340_v59, %v2231_v62  ;;  %v2445_v29 = vadd.f32 %v3479_v58, %v2348_v61 }
 0x3c2   : >> { %v2437_v26 = vadd.f32 %v2436_v63, %v2341_v41 }
 0x3d7   : >> { %v3549_v51 = vpop.f32.mrf.mxu1 }
 0x3d9   : >> { %v2656_v38 = vpop.f32.mrf.mxu1 }
 0x3de   : >> { %v3514_v60 = vpop.f32.mrf.mxu0 }
 0x3df   : >> { %v2570_v32 = vadd.f32 %v3514_v60, %v2445_v29 }
 0x3e0   : >> { %v2563_v30 = vpop.f32.mrf.mxu0 }
 0x3e1   : >> { %v2663_v31 = vadd.f32 %v3549_v51, %v2570_v32  ;;  %v2564_v34 = vadd.f32 %v2563_v30, %v2437_v26 }
 0x3e3   : >> { %v2657_v0 = vadd.f32 %v2656_v38, %v2564_v34  ;;  %v2671_v2 = vadd.f32 %v2669_v49, %v2663_v31 }
 0x3e5   : >> { %v2670_v55 = vadd.f32 %v2668_v50, %v2657_v0  ;;  %v2677_v44 = vadd.f32 %v4798_v56, %v2671_v2 }
 0x3e7   : >> { %v2676_v28 = vadd.f32 %v4798_v56, %v2670_v55  ;;  %v2695_v16 = vadd.f32 %v2693_v13, %v2677_v44 }
 0x3e9   : >> { %3607 = vtanh.f32 %v2676_v28  ;;  %v2694_v14 = vadd.f32 %v2692_v45, %v2676_v28  ;;  %v2982_v6 = vmul.f32 -1.442695, %v2695_v16 }
 0x3ea   : >> { %3609 = vtanh.f32 %v2677_v44 }
 0x3eb   : >> { %v2981_v39 = vmul.f32 -1.442695, %v2694_v14 }
 0x3ed   : >> { %3611 = vpow2.f32 %v2981_v39 }
 0x3ee   : >> { %3613 = vpow2.f32 %v2982_v6 }
 0x3f6   : >> { %v3608_v27 = vpop.eup %3607 }
 0x3f7   : >> { %2714 = vrot.lane.b32.xlu1 %v3608_v27, %s3732_s29  ;;  %v3610_v33 = vpop.eup %3609 }
 0x3fa   : >> { %v3612_v47 = vpop.eup %3611 }
 0x3fb   : >> { %2716 = vrot.lane.b32.xlu1 %v3610_v33, %s3732_s29  ;;  %v2702_v17 = vadd.f32 1.0, %v3612_v47  ;;  %v3614_v42 = vpop.eup %3613 }
 0x3fc   : >> { %v2703_v18 = vadd.f32 1.0, %v3614_v42 }
 0x3fd   : >> { %3615 = vrcp.f32 %v2702_v17 }
 0x3fe   : >> { %3617 = vrcp.f32 %v2703_v18 }
 0x40a   : >> { %v3616_v19 = vpop.eup %3615 }
 0x40b   : >> { %v3618_v15 = vpop.eup %3617  ;;  %v2710_v7 = vmul.f32 %v3616_v19, %v2681_v35 }
 0x40c   : >> { %v2711_v22 = vmul.f32 %v3618_v15, %v2683_v43 }
 0x469   : >> { %v2715_v11 = vpop.permute.xlu1 %2714 }
 0x46a   : >> { %v2720_v5 = vmul.f32 %v3616_v19, %v2715_v11 }
 0x46c   : >> { %2724 = vrot.lane.b32.xlu0 %v2720_v5, %s3731_s25 }
 0x46d   : >> { %v2717_v20 = vpop.permute.xlu1 %2716 }
 0x46e   : >> { %v2721_v21 = vmul.f32 %v3618_v15, %v2717_v20 }
 0x470   : >> { %2726 = vrot.lane.b32.xlu1 %v2721_v21, %s3731_s25 }
 0x4de   : >> { %v2725_v8 = vpop.permute.xlu0 %2724 }
 0x4df   : >> { %v2730_v9 = vadd.f32 %v2725_v8, %v2710_v7 }
 0x4e1   : >> { %2734 = vrot.lane.b32.xlu0 %v2730_v9, %s3731_s25  ;;  %3619 = vtanh.f32 %v2730_v9 }
 0x4e2   : >> { %v2727_v4 = vpop.permute.xlu1 %2726 }
 0x4e3   : >> { %v2731_v23 = vadd.f32 %v2727_v4, %v2711_v22 }
 0x4e5   : >> { %2736 = vrot.lane.b32.xlu1 %v2731_v23, %s3731_s25  ;;  %3621 = vtanh.f32 %v2731_v23 }
 0x4ee   : >> { %v3620_v1 = vpop.eup %3619 }
 0x4f2   : >> { %v3622_v3 = vpop.eup %3621 }
 0x553   : >> { %v2735_v10 = vpop.permute.xlu0 %2734 }
 0x554   : >> { %v2740_v12 = vmul.f32 %v4800_v46, %v2735_v10 }
 0x556   : >> { %2744 = vrot.lane.b32.xlu0 %v2740_v12, %s3731_s25 }
 0x557   : >> { %v2737_v24 = vpop.permute.xlu1 %2736 }
 0x558   : >> { %v2741_v25 = vmul.f32 %v4800_v46, %v2737_v24 }
 0x55a   : >> { %2746 = vrot.lane.b32.xlu1 %v2741_v25, %s3731_s25  ;;  %2768 = vrot.lane.b32.xlu0 %v3620_v1, %s3732_s29 }
 0x55e   : >> { %2770 = vrot.lane.b32.xlu1 %v3622_v3, %s3732_s29  ;;  %s3635_s29 = sshll.u32 (%p419_p11), %s3734_s0, 4  ;;  %s3636_s29 = int_to_ptr.vmem [resolvable:$false] %s3635_s29 }
 0x55f   : > { %p3638_p1 = scmp.lt.s32.totalorder (%p419_p11), %s4594_s26, %s3636_s29 }
 0x5c8   : >> { %v2745_v54 = vpop.permute.xlu0 %2744 }
 0x5c9   : >> { %v2750_v57 = vadd.f32 %v2745_v54, %v2676_v28 }
 0x5cb   : >> { %v2983_v53 = vmul.f32 -1.442695, %v2750_v57 }
 0x5cc   : >> { %v2747_v58 = vpop.permute.xlu1 %2746  ;;  %v2769_v60 = vpop.permute.xlu0 %2768 }
 0x5cd   : >> { %3623 = vpow2.f32 %v2983_v53  ;;  %v2751_v59 = vadd.f32 %v2747_v58, %v2677_v44 }
 0x5cf   : >> { %v2984_v61 = vmul.f32 -1.442695, %v2751_v59 }
 0x5d0   : >> { %v2771_v30 = vpop.permute.xlu1 %2770 }
 0x5d1   : >> { %3625 = vpow2.f32 %v2984_v61 }
 0x5da   : >> { %v3624_v62 = vpop.eup %3623 }
 0x5db   : >> { %v2758_v41 = vadd.f32 1.0, %v3624_v62 }
 0x5dd   : >> { %3627 = vrcp.f32 %v2758_v41 }
 0x5de   : >> { %v3626_v63 = vpop.eup %3625 }
 0x5df   : >> { %v2759_v29 = vadd.f32 1.0, %v3626_v63 }
 0x5e1   : >> { %3629 = vrcp.f32 %v2759_v29 }
 0x5ea   : >> { %v3628_v51 = vpop.eup %3627 }
 0x5eb   : >> { %v2774_v32 = vmul.f32 %v3628_v51, %v2769_v60 }
 0x5ed   : >> { %2778 = vrot.lane.b32.xlu0 %v2774_v32, %s3731_s25 }
 0x5ee   : >> { %v3630_v26 = vpop.eup %3629 }
 0x5ef   : >> { %v2775_v31 = vmul.f32 %v3630_v26, %v2771_v30 }
 0x5f1   : >> { %2780 = vrot.lane.b32.xlu1 %v2775_v31, %s3731_s25  ;;  %2786 = vrot.lane.b32.xlu0 %v2730_v9, %s3733_s28  ;;  %s4591_s25 = scalar_lea.hbm (%p419_p11), %s4681_s8, %s2996_s4 }
 0x5f5   : >> { %2788 = vrot.lane.b32.xlu1 %v2731_v23, %s3733_s28  ;;  %s3637_s28 = scalar_lea.vmem (%p419_p11), %s3636_s29, 4096 }
 0x5f6   : > { %p3639_p2 = scmp.lt.s32.totalorder (%p419_p11), %s3637_s28, %s3631_s27 }
 0x5f8   : > { %p3640_p3 = por (%p419_p11), %p3639_p2, %p3638_p1 }
 0x5fa   : > { %p3641_p4 = pnand (%p419_p11), %p3640_p3, %p3634_p0 }
 0x65f   : >> { %v2779_v34 = vpop.permute.xlu0 %2778 }
 0x660   : >> { %2784 = vst.msk [vmem:[#allocation2] sm:$0xff] %vm410_vm0, %v2779_v34  ;;  %2795 = vst.msk [vmem:[%s2794_s14] sm:$0xff] %vm410_vm0, %v2779_v34 }
 0x663   : >> { %v2781_v38 = vpop.permute.xlu1 %2780  ;;  %v2787_v49 = vpop.permute.xlu0 %2786 }
 0x664   : >> { %2785 = vst.msk [vmem:[#allocation2 + $0x8] sm:$0xff] %vm410_vm0, %v2781_v38  ;;  %2796 = vst.msk [vmem:[%s2794_s14 + $0x8] sm:$0xff] %vm410_vm0, %v2781_v38  ;;  %421 = sbr.rel (!%p419_p11) target bundleno = 41 (0x29), region = 120 }
 0x665   : >> { %2792 = vst.msk [vmem:[#allocation3] sm:$0xff] %vm410_vm0, %v2787_v49  ;;  %2798 = vst.msk [vmem:[%s2797_s23] sm:$0xff] %vm410_vm0, %v2787_v49 }
 0x667   : >> { %v2789_v50 = vpop.permute.xlu1 %2788 }
 0x668   : >> { %2793 = vst.msk [vmem:[#allocation3 + $0x8] sm:$0xff] %vm410_vm0, %v2789_v50  ;;  %2799 = vst.msk [vmem:[%s2797_s23 + $0x8] sm:$0xff] %vm410_vm0, %v2789_v50 }
 0x669   : > { %3644 = shalt.err (!%p3641_p4)
}
 0x66a   : > { %s3645_s18 = scalar_lea.hbm %s4591_s25, 2048  ;;  %s3649_s24 = scalar_lea.hbm %s4681_s8, 4096 }
 0x66b   : > { %p3646_p7 = scmp.ne.s32.totalorder %s4591_s25, %s3645_s18  ;;  %p3650_p10 = scmp.lt.s32.totalorder %s4591_s25, %s4681_s8 }
 0x66c   : > { %p3651_p11 = scmp.lt.s32.totalorder %s3649_s24, %s3645_s18 }
 0x66d   : > { %p3647_p8 = pnand %p3646_p7, %p3826_p5 }
 0x66e   : > { %p3652_p12 = por %p3651_p11, %p3650_p10 }
 0x66f   : > { %p3648_p9 = pneg %p3647_p8 }
 0x671   : > { %p3653_p13 = pnand %p3652_p12, %p3648_p9 }
 0x673   : > { %3656 = shalt.err (!%p3653_p13)
}
 0x674   : > { %s3735_s27 = smov 128   ;;  %s3736_s29 = smov 8  }
 0x675   : > { %3550 = dma.vmem_to_hbm [thread:$0]  (%p3826_p5), %s4594_s26, 2048, %s4591_s25, %s2801_s16, %s3735_s27, %s3735_s27, %s3736_s29  }
 0x676   : > { %s4627_s14 = scalar_lea.hbm %s4682_s9, %s2996_s4  ;;  %s2835_s23 = sshll.u32 %s3993_s22, 4  ;;  %s4630_s23 = int_to_ptr.vmem [resolvable:$true] %s2835_s23 }
 0x677   : > { %s2806_s24 = scalar_lea.sflag [#allocation7], %s3837_s21  ;;  %s3657_s17 = scalar_lea.vmem %s4630_s23, 2048 }
 0x678   : > { %p3658_p0 = scmp.ne.s32.totalorder %s4630_s23, %s3657_s17  ;;  %s3737_s0 = smov [#allocation6]  }
 0x679   : > { %s3661_s25 = sshll.u32 %s3737_s0, 4  ;;  %s3662_s25 = int_to_ptr.vmem [resolvable:$false] %s3661_s25 }
 0x67a   : > { %p3659_p1 = pnand %p3658_p0, %p3826_p5  ;;  %s3663_s13 = scalar_lea.vmem %s3662_s25, 4096 }
 0x67b   : > { %p3664_p3 = scmp.lt.s32.totalorder %s4630_s23, %s3662_s25  ;;  %p3665_p4 = scmp.lt.s32.totalorder %s3663_s13, %s3657_s17 }
 0x67c   : > { %p3660_p2 = pneg %p3659_p1 }
 0x67d   : > { %p3666_p7 = por %p3665_p4, %p3664_p3 }
 0x67f   : > { %p3667_p8 = pnand %p3666_p7, %p3660_p2 }
 0x681   : > { %3670 = shalt.err (!%p3667_p8)
}
 0x682   : > { %s3671_s22 = scalar_lea.hbm %s4627_s14, 2048  ;;  %s3675_s26 = scalar_lea.hbm %s4682_s9, 4096 }
 0x683   : > { %p3672_p9 = scmp.ne.s32.totalorder %s4627_s14, %s3671_s22  ;;  %p3676_p12 = scmp.lt.s32.totalorder %s4627_s14, %s4682_s9 }
 0x684   : > { %p3677_p13 = scmp.lt.s32.totalorder %s3675_s26, %s3671_s22 }
 0x685   : > { %p3673_p10 = pnand %p3672_p9, %p3826_p5 }
 0x686   : > { %p3678_p0 = por %p3677_p13, %p3676_p12 }
 0x687   : > { %p3674_p11 = pneg %p3673_p10 }
 0x689   : > { %p3679_p1 = pnand %p3678_p0, %p3674_p11 }
 0x68b   : > { %3682 = shalt.err (!%p3679_p1)
}
 0x68c   : > { %3551 = dma.vmem_to_hbm [thread:$0]  (%p3826_p5), %s4630_s23, 2048, %s4627_s14, %s2806_s24, %s3735_s27, %s3735_s27, %s3736_s29  }
 0x68d PF: > { %p3561_p2 = scmp.ge.s32.totalorder %s3725_s12, 2  ;;  %s2850_s18 = sand.u32 1, %s3713_s30  }
 0x68e   : > { %s2851_s17 = scalar_lea.sflag [#allocation5], %s2850_s18 }
 0x68f   : > { %p3555_p3 = pnand %p3561_p2, %p3830_p6 }
 0x691   : > { %p3556_p4 = pneg %p3555_p3 }
 0x693   : > { %3704 = dma.done.wait (%p3556_p4), %s2851_s17, 2048  }
 0x694   : > { %3706 = vsyncadd (%p3556_p4), %s2851_s17, 4294965248  ;;  %s2860_s0 = scalar_lea.sflag [#allocation7], %s2850_s18 }
 0x695   : > { %3708 = dma.done.wait (%p3556_p4), %s2860_s0, 2048  }
 0x696   : > { %3710 = vsyncadd (%p3556_p4), %s2860_s0, 4294965248  ;;  %s4802_s19 = sld [smem:[#allocation10_spill]]  ;;  %p23_p5 = scmp.ge.s32.totalorder %s3813_s15, 4  }
 0x697   : > { %s4803_s30 = smov %s3717_s10  ;;  %s4804_s10 = smov %s3721_s11 }
 0x698   : > { %s4806_s12 = smov %s3813_s15  ;;  %25 = sbr.rel (!%p23_p5) target bundleno = 8 (0x8), region = 131 }
 0x69c   : > { %s4805_s11 = smov %s4802_s19 }
 0x69d   :  { %2865 = vsyncpa [#allocation5], 1 }
 0x69e   :  { %2867 = vsyncpa [#allocation5 + $0x1], 1 }
 0x69f   :  { %2868 = vsyncpa [#allocation7], 1 }
 0x6a0   :  { %2870 = vsyncpa [#allocation7 + $0x1], 1 }

</bundles_post_ra>
